<compile_context>
chip_gen: v6e
topology: v6e:2x2x1
jax: 0.10.0
libtpu: 0.0.40
codegen_flags: <defaults>
</compile_context>

<pallas_src>
import jax
import jax.numpy as jnp
from jax import lax
from jax.experimental import pallas as pl
from jax.experimental.pallas import tpu as pltpu

EPS = 1e-5          # nn.BatchNorm2d default eps
NEG_SLOPE = 0.002   # F.leaky_relu negative_slope in the reference module
CPAD = 128          # pad every layer's Cout to 128 -> lane-dense output stores


# --------------------------- Pallas kernels ---------------------------------

def _conv_bn_lrelu_kernel(p_ref, w_ref, g_ref, b_ref, o_ref):
    """Single-shot fused (im2col-matmul) conv + BatchNorm(batch stats) + LeakyReLU.

    p_ref: (M, K) patches, w_ref: (K, CPAD) weights (Cout zero-padded),
    g_ref/b_ref: (1, CPAD), o_ref: (M, CPAD).
    """
    y = jnp.dot(p_ref[...], w_ref[...], preferred_element_type=jnp.float32)
    inv_m = 1.0 / y.shape[0]
    mean = jnp.sum(y, axis=0, keepdims=True) * inv_m
    var = jnp.sum(y * y, axis=0, keepdims=True) * inv_m - mean * mean  # one-pass
    z = (y - mean) * lax.rsqrt(var + EPS) * g_ref[...] + b_ref[...]
    o_ref[...] = jnp.where(z >= 0, z, NEG_SLOPE * z).astype(o_ref.dtype)


def _conv_bn_lrelu_final_kernel(p_ref, w_ref, g_ref, b_ref,
                                w4_ref, sel_ref, o_ref):
    """conv3 + BN3 + LeakyReLU, with conv4 (4x4 valid, Cout=1) + sigmoid fused
    into the epilogue.

    w4_ref: (M3, CPAD) conv4 weight broadcast per (batch, spatial) row.
    sel_ref: (N, M3) selector, sel[n, r] = 1 if row r belongs to batch n.
    o_ref: (N, 1) sigmoid logits.
    """
    y = jnp.dot(p_ref[...], w_ref[...], preferred_element_type=jnp.float32)
    inv_m = 1.0 / y.shape[0]
    mean = jnp.sum(y, axis=0, keepdims=True) * inv_m
    var = jnp.sum(y * y, axis=0, keepdims=True) * inv_m - mean * mean
    z = (y - mean) * lax.rsqrt(var + EPS) * g_ref[...] + b_ref[...]
    a = jnp.where(z >= 0, z, NEG_SLOPE * z)                 # (M3, CPAD)
    prod = a * w4_ref[...]                                  # VPU mul
    per_batch = jnp.dot(sel_ref[...], prod,
                        preferred_element_type=jnp.float32)  # (N, CPAD)
    logit = jnp.sum(per_batch, axis=-1, keepdims=True)       # (N, 1)
    o_ref[...] = jax.nn.sigmoid(logit).astype(o_ref.dtype)


# --------------------------- wrappers ----------------------------------------

def _full_spec(shape):
    return pl.BlockSpec(shape, lambda i: tuple(0 for _ in shape))


def _pad_cout(w2d, gamma, beta):
    K, Cout = w2d.shape
    wp = jnp.pad(w2d, ((0, 0), (0, CPAD - Cout)))
    gp = jnp.pad(gamma.reshape(1, Cout), ((0, 0), (0, CPAD - Cout)))
    bp = jnp.pad(beta.reshape(1, Cout), ((0, 0), (0, CPAD - Cout)))
    return wp, gp, bp


def _conv_bn_lrelu(patches, w2d, gamma, beta):
    M, K = patches.shape
    wp, gp, bp = _pad_cout(w2d, gamma, beta)
    return pl.pallas_call(
        _conv_bn_lrelu_kernel,
        out_shape=jax.ShapeDtypeStruct((M, CPAD), jnp.float32),
        grid=(1,),
        in_specs=[_full_spec((M, K)), _full_spec((K, CPAD)),
                  _full_spec((1, CPAD)), _full_spec((1, CPAD))],
        out_specs=_full_spec((M, CPAD)),
        compiler_params=pltpu.CompilerParams(
            dimension_semantics=("arbitrary",)),
    )(patches, wp, gp, bp)


def _conv_bn_lrelu_final(patches, w2d, gamma, beta, w4_tiled, sel):
    M, K = patches.shape
    N = sel.shape[0]
    wp, gp, bp = _pad_cout(w2d, gamma, beta)
    return pl.pallas_call(
        _conv_bn_lrelu_final_kernel,
        out_shape=jax.ShapeDtypeStruct((N, 1), jnp.float32),
        grid=(1,),
        in_specs=[_full_spec((M, K)), _full_spec((K, CPAD)),
                  _full_spec((1, CPAD)), _full_spec((1, CPAD)),
                  _full_spec((M, CPAD)), _full_spec((N, M))],
        out_specs=_full_spec((N, 1)),
        compiler_params=pltpu.CompilerParams(
            dimension_semantics=("arbitrary",)),
    )(patches, wp, gp, bp, w4_tiled, sel)


def _im2col(x_nhwc, k, stride, pad):
    """(N,H,W,C) -> (N*Ho*Wo, k*k*C) patch matrix (row order: kh, kw, Cin)."""
    N, H, W, C = x_nhwc.shape
    xp = jnp.pad(x_nhwc, ((0, 0), (pad, pad), (pad, pad), (0, 0)))
    Ho = (H + 2 * pad - k) // stride + 1
    Wo = (W + 2 * pad - k) // stride + 1
    pieces = []
    for i in range(k):
        for j in range(k):
            pieces.append(xp[:, i:i + Ho * stride:stride,
                             j:j + Wo * stride:stride, :])
    p = jnp.stack(pieces, axis=3)                       # (N, Ho, Wo, k*k, C)
    return p.reshape(N * Ho * Wo, k * k * C), (N, Ho, Wo)


def _reshape_weight(w):
    """PyTorch (Cout,Cin,kh,kw) -> (kh*kw*Cin, Cout) matching im2col order."""
    Cout, Cin, kh, kw = w.shape
    return jnp.transpose(w, (2, 3, 1, 0)).reshape(kh * kw * Cin, Cout)


def conv_block(x_nhwc, w, gamma, beta, stride, pad):
    Cout, _, kh, _ = w.shape
    patches, (N, Ho, Wo) = _im2col(x_nhwc, kh, stride, pad)
    y = _conv_bn_lrelu(patches, _reshape_weight(w), gamma, beta)
    # slice the real channels back out (keeps next layer's im2col small)
    return y.reshape(N, Ho, Wo, CPAD)[..., :Cout]


def conv_block_final(x_nhwc, w3, g3, b3, w4, stride, pad):
    """conv3+BN3+LReLU fused with the final 4x4 valid conv + sigmoid."""
    Cout3, _, kh, _ = w3.shape
    patches, (N, Ho, Wo) = _im2col(x_nhwc, kh, stride, pad)
    # conv4 must consume the full Ho x Wo map with a matching valid kernel
    assert w4.shape == (1, Cout3, Ho, Wo), (w4.shape, Ho, Wo)
    w4m = jnp.transpose(w4, (2, 3, 1, 0)).reshape(Ho * Wo, Cout3)  # (16, C3)
    w4m = jnp.pad(w4m, ((0, 0), (0, CPAD - Cout3)))
    w4_tiled = jnp.tile(w4m, (N, 1))                               # (M3, CPAD)
    rows = jnp.arange(N * Ho * Wo) // (Ho * Wo)
    sel = (jnp.arange(N)[:, None] == rows[None, :]).astype(jnp.float32)
    out = _conv_bn_lrelu_final(patches, _reshape_weight(w3), g3, b3,
                               w4_tiled, sel)                      # (N, 1)
    return out.reshape(N, 1, 1, 1)


def discriminator_forward(params, x_nchw):
    x = jnp.transpose(x_nchw, (0, 2, 3, 1))             # NCHW -> NHWC
    x = conv_block(x, params["w1"], params["g1"], params["b1"], 2, 1)
    x = conv_block(x, params["w2"], params["g2"], params["b2"], 2, 1)
    out = conv_block_final(x, params["w3"], params["g3"], params["b3"],
                           params["w4"], 2, 1)
    return jnp.transpose(out, (0, 3, 1, 2))             # NHWC -> NCHW (N,1,1,1)


# --------------------------- parameters --------------------------------------

def init_params(key, d=16):
    ks = jax.random.split(key, 7)

    def kaiming(k, cout, cin, kh, kw):          # kaiming_normal_, fan_in mode
        fan_in = cin * kh * kw
        return (jax.random.normal(k, (cout, cin, kh, kw), jnp.float32)
                * jnp.sqrt(2.0 / fan_in))

    return {
        "w1": kaiming(ks[0], d, 1, 4, 4),
        "g1": 1.0 + 0.02 * jax.random.normal(ks[4], (d,), jnp.float32),
        "b1": jnp.zeros((d,), jnp.float32),
        "w2": kaiming(ks[1], 2 * d, d, 4, 4),
        "g2": 1.0 + 0.02 * jax.random.normal(ks[5], (2 * d,), jnp.float32),
        "b2": jnp.zeros((2 * d,), jnp.float32),
        "w3": kaiming(ks[2], 4 * d, 2 * d, 4, 4),
        "g3": 1.0 + 0.02 * jax.random.normal(ks[6], (4 * d,), jnp.float32),
        "b3": jnp.zeros((4 * d,), jnp.float32),
        "w4": kaiming(ks[3], 1, 4 * d, 4, 4),
    }


# --------------------------- pure-JAX reference -------------------------------

def _reference_forward(params, x_nchw):
    x = jnp.transpose(x_nchw, (0, 2, 3, 1))

    def conv(x, w, stride, pad):
        whwio = jnp.transpose(w, (2, 3, 1, 0))
        return lax.conv_general_dilated(
            x, whwio, (stride, stride), [(pad, pad), (pad, pad)],
            dimension_numbers=("NHWC", "HWIO", "NHWC"))

    def bn_lrelu(x, g, b):
        mean = jnp.mean(x, axis=(0, 1, 2), keepdims=True)
        var = jnp.mean((x - mean) ** 2, axis=(0, 1, 2), keepdims=True)
        z = (x - mean) / jnp.sqrt(var + EPS) * g + b
        return jnp.where(z >= 0, z, NEG_SLOPE * z)

    x = bn_lrelu(conv(x, params["w1"], 2, 1), params["g1"], params["b1"])
    x = bn_lrelu(conv(x, params["w2"], 2, 1), params["g2"], params["b2"])
    x = bn_lrelu(conv(x, params["w3"], 2, 1), params["g3"], params["b3"])
    x = jax.nn.sigmoid(conv(x, params["w4"], 1, 0))
    return jnp.transpose(x, (0, 3, 1, 2))


# --------------------------- main ---------------------------------------------

if __name__ == "__main__":
    key = jax.random.PRNGKey(0)
    kx, kp = jax.random.split(key)
    # DCGAN discriminator expects 1x32x32 inputs (so conv4's 4x4 valid conv
    # yields 1x1); small: batch=2, d=16 instead of 128.
    x = jax.random.normal(kx, (2, 1, 32, 32), jnp.float32)   # NCHW like PyTorch
    params = init_params(kp, d=16)

    out = jax.jit(discriminator_forward)(params, x)
    out = jax.block_until_ready(out)

    assert out.shape == (2, 1, 1, 1), out.shape
    ref = _reference_forward(params, x)
    assert jnp.allclose(out, ref, atol=2e-3, rtol=2e-3), (out, ref)
    print("KERNEL_OK")
</pallas_src>

<mosaic_0001>
module attributes {stable_mosaic.version = 11 : i64} {
  func.func @_conv_bn_lrelu_kernel(%arg0: i32, %arg1: memref<512x16xf32, #tpu.memory_space<vmem>>, %arg2: memref<16x128xf32, #tpu.memory_space<vmem>>, %arg3: memref<1x128xf32, #tpu.memory_space<vmem>>, %arg4: memref<1x128xf32, #tpu.memory_space<vmem>>, %arg5: memref<512x128xf32, #tpu.memory_space<vmem>>) attributes {dimension_semantics = [#tpu.dimension_semantics<arbitrary>], iteration_bounds = array<i64: 1>, scalar_prefetch = 0 : i64, scratch_operands = 0 : i64, tpu.core_type = #tpu.core_type<tc>, window_params = [{pipeline_mode = #tpu.pipeline_mode<synchronous>, transform_indices = @transform_0, window_bounds = array<i64: 512, 16>}, {pipeline_mode = #tpu.pipeline_mode<synchronous>, transform_indices = @transform_1, window_bounds = array<i64: 16, 128>}, {pipeline_mode = #tpu.pipeline_mode<synchronous>, transform_indices = @transform_2, window_bounds = array<i64: 1, 128>}, {pipeline_mode = #tpu.pipeline_mode<synchronous>, transform_indices = @transform_3, window_bounds = array<i64: 1, 128>}, {pipeline_mode = #tpu.pipeline_mode<synchronous>, transform_indices = @transform_4, window_bounds = array<i64: 512, 128>}]} {
    %c0 = arith.constant 0 : index
    %c0_0 = arith.constant 0 : index
    %0 = vector.load %arg1[%c0, %c0_0] : memref<512x16xf32, #tpu.memory_space<vmem>>, vector<512x16xf32>
    %c0_1 = arith.constant 0 : index
    %c0_2 = arith.constant 0 : index
    %1 = vector.load %arg2[%c0_1, %c0_2] : memref<16x128xf32, #tpu.memory_space<vmem>>, vector<16x128xf32>
    %cst = arith.constant dense<0.000000e+00> : vector<512x128xf32>
    %2 = tpu.matmul %0, %1, %cst {dimension_numbers = #tpu.dot_dimension_numbers<[1], [0], [0], [1], [0, 0, 1, 1], [], []>} : vector<512x16xf32>, vector<16x128xf32>, vector<512x128xf32> -> vector<512x128xf32>
    %cst_3 = arith.constant dense<0.000000e+00> : vector<128xf32>
    %3 = vector.multi_reduction <add>, %2, %cst_3 [0] : vector<512x128xf32> to vector<128xf32>
    %4 = vector.shape_cast %3 : vector<128xf32> to vector<1x128xf32>
    %cst_4 = arith.constant 0.001953125 : f32
    %5 = vector.broadcast %cst_4 : f32 to vector<1x128xf32>
    %6 = arith.mulf %4, %5 : vector<1x128xf32>
    %7 = arith.mulf %2, %2 : vector<512x128xf32>
    %cst_5 = arith.constant dense<0.000000e+00> : vector<128xf32>
    %8 = vector.multi_reduction <add>, %7, %cst_5 [0] : vector<512x128xf32> to vector<128xf32>
    %9 = vector.shape_cast %8 : vector<128xf32> to vector<1x128xf32>
    %cst_6 = arith.constant 0.001953125 : f32
    %10 = vector.broadcast %cst_6 : f32 to vector<1x128xf32>
    %11 = arith.mulf %9, %10 : vector<1x128xf32>
    %12 = arith.mulf %6, %6 : vector<1x128xf32>
    %13 = arith.subf %11, %12 : vector<1x128xf32>
    %14 = vector.broadcast %6 : vector<1x128xf32> to vector<512x128xf32>
    %15 = arith.subf %2, %14 : vector<512x128xf32>
    %cst_7 = arith.constant 9.99999974E-6 : f32
    %16 = vector.broadcast %cst_7 : f32 to vector<1x128xf32>
    %17 = arith.addf %13, %16 : vector<1x128xf32>
    %18 = math.rsqrt %17 : vector<1x128xf32>
    %19 = vector.broadcast %18 : vector<1x128xf32> to vector<512x128xf32>
    %20 = arith.mulf %15, %19 : vector<512x128xf32>
    %c0_8 = arith.constant 0 : index
    %c0_9 = arith.constant 0 : index
    %21 = vector.load %arg3[%c0_8, %c0_9] : memref<1x128xf32, #tpu.memory_space<vmem>>, vector<1x128xf32>
    %22 = vector.broadcast %21 : vector<1x128xf32> to vector<512x128xf32>
    %23 = arith.mulf %20, %22 : vector<512x128xf32>
    %c0_10 = arith.constant 0 : index
    %c0_11 = arith.constant 0 : index
    %24 = vector.load %arg4[%c0_10, %c0_11] : memref<1x128xf32, #tpu.memory_space<vmem>>, vector<1x128xf32>
    %25 = vector.broadcast %24 : vector<1x128xf32> to vector<512x128xf32>
    %26 = arith.addf %23, %25 : vector<512x128xf32>
    %cst_12 = arith.constant 0.000000e+00 : f32
    %27 = vector.broadcast %cst_12 : f32 to vector<512x128xf32>
    %28 = arith.cmpf oge, %26, %27 : vector<512x128xf32>
    %cst_13 = arith.constant 2.000000e-03 : f32
    %29 = vector.broadcast %cst_13 : f32 to vector<512x128xf32>
    %30 = arith.mulf %29, %26 : vector<512x128xf32>
    %31 = arith.select %28, %26, %30 : vector<512x128xi1>, vector<512x128xf32>
    %c0_14 = arith.constant 0 : index
    %c0_15 = arith.constant 0 : index
    %32 = vector.load %arg5[%c0_14, %c0_15] : memref<512x128xf32, #tpu.memory_space<vmem>>, vector<512x128xf32>
    tpu.vector_store %arg5[%c0_14, %c0_15], %31 {strides = array<i32>} : memref<512x128xf32, #tpu.memory_space<vmem>>, vector<512x128xf32>,
    return
  }
  func.func @transform_0(%arg0: i32) -> (i32, i32) {
    %c0_i32 = arith.constant 0 : i32
    %c0_i32_0 = arith.constant 0 : i32
    %c0_i32_1 = arith.constant 0 : i32
    return %c0_i32, %c0_i32_0 : i32, i32
  }
  func.func @transform_1(%arg0: i32) -> (i32, i32) {
    %c0_i32 = arith.constant 0 : i32
    %c0_i32_0 = arith.constant 0 : i32
    %c0_i32_1 = arith.constant 0 : i32
    return %c0_i32, %c0_i32_0 : i32, i32
  }
  func.func @transform_2(%arg0: i32) -> (i32, i32) {
    %c0_i32 = arith.constant 0 : i32
    %c0_i32_0 = arith.constant 0 : i32
    %c0_i32_1 = arith.constant 0 : i32
    return %c0_i32, %c0_i32_0 : i32, i32
  }
  func.func @transform_3(%arg0: i32) -> (i32, i32) {
    %c0_i32 = arith.constant 0 : i32
    %c0_i32_0 = arith.constant 0 : i32
    %c0_i32_1 = arith.constant 0 : i32
    return %c0_i32, %c0_i32_0 : i32, i32
  }
  func.func @transform_4(%arg0: i32) -> (i32, i32) {
    %c0_i32 = arith.constant 0 : i32
    %c0_i32_0 = arith.constant 0 : i32
    %c0_i32_1 = arith.constant 0 : i32
    return %c0_i32, %c0_i32_0 : i32, i32
  }
}

module attributes {stable_mosaic.version = 11 : i64} {
  func.func @_conv_bn_lrelu_kernel(%arg0: i32, %arg1: memref<128x256xf32, #tpu.memory_space<vmem>>, %arg2: memref<256x128xf32, #tpu.memory_space<vmem>>, %arg3: memref<1x128xf32, #tpu.memory_space<vmem>>, %arg4: memref<1x128xf32, #tpu.memory_space<vmem>>, %arg5: memref<128x128xf32, #tpu.memory_space<vmem>>) attributes {dimension_semantics = [#tpu.dimension_semantics<arbitrary>], iteration_bounds = array<i64: 1>, scalar_prefetch = 0 : i64, scratch_operands = 0 : i64, tpu.core_type = #tpu.core_type<tc>, window_params = [{pipeline_mode = #tpu.pipeline_mode<synchronous>, transform_indices = @transform_0, window_bounds = array<i64: 128, 256>}, {pipeline_mode = #tpu.pipeline_mode<synchronous>, transform_indices = @transform_1, window_bounds = array<i64: 256, 128>}, {pipeline_mode = #tpu.pipeline_mode<synchronous>, transform_indices = @transform_2, window_bounds = array<i64: 1, 128>}, {pipeline_mode = #tpu.pipeline_mode<synchronous>, transform_indices = @transform_3, window_bounds = array<i64: 1, 128>}, {pipeline_mode = #tpu.pipeline_mode<synchronous>, transform_indices = @transform_4, window_bounds = array<i64: 128, 128>}]} {
    %c0 = arith.constant 0 : index
    %c0_0 = arith.constant 0 : index
    %0 = vector.load %arg1[%c0, %c0_0] : memref<128x256xf32, #tpu.memory_space<vmem>>, vector<128x256xf32>
    %c0_1 = arith.constant 0 : index
    %c0_2 = arith.constant 0 : index
    %1 = vector.load %arg2[%c0_1, %c0_2] : memref<256x128xf32, #tpu.memory_space<vmem>>, vector<256x128xf32>
    %cst = arith.constant dense<0.000000e+00> : vector<128x128xf32>
    %2 = tpu.matmul %0, %1, %cst {dimension_numbers = #tpu.dot_dimension_numbers<[1], [0], [0], [1], [0, 0, 1, 1], [], []>} : vector<128x256xf32>, vector<256x128xf32>, vector<128x128xf32> -> vector<128x128xf32>
    %cst_3 = arith.constant dense<0.000000e+00> : vector<128xf32>
    %3 = vector.multi_reduction <add>, %2, %cst_3 [0] : vector<128x128xf32> to vector<128xf32>
    %4 = vector.shape_cast %3 : vector<128xf32> to vector<1x128xf32>
    %cst_4 = arith.constant 7.812500e-03 : f32
    %5 = vector.broadcast %cst_4 : f32 to vector<1x128xf32>
    %6 = arith.mulf %4, %5 : vector<1x128xf32>
    %7 = arith.mulf %2, %2 : vector<128x128xf32>
    %cst_5 = arith.constant dense<0.000000e+00> : vector<128xf32>
    %8 = vector.multi_reduction <add>, %7, %cst_5 [0] : vector<128x128xf32> to vector<128xf32>
    %9 = vector.shape_cast %8 : vector<128xf32> to vector<1x128xf32>
    %cst_6 = arith.constant 7.812500e-03 : f32
    %10 = vector.broadcast %cst_6 : f32 to vector<1x128xf32>
    %11 = arith.mulf %9, %10 : vector<1x128xf32>
    %12 = arith.mulf %6, %6 : vector<1x128xf32>
    %13 = arith.subf %11, %12 : vector<1x128xf32>
    %14 = vector.broadcast %6 : vector<1x128xf32> to vector<128x128xf32>
    %15 = arith.subf %2, %14 : vector<128x128xf32>
    %cst_7 = arith.constant 9.99999974E-6 : f32
    %16 = vector.broadcast %cst_7 : f32 to vector<1x128xf32>
    %17 = arith.addf %13, %16 : vector<1x128xf32>
    %18 = math.rsqrt %17 : vector<1x128xf32>
    %19 = vector.broadcast %18 : vector<1x128xf32> to vector<128x128xf32>
    %20 = arith.mulf %15, %19 : vector<128x128xf32>
    %c0_8 = arith.constant 0 : index
    %c0_9 = arith.constant 0 : index
    %21 = vector.load %arg3[%c0_8, %c0_9] : memref<1x128xf32, #tpu.memory_space<vmem>>, vector<1x128xf32>
    %22 = vector.broadcast %21 : vector<1x128xf32> to vector<128x128xf32>
    %23 = arith.mulf %20, %22 : vector<128x128xf32>
    %c0_10 = arith.constant 0 : index
    %c0_11 = arith.constant 0 : index
    %24 = vector.load %arg4[%c0_10, %c0_11] : memref<1x128xf32, #tpu.memory_space<vmem>>, vector<1x128xf32>
    %25 = vector.broadcast %24 : vector<1x128xf32> to vector<128x128xf32>
    %26 = arith.addf %23, %25 : vector<128x128xf32>
    %cst_12 = arith.constant 0.000000e+00 : f32
    %27 = vector.broadcast %cst_12 : f32 to vector<128x128xf32>
    %28 = arith.cmpf oge, %26, %27 : vector<128x128xf32>
    %cst_13 = arith.constant 2.000000e-03 : f32
    %29 = vector.broadcast %cst_13 : f32 to vector<128x128xf32>
    %30 = arith.mulf %29, %26 : vector<128x128xf32>
    %31 = arith.select %28, %26, %30 : vector<128x128xi1>, vector<128x128xf32>
    %c0_14 = arith.constant 0 : index
    %c0_15 = arith.constant 0 : index
    %32 = vector.load %arg5[%c0_14, %c0_15] : memref<128x128xf32, #tpu.memory_space<vmem>>, vector<128x128xf32>
    tpu.vector_store %arg5[%c0_14, %c0_15], %31 {strides = array<i32>} : memref<128x128xf32, #tpu.memory_space<vmem>>, vector<128x128xf32>,
    return
  }
  func.func @transform_0(%arg0: i32) -> (i32, i32) {
    %c0_i32 = arith.constant 0 : i32
    %c0_i32_0 = arith.constant 0 : i32
    %c0_i32_1 = arith.constant 0 : i32
    return %c0_i32, %c0_i32_0 : i32, i32
  }
  func.func @transform_1(%arg0: i32) -> (i32, i32) {
    %c0_i32 = arith.constant 0 : i32
    %c0_i32_0 = arith.constant 0 : i32
    %c0_i32_1 = arith.constant 0 : i32
    return %c0_i32, %c0_i32_0 : i32, i32
  }
  func.func @transform_2(%arg0: i32) -> (i32, i32) {
    %c0_i32 = arith.constant 0 : i32
    %c0_i32_0 = arith.constant 0 : i32
    %c0_i32_1 = arith.constant 0 : i32
    return %c0_i32, %c0_i32_0 : i32, i32
  }
  func.func @transform_3(%arg0: i32) -> (i32, i32) {
    %c0_i32 = arith.constant 0 : i32
    %c0_i32_0 = arith.constant 0 : i32
    %c0_i32_1 = arith.constant 0 : i32
    return %c0_i32, %c0_i32_0 : i32, i32
  }
  func.func @transform_4(%arg0: i32) -> (i32, i32) {
    %c0_i32 = arith.constant 0 : i32
    %c0_i32_0 = arith.constant 0 : i32
    %c0_i32_1 = arith.constant 0 : i32
    return %c0_i32, %c0_i32_0 : i32, i32
  }
}

module attributes {stable_mosaic.version = 11 : i64} {
  func.func @_conv_bn_lrelu_final_kernel(%arg0: i32, %arg1: memref<32x512xf32, #tpu.memory_space<vmem>>, %arg2: memref<512x128xf32, #tpu.memory_space<vmem>>, %arg3: memref<1x128xf32, #tpu.memory_space<vmem>>, %arg4: memref<1x128xf32, #tpu.memory_space<vmem>>, %arg5: memref<32x128xf32, #tpu.memory_space<vmem>>, %arg6: memref<2x32xf32, #tpu.memory_space<vmem>>, %arg7: memref<2x1xf32, #tpu.memory_space<vmem>>) attributes {dimension_semantics = [#tpu.dimension_semantics<arbitrary>], iteration_bounds = array<i64: 1>, scalar_prefetch = 0 : i64, scratch_operands = 0 : i64, tpu.core_type = #tpu.core_type<tc>, window_params = [{pipeline_mode = #tpu.pipeline_mode<synchronous>, transform_indices = @transform_0, window_bounds = array<i64: 32, 512>}, {pipeline_mode = #tpu.pipeline_mode<synchronous>, transform_indices = @transform_1, window_bounds = array<i64: 512, 128>}, {pipeline_mode = #tpu.pipeline_mode<synchronous>, transform_indices = @transform_2, window_bounds = array<i64: 1, 128>}, {pipeline_mode = #tpu.pipeline_mode<synchronous>, transform_indices = @transform_3, window_bounds = array<i64: 1, 128>}, {pipeline_mode = #tpu.pipeline_mode<synchronous>, transform_indices = @transform_4, window_bounds = array<i64: 32, 128>}, {pipeline_mode = #tpu.pipeline_mode<synchronous>, transform_indices = @transform_5, window_bounds = array<i64: 2, 32>}, {pipeline_mode = #tpu.pipeline_mode<synchronous>, transform_indices = @transform_6, window_bounds = array<i64: 2, 1>}]} {
    %c0 = arith.constant 0 : index
    %c0_0 = arith.constant 0 : index
    %0 = vector.load %arg1[%c0, %c0_0] : memref<32x512xf32, #tpu.memory_space<vmem>>, vector<32x512xf32>
    %c0_1 = arith.constant 0 : index
    %c0_2 = arith.constant 0 : index
    %1 = vector.load %arg2[%c0_1, %c0_2] : memref<512x128xf32, #tpu.memory_space<vmem>>, vector<512x128xf32>
    %cst = arith.constant dense<0.000000e+00> : vector<32x128xf32>
    %2 = tpu.matmul %0, %1, %cst {dimension_numbers = #tpu.dot_dimension_numbers<[1], [0], [0], [1], [0, 0, 1, 1], [], []>} : vector<32x512xf32>, vector<512x128xf32>, vector<32x128xf32> -> vector<32x128xf32>
    %cst_3 = arith.constant dense<0.000000e+00> : vector<128xf32>
    %3 = vector.multi_reduction <add>, %2, %cst_3 [0] : vector<32x128xf32> to vector<128xf32>
    %4 = vector.shape_cast %3 : vector<128xf32> to vector<1x128xf32>
    %cst_4 = arith.constant 3.125000e-02 : f32
    %5 = vector.broadcast %cst_4 : f32 to vector<1x128xf32>
    %6 = arith.mulf %4, %5 : vector<1x128xf32>
    %7 = arith.mulf %2, %2 : vector<32x128xf32>
    %cst_5 = arith.constant dense<0.000000e+00> : vector<128xf32>
    %8 = vector.multi_reduction <add>, %7, %cst_5 [0] : vector<32x128xf32> to vector<128xf32>
    %9 = vector.shape_cast %8 : vector<128xf32> to vector<1x128xf32>
    %cst_6 = arith.constant 3.125000e-02 : f32
    %10 = vector.broadcast %cst_6 : f32 to vector<1x128xf32>
    %11 = arith.mulf %9, %10 : vector<1x128xf32>
    %12 = arith.mulf %6, %6 : vector<1x128xf32>
    %13 = arith.subf %11, %12 : vector<1x128xf32>
    %14 = vector.broadcast %6 : vector<1x128xf32> to vector<32x128xf32>
    %15 = arith.subf %2, %14 : vector<32x128xf32>
    %cst_7 = arith.constant 9.99999974E-6 : f32
    %16 = vector.broadcast %cst_7 : f32 to vector<1x128xf32>
    %17 = arith.addf %13, %16 : vector<1x128xf32>
    %18 = math.rsqrt %17 : vector<1x128xf32>
    %19 = vector.broadcast %18 : vector<1x128xf32> to vector<32x128xf32>
    %20 = arith.mulf %15, %19 : vector<32x128xf32>
    %c0_8 = arith.constant 0 : index
    %c0_9 = arith.constant 0 : index
    %21 = vector.load %arg3[%c0_8, %c0_9] : memref<1x128xf32, #tpu.memory_space<vmem>>, vector<1x128xf32>
    %22 = vector.broadcast %21 : vector<1x128xf32> to vector<32x128xf32>
    %23 = arith.mulf %20, %22 : vector<32x128xf32>
    %c0_10 = arith.constant 0 : index
    %c0_11 = arith.constant 0 : index
    %24 = vector.load %arg4[%c0_10, %c0_11] : memref<1x128xf32, #tpu.memory_space<vmem>>, vector<1x128xf32>
    %25 = vector.broadcast %24 : vector<1x128xf32> to vector<32x128xf32>
    %26 = arith.addf %23, %25 : vector<32x128xf32>
    %cst_12 = arith.constant 0.000000e+00 : f32
    %27 = vector.broadcast %cst_12 : f32 to vector<32x128xf32>
    %28 = arith.cmpf oge, %26, %27 : vector<32x128xf32>
    %cst_13 = arith.constant 2.000000e-03 : f32
    %29 = vector.broadcast %cst_13 : f32 to vector<32x128xf32>
    %30 = arith.mulf %29, %26 : vector<32x128xf32>
    %31 = arith.select %28, %26, %30 : vector<32x128xi1>, vector<32x128xf32>
    %c0_14 = arith.constant 0 : index
    %c0_15 = arith.constant 0 : index
    %32 = vector.load %arg5[%c0_14, %c0_15] : memref<32x128xf32, #tpu.memory_space<vmem>>, vector<32x128xf32>
    %33 = arith.mulf %31, %32 : vector<32x128xf32>
    %c0_16 = arith.constant 0 : index
    %c0_17 = arith.constant 0 : index
    %34 = vector.load %arg6[%c0_16, %c0_17] : memref<2x32xf32, #tpu.memory_space<vmem>>, vector<2x32xf32>
    %cst_18 = arith.constant dense<0.000000e+00> : vector<2x128xf32>
    %35 = tpu.matmul %34, %33, %cst_18 {dimension_numbers = #tpu.dot_dimension_numbers<[1], [0], [0], [1], [0, 0, 1, 1], [], []>} : vector<2x32xf32>, vector<32x128xf32>, vector<2x128xf32> -> vector<2x128xf32>
    %cst_19 = arith.constant dense<0.000000e+00> : vector<2xf32>
    %36 = vector.multi_reduction <add>, %35, %cst_19 [1] : vector<2x128xf32> to vector<2xf32>
    %37 = vector.shape_cast %36 : vector<2xf32> to vector<2x1xf32>
    %38 = arith.negf %37 : vector<2x1xf32>
    %39 = math.exp %38 : vector<2x1xf32>
    %cst_20 = arith.constant 1.000000e+00 : f32
    %40 = vector.broadcast %cst_20 : f32 to vector<2x1xf32>
    %41 = arith.addf %40, %39 : vector<2x1xf32>
    %42 = arith.divf %40, %41 : vector<2x1xf32>
    %c0_21 = arith.constant 0 : index
    %c0_22 = arith.constant 0 : index
    %43 = vector.load %arg7[%c0_21, %c0_22] : memref<2x1xf32, #tpu.memory_space<vmem>>, vector<2x1xf32>
    tpu.vector_store %arg7[%c0_21, %c0_22], %42 {strides = array<i32>} : memref<2x1xf32, #tpu.memory_space<vmem>>, vector<2x1xf32>,
    return
  }
  func.func @transform_0(%arg0: i32) -> (i32, i32) {
    %c0_i32 = arith.constant 0 : i32
    %c0_i32_0 = arith.constant 0 : i32
    %c0_i32_1 = arith.constant 0 : i32
    return %c0_i32, %c0_i32_0 : i32, i32
  }
  func.func @transform_1(%arg0: i32) -> (i32, i32) {
    %c0_i32 = arith.constant 0 : i32
    %c0_i32_0 = arith.constant 0 : i32
    %c0_i32_1 = arith.constant 0 : i32
    return %c0_i32, %c0_i32_0 : i32, i32
  }
  func.func @transform_2(%arg0: i32) -> (i32, i32) {
    %c0_i32 = arith.constant 0 : i32
    %c0_i32_0 = arith.constant 0 : i32
    %c0_i32_1 = arith.constant 0 : i32
    return %c0_i32, %c0_i32_0 : i32, i32
  }
  func.func @transform_3(%arg0: i32) -> (i32, i32) {
    %c0_i32 = arith.constant 0 : i32
    %c0_i32_0 = arith.constant 0 : i32
    %c0_i32_1 = arith.constant 0 : i32
    return %c0_i32, %c0_i32_0 : i32, i32
  }
  func.func @transform_4(%arg0: i32) -> (i32, i32) {
    %c0_i32 = arith.constant 0 : i32
    %c0_i32_0 = arith.constant 0 : i32
    %c0_i32_1 = arith.constant 0 : i32
    return %c0_i32, %c0_i32_0 : i32, i32
  }
  func.func @transform_5(%arg0: i32) -> (i32, i32) {
    %c0_i32 = arith.constant 0 : i32
    %c0_i32_0 = arith.constant 0 : i32
    %c0_i32_1 = arith.constant 0 : i32
    return %c0_i32, %c0_i32_0 : i32, i32
  }
  func.func @transform_6(%arg0: i32) -> (i32, i32) {
    %c0_i32 = arith.constant 0 : i32
    %c0_i32_0 = arith.constant 0 : i32
    %c0_i32_1 = arith.constant 0 : i32
    return %c0_i32, %c0_i32_0 : i32, i32
  }
}

</mosaic_0001>

<bundles_post_ra>
// kernel: discriminator_forward.3
= control target key start
LH: loop header
LB: loop body
LE: loop exit
PB: predicated region body
PF: predicated region fallthrough
CT: control target
= control target key end

     0   :  { %vm83_vm0 = vcmask 130048   ;;  %s3958_s1 = inlined_call_operand.vmem [shape: f32[16,128], index: 1, kind: input, shape index: {}]   ;;  %s3959_s0 = inlined_call_operand.vmem [shape: f32[512,16], index: 0, kind: input, shape index: {}]   ;;  %s3960_s2 = inlined_call_operand.vmem [shape: f32[1,128], index: 2, kind: input, shape index: {}]   ;;  %s3961_s3 = inlined_call_operand.vmem [shape: f32[1,128], index: 3, kind: input, shape index: {}]   ;;  %s3962_s4 = inlined_call_operand.vmem [shape: f32[512,128], index: 4, kind: output, shape index: {}]  }
   0x1   :  { %v82_v0 = vld [vmem:[%s3958_s1 + $0x8] sm:$0xff]  ;;  %v81_v1 = vld [vmem:[%s3958_s1] sm:$0xff]  ;;  %v19_v4 = vld [vmem:[%s3959_s0 + $0x10] sm:$0xff] }
   0x2   :  { %v17_v2 = vld [vmem:[%s3959_s0] sm:$0xff]  ;;  %1531 = vmatprep.subr.mxu0 %v82_v0  ;;  %v18_v3 = vld [vmem:[%s3959_s0 + $0x8] sm:$0xff]  ;;  %1631 = vmatprep.subr.mxu1 %v82_v0  ;;  %v20_v5 = vld [vmem:[%s3959_s0 + $0x18] sm:$0xff] }
   0x3   :  { %1535 = vmatprep.mubr.msk.f32.mxu0 %vm83_vm0, %v17_v2  ;;  %1532 = vmatpush3.msra.mxu0 %v82_v0  ;;  %v21_v6 = vld [vmem:[%s3959_s0 + $0x20] sm:$0xff]  ;;  %v22_v7 = vld [vmem:[%s3959_s0 + $0x28] sm:$0xff]  ;;  %v23_v8 = vld [vmem:[%s3959_s0 + $0x30] sm:$0xff] }
   0x4   :  { %1533 = vmatprep.subr.mxu0 %v81_v1  ;;  %1633 = vmatpush3.msra.mxu1 %v82_v0  ;;  %v49_v9 = vld [vmem:[%s3959_s0 + $0x100] sm:$0xff]  ;;  %v50_v10 = vld [vmem:[%s3959_s0 + $0x108] sm:$0xff]  ;;  %v51_v11 = vld [vmem:[%s3959_s0 + $0x110] sm:$0xff] }
   0x5   :  { %1534 = vmatpush3.msra.mxu0 %v81_v1  ;;  %1632 = vmatprep.subr.mxu1 %v81_v1  ;;  %v24_v12 = vld [vmem:[%s3959_s0 + $0x38] sm:$0xff]  ;;  %v25_v14 = vld [vmem:[%s3959_s0 + $0x40] sm:$0xff]  ;;  %v26_v16 = vld [vmem:[%s3959_s0 + $0x48] sm:$0xff] }
   0x6   :  { %1536 = vmatmul.mubr.msk.f32.vlgmr.msra.gmra.mxu0 %vm83_vm0, %v18_v3  ;;  %1634 = vmatpush3.msra.mxu1 %v81_v1  ;;  %v52_v13 = vld [vmem:[%s3959_s0 + $0x118] sm:$0xff]  ;;  %v53_v15 = vld [vmem:[%s3959_s0 + $0x120] sm:$0xff]  ;;  %v54_v17 = vld [vmem:[%s3959_s0 + $0x128] sm:$0xff] }
   0x7   :  { %1538 = vmatprep.mubr.msk.f32.mxu0 %vm83_vm0, %v19_v4  ;;  %1583 = vmatprep.mubr.msk.f32.mxu1 %vm83_vm0, %v49_v9  ;;  %v27_v18 = vld [vmem:[%s3959_s0 + $0x50] sm:$0xff]  ;;  %v28_v20 = vld [vmem:[%s3959_s0 + $0x58] sm:$0xff]  ;;  %v29_v22 = vld [vmem:[%s3959_s0 + $0x60] sm:$0xff] }
   0x8   :  { %1584 = vmatmul.mubr.msk.f32.vlgmr.msra.gmra.mxu1 %vm83_vm0, %v50_v10  ;;  %v55_v19 = vld [vmem:[%s3959_s0 + $0x130] sm:$0xff]  ;;  %v56_v21 = vld [vmem:[%s3959_s0 + $0x138] sm:$0xff]  ;;  %v57_v23 = vld [vmem:[%s3959_s0 + $0x140] sm:$0xff] }
   0x9   :  { %1586 = vmatprep.mubr.msk.f32.mxu1 %vm83_vm0, %v51_v11  ;;  %v30_v24 = vld [vmem:[%s3959_s0 + $0x68] sm:$0xff]  ;;  %v31_v26 = vld [vmem:[%s3959_s0 + $0x70] sm:$0xff]  ;;  %v32_v28 = vld [vmem:[%s3959_s0 + $0x78] sm:$0xff] }
   0xa   :  { %1539 = vmatmul.mubr.msk.f32.gmra.mxu0 %vm83_vm0, %v20_v5  ;;  %v58_v25 = vld [vmem:[%s3959_s0 + $0x148] sm:$0xff]  ;;  %v59_v27 = vld [vmem:[%s3959_s0 + $0x150] sm:$0xff]  ;;  %v60_v29 = vld [vmem:[%s3959_s0 + $0x158] sm:$0xff] }
   0xb   :  { %1541 = vmatprep.mubr.msk.f32.mxu0 %vm83_vm0, %v21_v6  ;;  %v33_v30 = vld [vmem:[%s3959_s0 + $0x80] sm:$0xff]  ;;  %v34_v32 = vld [vmem:[%s3959_s0 + $0x88] sm:$0xff]  ;;  %v35_v34 = vld [vmem:[%s3959_s0 + $0x90] sm:$0xff] }
   0xc   :  { %1587 = vmatmul.mubr.msk.f32.gmra.mxu1 %vm83_vm0, %v52_v13  ;;  %v61_v31 = vld [vmem:[%s3959_s0 + $0x160] sm:$0xff]  ;;  %v62_v33 = vld [vmem:[%s3959_s0 + $0x168] sm:$0xff]  ;;  %v63_v35 = vld [vmem:[%s3959_s0 + $0x170] sm:$0xff] }
   0xd   :  { %1589 = vmatprep.mubr.msk.f32.mxu1 %vm83_vm0, %v53_v15  ;;  %v36_v36 = vld [vmem:[%s3959_s0 + $0x98] sm:$0xff]  ;;  %v37_v38 = vld [vmem:[%s3959_s0 + $0xa0] sm:$0xff]  ;;  %v38_v40 = vld [vmem:[%s3959_s0 + $0xa8] sm:$0xff] }
   0xe   :  { %1542 = vmatmul.mubr.msk.f32.gmra.mxu0 %vm83_vm0, %v22_v7  ;;  %v64_v37 = vld [vmem:[%s3959_s0 + $0x178] sm:$0xff]  ;;  %v65_v39 = vld [vmem:[%s3959_s0 + $0x180] sm:$0xff]  ;;  %v66_v41 = vld [vmem:[%s3959_s0 + $0x188] sm:$0xff] }
   0xf   :  { %1544 = vmatprep.mubr.msk.f32.mxu0 %vm83_vm0, %v23_v8  ;;  %v39_v42 = vld [vmem:[%s3959_s0 + $0xb0] sm:$0xff]  ;;  %v40_v44 = vld [vmem:[%s3959_s0 + $0xb8] sm:$0xff]  ;;  %v41_v46 = vld [vmem:[%s3959_s0 + $0xc0] sm:$0xff] }
  0x10   :  { %1590 = vmatmul.mubr.msk.f32.gmra.mxu1 %vm83_vm0, %v54_v17  ;;  %v67_v43 = vld [vmem:[%s3959_s0 + $0x190] sm:$0xff]  ;;  %v68_v45 = vld [vmem:[%s3959_s0 + $0x198] sm:$0xff]  ;;  %v69_v47 = vld [vmem:[%s3959_s0 + $0x1a0] sm:$0xff] }
  0x11   :  { %1592 = vmatprep.mubr.msk.f32.mxu1 %vm83_vm0, %v55_v19  ;;  %v42_v48 = vld [vmem:[%s3959_s0 + $0xc8] sm:$0xff]  ;;  %v43_v50 = vld [vmem:[%s3959_s0 + $0xd0] sm:$0xff]  ;;  %v44_v52 = vld [vmem:[%s3959_s0 + $0xd8] sm:$0xff] }
  0x12   :  { %1545 = vmatmul.mubr.msk.f32.gmra.mxu0 %vm83_vm0, %v24_v12  ;;  %v70_v49 = vld [vmem:[%s3959_s0 + $0x1a8] sm:$0xff]  ;;  %v71_v51 = vld [vmem:[%s3959_s0 + $0x1b0] sm:$0xff]  ;;  %v72_v53 = vld [vmem:[%s3959_s0 + $0x1b8] sm:$0xff] }
  0x13   :  { %1547 = vmatprep.mubr.msk.f32.mxu0 %vm83_vm0, %v25_v14  ;;  %v45_v54 = vld [vmem:[%s3959_s0 + $0xe0] sm:$0xff]  ;;  %v46_v56 = vld [vmem:[%s3959_s0 + $0xe8] sm:$0xff]  ;;  %v47_v58 = vld [vmem:[%s3959_s0 + $0xf0] sm:$0xff] }
  0x14   :  { %1593 = vmatmul.mubr.msk.f32.gmra.mxu1 %vm83_vm0, %v56_v21  ;;  %v73_v55 = vld [vmem:[%s3959_s0 + $0x1c0] sm:$0xff]  ;;  %v74_v57 = vld [vmem:[%s3959_s0 + $0x1c8] sm:$0xff]  ;;  %v75_v59 = vld [vmem:[%s3959_s0 + $0x1d0] sm:$0xff] }
  0x15   :  { %1595 = vmatprep.mubr.msk.f32.mxu1 %vm83_vm0, %v57_v23  ;;  %v48_v60 = vld [vmem:[%s3959_s0 + $0xf8] sm:$0xff]  ;;  %v77_v62 = vld [vmem:[%s3959_s0 + $0x1e0] sm:$0xff]  ;;  %v78_v63 = vld [vmem:[%s3959_s0 + $0x1e8] sm:$0xff] }
  0x16   :  { %1548 = vmatmul.mubr.msk.f32.gmra.mxu0 %vm83_vm0, %v26_v16  ;;  %v76_v61 = vld [vmem:[%s3959_s0 + $0x1d8] sm:$0xff]  ;;  %v79_v0 = vld [vmem:[%s3959_s0 + $0x1f0] sm:$0xff] }
  0x17   :  { %1550 = vmatprep.mubr.msk.f32.mxu0 %vm83_vm0, %v27_v18  ;;  %v80_v1 = vld [vmem:[%s3959_s0 + $0x1f8] sm:$0xff] }
  0x18   :  { %1596 = vmatmul.mubr.msk.f32.gmra.mxu1 %vm83_vm0, %v58_v25 }
  0x19   :  { %1598 = vmatprep.mubr.msk.f32.mxu1 %vm83_vm0, %v59_v27 }
  0x1a   :  { %1551 = vmatmul.mubr.msk.f32.gmra.mxu0 %vm83_vm0, %v28_v20 }
  0x1b   :  { %1553 = vmatprep.mubr.msk.f32.mxu0 %vm83_vm0, %v29_v22 }
  0x1c   :  { %1599 = vmatmul.mubr.msk.f32.gmra.mxu1 %vm83_vm0, %v60_v29 }
  0x1d   :  { %1601 = vmatprep.mubr.msk.f32.mxu1 %vm83_vm0, %v61_v31 }
  0x1e   :  { %1554 = vmatmul.mubr.msk.f32.gmra.mxu0 %vm83_vm0, %v30_v24 }
  0x1f   :  { %1556 = vmatprep.mubr.msk.f32.mxu0 %vm83_vm0, %v31_v26 }
  0x20   :  { %1602 = vmatmul.mubr.msk.f32.gmra.mxu1 %vm83_vm0, %v62_v33 }
  0x21   :  { %1604 = vmatprep.mubr.msk.f32.mxu1 %vm83_vm0, %v63_v35 }
  0x22   :  { %1557 = vmatmul.mubr.msk.f32.gmra.mxu0 %vm83_vm0, %v32_v28 }
  0x23   :  { %1559 = vmatprep.mubr.msk.f32.mxu0 %vm83_vm0, %v33_v30 }
  0x24   :  { %1605 = vmatmul.mubr.msk.f32.gmra.mxu1 %vm83_vm0, %v64_v37 }
  0x25   :  { %1607 = vmatprep.mubr.msk.f32.mxu1 %vm83_vm0, %v65_v39 }
  0x26   :  { %1560 = vmatmul.mubr.msk.f32.gmra.mxu0 %vm83_vm0, %v34_v32 }
  0x27   :  { %1562 = vmatprep.mubr.msk.f32.mxu0 %vm83_vm0, %v35_v34 }
  0x28   :  { %1608 = vmatmul.mubr.msk.f32.gmra.mxu1 %vm83_vm0, %v66_v41 }
  0x29   :  { %1610 = vmatprep.mubr.msk.f32.mxu1 %vm83_vm0, %v67_v43 }
  0x2a   :  { %1563 = vmatmul.mubr.msk.f32.gmra.mxu0 %vm83_vm0, %v36_v36 }
  0x2b   :  { %1565 = vmatprep.mubr.msk.f32.mxu0 %vm83_vm0, %v37_v38 }
  0x2c   :  { %1611 = vmatmul.mubr.msk.f32.gmra.mxu1 %vm83_vm0, %v68_v45 }
  0x2d   :  { %1613 = vmatprep.mubr.msk.f32.mxu1 %vm83_vm0, %v69_v47 }
  0x2e   :  { %1566 = vmatmul.mubr.msk.f32.gmra.mxu0 %vm83_vm0, %v38_v40 }
  0x2f   :  { %1568 = vmatprep.mubr.msk.f32.mxu0 %vm83_vm0, %v39_v42 }
  0x30   :  { %1614 = vmatmul.mubr.msk.f32.gmra.mxu1 %vm83_vm0, %v70_v49 }
  0x31   :  { %1616 = vmatprep.mubr.msk.f32.mxu1 %vm83_vm0, %v71_v51 }
  0x32   :  { %1569 = vmatmul.mubr.msk.f32.gmra.mxu0 %vm83_vm0, %v40_v44 }
  0x33   :  { %1571 = vmatprep.mubr.msk.f32.mxu0 %vm83_vm0, %v41_v46 }
  0x34   :  { %1617 = vmatmul.mubr.msk.f32.gmra.mxu1 %vm83_vm0, %v72_v53 }
  0x35   :  { %1619 = vmatprep.mubr.msk.f32.mxu1 %vm83_vm0, %v73_v55 }
  0x36   :  { %1572 = vmatmul.mubr.msk.f32.gmra.mxu0 %vm83_vm0, %v42_v48 }
  0x37   :  { %1574 = vmatprep.mubr.msk.f32.mxu0 %vm83_vm0, %v43_v50 }
  0x38   :  { %1620 = vmatmul.mubr.msk.f32.gmra.mxu1 %vm83_vm0, %v74_v57 }
  0x39   :  { %1622 = vmatprep.mubr.msk.f32.mxu1 %vm83_vm0, %v75_v59 }
  0x3a   :  { %1575 = vmatmul.mubr.msk.f32.gmra.mxu0 %vm83_vm0, %v44_v52 }
  0x3b   :  { %1577 = vmatprep.mubr.msk.f32.mxu0 %vm83_vm0, %v45_v54 }
  0x3c   :  { %1623 = vmatmul.mubr.msk.f32.gmra.mxu1 %vm83_vm0, %v76_v61 }
  0x3d   :  { %1625 = vmatprep.mubr.msk.f32.mxu1 %vm83_vm0, %v77_v62 }
  0x3e   :  { %1578 = vmatmul.mubr.msk.f32.gmra.mxu0 %vm83_vm0, %v46_v56 }
  0x3f   :  { %1580 = vmatprep.mubr.msk.f32.mxu0 %vm83_vm0, %v47_v58 }
  0x40   :  { %1626 = vmatmul.mubr.msk.f32.gmra.mxu1 %vm83_vm0, %v78_v63 }
  0x41   :  { %1628 = vmatprep.mubr.msk.f32.mxu1 %vm83_vm0, %v79_v0 }
  0x42   :  { %1581 = vmatmul.mubr.msk.f32.gmra.mxu0 %vm83_vm0, %v48_v60 }
  0x44   :  { %1629 = vmatmul.mubr.msk.f32.gmra.mxu1 %vm83_vm0, %v80_v1 }
  0xc6   :  { %v1924_v2 = vpop.f32.mrf.mxu0 }
  0xc7   :  { %v732_v6 = vmul.f32 %v1924_v2, %v1924_v2 }
  0xc8   :  { %v1926_v3 = vpop.f32.mrf.mxu0  ;;  %v1943_v13 = vpop.f32.mrf.mxu1 }
  0xc9   :  { %v731_v4 = vmul.f32 %v1926_v3, %v1926_v3  ;;  %v661_v7 = vadd.f32 %v1924_v2, %v1926_v3 }
  0xca   :  { %v1930_v5 = vpop.f32.mrf.mxu0  ;;  %v1950_v18 = vpop.f32.mrf.mxu1 }
  0xcb   :  { %v795_v9 = vadd.f32 %v732_v6, %v731_v4  ;;  %v734_v14 = vmul.f32 %v1930_v5, %v1930_v5 }
  0xcc   :  { %v1936_v8 = vpop.f32.mrf.mxu0  ;;  %v1957_v23 = vpop.f32.mrf.mxu1 }
  0xcd   :  { %v662_v10 = vadd.f32 %v661_v7, %v1936_v8  ;;  %v733_v11 = vmul.f32 %v1936_v8, %v1936_v8  ;;  %4031 = vst [vmem:[#allocation2_spill] sm:$0xff] %v1957_v23 }
  0xce   :  { %v1941_v12 = vpop.f32.mrf.mxu0  ;;  %v1964_v28 = vpop.f32.mrf.mxu1 }
  0xcf   :  { %v796_v15 = vadd.f32 %v795_v9, %v733_v11  ;;  %v663_v16 = vadd.f32 %v1930_v5, %v662_v10  ;;  %v736_v24 = vmul.f32 %v1941_v12, %v1941_v12 }
  0xd0   :  { %v1948_v17 = vpop.f32.mrf.mxu0  ;;  %v1976_v37 = vpop.f32.mrf.mxu1 }
  0xd1   :  { %v664_v19 = vadd.f32 %v663_v16, %v1948_v17  ;;  %v735_v20 = vmul.f32 %v1948_v17, %v1948_v17  ;;  %v797_v21 = vadd.f32 %v796_v15, %v734_v14  ;;  %4032 = vst [vmem:[#allocation3_spill] sm:$0xff] %v1976_v37 }
  0xd2   :  { %v1955_v22 = vpop.f32.mrf.mxu0  ;;  %v1988_v46 = vpop.f32.mrf.mxu1 }
  0xd3   :  { %v798_v25 = vadd.f32 %v797_v21, %v735_v20  ;;  %v665_v26 = vadd.f32 %v1941_v12, %v664_v19  ;;  %v738_v33 = vmul.f32 %v1955_v22, %v1955_v22 }
  0xd4   :  { %v1962_v27 = vpop.f32.mrf.mxu0  ;;  %v2000_v55 = vpop.f32.mrf.mxu1 }
  0xd5   :  { %v666_v29 = vadd.f32 %v665_v26, %v1962_v27  ;;  %v737_v30 = vmul.f32 %v1962_v27, %v1962_v27  ;;  %v799_v31 = vadd.f32 %v798_v25, %v736_v24  ;;  %4033 = vst [vmem:[#allocation4_spill] sm:$0xff] %v2000_v55 }
  0xd6   :  { %v1969_v32 = vpop.f32.mrf.mxu0  ;;  %v2012_v0 = vpop.f32.mrf.mxu1 }
  0xd7   :  { %v800_v34 = vadd.f32 %v799_v31, %v737_v30  ;;  %v667_v35 = vadd.f32 %v1955_v22, %v666_v29  ;;  %v740_v42 = vmul.f32 %v1969_v32, %v1969_v32 }
  0xd8   :  { %v1974_v36 = vpop.f32.mrf.mxu0  ;;  %v2024_v15 = vpop.f32.mrf.mxu1 }
  0xd9   :  { %v668_v38 = vadd.f32 %v667_v35, %v1974_v36  ;;  %v739_v39 = vmul.f32 %v1974_v36, %v1974_v36  ;;  %v801_v40 = vadd.f32 %v800_v34, %v738_v33  ;;  %4034 = vst [vmem:[#allocation5_spill] sm:$0xff] %v2024_v15 }
  0xda   :  { %v1981_v41 = vpop.f32.mrf.mxu0  ;;  %v2036_v30 = vpop.f32.mrf.mxu1 }
  0xdb   :  { %v802_v43 = vadd.f32 %v801_v40, %v739_v39  ;;  %v669_v44 = vadd.f32 %v1969_v32, %v668_v38  ;;  %v742_v51 = vmul.f32 %v1981_v41, %v1981_v41 }
  0xdc   :  { %v1986_v45 = vpop.f32.mrf.mxu0 }
  0xdd   :  { %v670_v47 = vadd.f32 %v669_v44, %v1986_v45  ;;  %v741_v48 = vmul.f32 %v1986_v45, %v1986_v45  ;;  %v803_v49 = vadd.f32 %v802_v43, %v740_v42  ;;  %v2048_v43 = vpop.f32.mrf.mxu1 }
  0xde   :  { %v1993_v50 = vpop.f32.mrf.mxu0  ;;  %4035 = vst [vmem:[#allocation6_spill] sm:$0xff] %v2048_v43 }
  0xdf   :  { %v804_v52 = vadd.f32 %v803_v49, %v741_v48  ;;  %v671_v53 = vadd.f32 %v1981_v41, %v670_v47  ;;  %v744_v60 = vmul.f32 %v1993_v50, %v1993_v50 }
  0xe0   :  { %v1998_v54 = vpop.f32.mrf.mxu0 }
  0xe1   :  { %v672_v56 = vadd.f32 %v671_v53, %v1998_v54  ;;  %v743_v57 = vmul.f32 %v1998_v54, %v1998_v54  ;;  %v805_v58 = vadd.f32 %v804_v52, %v742_v51 }
  0xe2   :  { %v2005_v59 = vpop.f32.mrf.mxu0 }
  0xe3   :  { %v806_v61 = vadd.f32 %v805_v58, %v743_v57  ;;  %v673_v62 = vadd.f32 %v1993_v50, %v672_v56  ;;  %v746_v9 = vmul.f32 %v2005_v59, %v2005_v59  ;;  %v2060_v57 = vpop.f32.mrf.mxu1 }
  0xe4   :  { %v2010_v63 = vpop.f32.mrf.mxu0 }
  0xe5   :  { %v674_v1 = vadd.f32 %v673_v62, %v2010_v63  ;;  %v745_v4 = vmul.f32 %v2010_v63, %v2010_v63  ;;  %v807_v6 = vadd.f32 %v806_v61, %v744_v60 }
  0xe6   :  { %v2017_v7 = vpop.f32.mrf.mxu0 }
  0xe7   :  { %v808_v10 = vadd.f32 %v807_v6, %v745_v4  ;;  %v675_v11 = vadd.f32 %v2005_v59, %v674_v1  ;;  %v748_v24 = vmul.f32 %v2017_v7, %v2017_v7 }
  0xe8   :  { %v2022_v14 = vpop.f32.mrf.mxu0 }
  0xe9   :  { %v676_v16 = vadd.f32 %v675_v11, %v2022_v14  ;;  %v747_v19 = vmul.f32 %v2022_v14, %v2022_v14  ;;  %v809_v20 = vadd.f32 %v808_v10, %v746_v9  ;;  %v2072_v10 = vpop.f32.mrf.mxu1 }
  0xea   :  { %v2029_v21 = vpop.f32.mrf.mxu0  ;;  %4036 = vst [vmem:[#allocation7_spill] sm:$0xff] %v2072_v10 }
  0xeb   :  { %v810_v25 = vadd.f32 %v809_v20, %v747_v19  ;;  %v677_v26 = vadd.f32 %v2017_v7, %v676_v16  ;;  %v750_v38 = vmul.f32 %v2029_v21, %v2029_v21 }
  0xec   :  { %v2034_v29 = vpop.f32.mrf.mxu0 }
  0xed   :  { %v678_v31 = vadd.f32 %v677_v26, %v2034_v29  ;;  %v749_v33 = vmul.f32 %v2034_v29, %v2034_v29  ;;  %v811_v34 = vadd.f32 %v810_v25, %v748_v24 }
  0xee   :  { %v2041_v35 = vpop.f32.mrf.mxu0 }
  0xef   :  { %v812_v39 = vadd.f32 %v811_v34, %v749_v33  ;;  %v679_v40 = vadd.f32 %v2029_v21, %v678_v31  ;;  %v752_v51 = vmul.f32 %v2041_v35, %v2041_v35  ;;  %v2084_v33 = vpop.f32.mrf.mxu1 }
  0xf0   :  { %v2046_v42 = vpop.f32.mrf.mxu0 }
  0xf1   :  { %v680_v44 = vadd.f32 %v679_v40, %v2046_v42  ;;  %v751_v47 = vmul.f32 %v2046_v42, %v2046_v42  ;;  %v813_v48 = vadd.f32 %v812_v39, %v750_v38 }
  0xf2   :  { %v2053_v49 = vpop.f32.mrf.mxu0 }
  0xf3   :  { %v814_v52 = vadd.f32 %v813_v48, %v751_v47  ;;  %v681_v53 = vadd.f32 %v2041_v35, %v680_v44  ;;  %v754_v1 = vmul.f32 %v2053_v49, %v2053_v49 }
  0xf4   :  { %v2058_v56 = vpop.f32.mrf.mxu0 }
  0xf5   :  { %v682_v58 = vadd.f32 %v681_v53, %v2058_v56  ;;  %v753_v60 = vmul.f32 %v2058_v56, %v2058_v56  ;;  %v815_v61 = vadd.f32 %v814_v52, %v752_v51  ;;  %v2096_v52 = vpop.f32.mrf.mxu1 }
  0xf6   :  { %v2065_v62 = vpop.f32.mrf.mxu0  ;;  %4037 = vst [vmem:[#allocation8_spill] sm:$0xff] %v2096_v52 }
  0xf7   :  { %v816_v4 = vadd.f32 %v815_v61, %v753_v60  ;;  %v683_v6 = vadd.f32 %v2053_v49, %v682_v58  ;;  %v756_v24 = vmul.f32 %v2065_v62, %v2065_v62 }
  0xf8   :  { %v2070_v9 = vpop.f32.mrf.mxu0 }
  0xf9   :  { %v684_v11 = vadd.f32 %v683_v6, %v2070_v9  ;;  %v755_v16 = vmul.f32 %v2070_v9, %v2070_v9  ;;  %v817_v19 = vadd.f32 %v816_v4, %v754_v1 }
  0xfa   :  { %v2077_v20 = vpop.f32.mrf.mxu0 }
  0xfb   :  { %v818_v25 = vadd.f32 %v817_v19, %v755_v16  ;;  %v685_v26 = vadd.f32 %v2065_v62, %v684_v11  ;;  %v758_v44 = vmul.f32 %v2077_v20, %v2077_v20  ;;  %v2108_v16 = vpop.f32.mrf.mxu1 }
  0xfc   :  { %v2082_v31 = vpop.f32.mrf.mxu0 }
  0xfd   :  { %v686_v34 = vadd.f32 %v685_v26, %v2082_v31  ;;  %v757_v38 = vmul.f32 %v2082_v31, %v2082_v31  ;;  %v819_v39 = vadd.f32 %v818_v25, %v756_v24 }
  0xfe   :  { %v2089_v40 = vpop.f32.mrf.mxu0 }
  0xff   :  { %v820_v47 = vadd.f32 %v819_v39, %v757_v38  ;;  %v687_v48 = vadd.f32 %v2077_v20, %v686_v34  ;;  %v760_v1 = vmul.f32 %v2089_v40, %v2089_v40  ;;  %v2116_v39 = vpop.f32.mrf.mxu1 }
 0x100   :  { %v2094_v51 = vpop.f32.mrf.mxu0  ;;  %4038 = vst [vmem:[#allocation9_spill] sm:$0xff] %v2116_v39 }
 0x101   :  { %v688_v53 = vadd.f32 %v687_v48, %v2094_v51  ;;  %v759_v58 = vmul.f32 %v2094_v51, %v2094_v51  ;;  %v821_v60 = vadd.f32 %v820_v47, %v758_v44  ;;  %v763_v48 = vmul.f32 %v1950_v18, %v1950_v18 }
 0x102   :  { %v2101_v61 = vpop.f32.mrf.mxu0 }
 0x103   :  { %v822_v4 = vadd.f32 %v821_v60, %v759_v58  ;;  %v689_v6 = vadd.f32 %v2089_v40, %v688_v53  ;;  %v762_v26 = vmul.f32 %v2101_v61, %v2101_v61  ;;  %v764_v53 = vmul.f32 %v1943_v13, %v1943_v13 }
 0x104   :  { %v2106_v11 = vpop.f32.mrf.mxu0 }
 0x105   :  { %v690_v19 = vadd.f32 %v689_v6, %v2106_v11  ;;  %v761_v24 = vmul.f32 %v2106_v11, %v2106_v11  ;;  %v823_v25 = vadd.f32 %v822_v4, %v760_v1  ;;  %v2124_v1 = vpop.f32.mrf.mxu1  ;;  %v765_v6 = vmul.f32 %v1964_v28, %v1964_v28 }
 0x106   :  { %4039 = vst [vmem:[#allocation10_spill] sm:$0xff] %v2124_v1 }
 0x107   :  { %v691_v34 = vadd.f32 %v2101_v61, %v690_v19  ;;  %v824_v38 = vadd.f32 %v823_v25, %v761_v24  ;;  %v766_v24 = vmul.f32 %v1957_v23, %v1957_v23 }
 0x109   :  { %v825_v44 = vadd.f32 %v824_v38, %v762_v26  ;;  %v692_v47 = vadd.f32 %v691_v34, %v1950_v18  ;;  %v2132_v34 = vpop.f32.mrf.mxu1 }
 0x10a   :  { %4040 = vst [vmem:[#allocation11_spill] sm:$0xff] %v2132_v34 }
 0x10b   :  { %v826_v58 = vadd.f32 %v825_v44, %v763_v48  ;;  %v693_v60 = vadd.f32 %v1943_v13, %v692_v47  ;;  %v767_v44 = vmul.f32 %v1988_v46, %v1988_v46  ;;  %v768_v48 = vmul.f32 %v1976_v37, %v1976_v37 }
 0x10d   :  { %v694_v4 = vadd.f32 %v693_v60, %v1964_v28  ;;  %v827_v19 = vadd.f32 %v826_v58, %v764_v53  ;;  %v2140_v58 = vpop.f32.mrf.mxu1 }
 0x10e   :  { %4041 = vst [vmem:[#allocation12_spill] sm:$0xff] %v2140_v58 }
 0x10f   :  { %v828_v25 = vadd.f32 %v827_v19, %v765_v6  ;;  %v695_v26 = vadd.f32 %v1957_v23, %v694_v4  ;;  %v769_v4 = vmul.f32 %v2012_v0, %v2012_v0 }
 0x111   :  { %v696_v38 = vadd.f32 %v695_v26, %v1988_v46  ;;  %v829_v47 = vadd.f32 %v828_v25, %v766_v24  ;;  %v770_v26 = vmul.f32 %v2000_v55, %v2000_v55  ;;  %v2148_v25 = vpop.f32.mrf.mxu1 }
 0x112   :  { %4042 = vst [vmem:[#allocation13_spill] sm:$0xff] %v2148_v25 }
 0x113   :  { %v830_v60 = vadd.f32 %v829_v47, %v767_v44  ;;  %v697_v53 = vadd.f32 %v1976_v37, %v696_v38  ;;  %v771_v38 = vmul.f32 %v2036_v30, %v2036_v30 }
 0x115   :  { %v698_v6 = vadd.f32 %v697_v53, %v2012_v0  ;;  %v831_v19 = vadd.f32 %v830_v60, %v768_v48  ;;  %v772_v53 = vmul.f32 %v2024_v15, %v2024_v15  ;;  %v2156_v60 = vpop.f32.mrf.mxu1 }
 0x116   :  { %4043 = vst [vmem:[#allocation14_spill] sm:$0xff] %v2156_v60 }
 0x117   :  { %v832_v23 = vadd.f32 %v831_v19, %v769_v4  ;;  %v699_v24 = vadd.f32 %v2000_v55, %v698_v6  ;;  %v773_v6 = vmul.f32 %v2060_v57, %v2060_v57 }
 0x119   :  { %v700_v44 = vadd.f32 %v699_v24, %v2036_v30  ;;  %v833_v47 = vadd.f32 %v832_v23, %v770_v26  ;;  %v774_v24 = vmul.f32 %v2048_v43, %v2048_v43  ;;  %v2164_v26 = vpop.f32.mrf.mxu1 }
 0x11a   :  { %4044 = vst [vmem:[#allocation15_spill] sm:$0xff] %v2164_v26 }
 0x11b   :  { %v834_v37 = vadd.f32 %v833_v47, %v771_v38  ;;  %v701_v48 = vadd.f32 %v2024_v15, %v700_v44  ;;  %v775_v44 = vmul.f32 %v2084_v33, %v2084_v33 }
 0x11d   :  { %v702_v4 = vadd.f32 %v701_v48, %v2060_v57  ;;  %v835_v19 = vadd.f32 %v834_v37, %v772_v53  ;;  %v776_v48 = vmul.f32 %v2072_v10, %v2072_v10  ;;  %v2172_v53 = vpop.f32.mrf.mxu1 }
 0x11e   :  { %4045 = vst [vmem:[#allocation16_spill] sm:$0xff] %v2172_v53 }
 0x11f   :  { %v836_v55 = vadd.f32 %v835_v19, %v773_v6  ;;  %v703_v23 = vadd.f32 %v2048_v43, %v702_v4  ;;  %v777_v4 = vmul.f32 %v2108_v16, %v2108_v16 }
 0x121   :  { %v704_v38 = vadd.f32 %v703_v23, %v2084_v33  ;;  %v837_v47 = vadd.f32 %v836_v55, %v774_v24  ;;  %v778_v23 = vmul.f32 %v2096_v52, %v2096_v52  ;;  %v2180_v24 = vpop.f32.mrf.mxu1 }
 0x122   :  { %4046 = vst [vmem:[#allocation17_spill] sm:$0xff] %v2180_v24 }
 0x123   :  { %v838_v15 = vadd.f32 %v837_v47, %v775_v44  ;;  %v705_v37 = vadd.f32 %v2072_v10, %v704_v38  ;;  %v779_v38 = vmul.f32 %v2124_v1, %v2124_v1 }
 0x125   :  { %v706_v6 = vadd.f32 %v705_v37, %v2108_v16  ;;  %v839_v19 = vadd.f32 %v838_v15, %v776_v48  ;;  %v780_v37 = vmul.f32 %v2116_v39, %v2116_v39  ;;  %v2188_v48 = vpop.f32.mrf.mxu1 }
 0x126   :  { %4047 = vst [vmem:[#allocation18_spill] sm:$0xff] %v2188_v48 }
 0x127   :  { %v840_v43 = vadd.f32 %v839_v19, %v777_v4  ;;  %v707_v55 = vadd.f32 %v2096_v52, %v706_v6  ;;  %v781_v6 = vmul.f32 %v2140_v58, %v2140_v58 }
 0x129   :  { %v708_v44 = vadd.f32 %v707_v55, %v2124_v1  ;;  %v841_v47 = vadd.f32 %v840_v43, %v778_v23  ;;  %v782_v55 = vmul.f32 %v2132_v34, %v2132_v34  ;;  %v2196_v23 = vpop.f32.mrf.mxu1 }
 0x12a   :  { %4048 = vst [vmem:[#allocation19_spill] sm:$0xff] %v2196_v23 }
 0x12b   :  { %v842_v10 = vadd.f32 %v841_v47, %v779_v38  ;;  %v709_v15 = vadd.f32 %v2116_v39, %v708_v44  ;;  %v783_v44 = vmul.f32 %v2156_v60, %v2156_v60 }
 0x12d   :  { %v710_v4 = vadd.f32 %v709_v15, %v2140_v58  ;;  %v843_v19 = vadd.f32 %v842_v10, %v780_v37  ;;  %v784_v15 = vmul.f32 %v2148_v25, %v2148_v25  ;;  %v2204_v37 = vpop.f32.mrf.mxu1  ;;  %v4068_v58 = vld [vmem:[#allocation17_spill] sm:$0xff] }
 0x12e   :  { %4049 = vst [vmem:[#allocation20_spill] sm:$0xff] %v2204_v37 }
 0x12f   :  { %v844_v52 = vadd.f32 %v843_v19, %v781_v6  ;;  %v711_v43 = vadd.f32 %v2132_v34, %v710_v4  ;;  %v785_v4 = vmul.f32 %v2172_v53, %v2172_v53 }
 0x131   :  { %v712_v38 = vadd.f32 %v711_v43, %v2156_v60  ;;  %v845_v47 = vadd.f32 %v844_v52, %v782_v55  ;;  %v786_v43 = vmul.f32 %v2164_v26, %v2164_v26  ;;  %v2212_v55 = vpop.f32.mrf.mxu1 }
 0x132   :  { %4050 = vst [vmem:[#allocation21_spill] sm:$0xff] %v2212_v55 }
 0x133   :  { %v846_v39 = vadd.f32 %v845_v47, %v783_v44  ;;  %v713_v10 = vadd.f32 %v2148_v25, %v712_v38  ;;  %v787_v38 = vmul.f32 %v2188_v48, %v2188_v48 }
 0x135   :  { %v714_v6 = vadd.f32 %v713_v10, %v2172_v53  ;;  %v847_v19 = vadd.f32 %v846_v39, %v784_v15  ;;  %v788_v10 = vmul.f32 %v2180_v24, %v2180_v24  ;;  %v2220_v15 = vpop.f32.mrf.mxu1 }
 0x136   :  { %4051 = vst [vmem:[#allocation22_spill] sm:$0xff] %v2220_v15 }
 0x137   :  { %v848_v34 = vadd.f32 %v847_v19, %v785_v4  ;;  %v715_v52 = vadd.f32 %v2164_v26, %v714_v6  ;;  %v789_v6 = vmul.f32 %v2204_v37, %v2204_v37 }
 0x139   :  { %v716_v44 = vadd.f32 %v715_v52, %v2188_v48  ;;  %v849_v47 = vadd.f32 %v848_v34, %v786_v43  ;;  %v790_v52 = vmul.f32 %v2196_v23, %v2196_v23  ;;  %v2228_v43 = vpop.f32.mrf.mxu1 }
 0x13a   :  { %4052 = vst [vmem:[#allocation23_spill] sm:$0xff] %v2228_v43 }
 0x13b   :  { %v850_v25 = vadd.f32 %v849_v47, %v787_v38  ;;  %v717_v39 = vadd.f32 %v2180_v24, %v716_v44  ;;  %v791_v44 = vmul.f32 %v2220_v15, %v2220_v15 }
 0x13d   :  { %v718_v4 = vadd.f32 %v717_v39, %v2204_v37  ;;  %v851_v19 = vadd.f32 %v850_v25, %v788_v10  ;;  %v792_v39 = vmul.f32 %v2212_v55, %v2212_v55  ;;  %v2236_v10 = vpop.f32.mrf.mxu1 }
 0x13e   :  { %4053 = vst [vmem:[#allocation24_spill] sm:$0xff] %v2236_v10 }
 0x13f   :  { %v852_v26 = vadd.f32 %v851_v19, %v789_v6  ;;  %v719_v34 = vadd.f32 %v2196_v23, %v718_v4  ;;  %v793_v4 = vmul.f32 %v2236_v10, %v2236_v10 }
 0x141   :  { %v720_v38 = vadd.f32 %v719_v34, %v2220_v15  ;;  %v853_v47 = vadd.f32 %v852_v26, %v790_v52  ;;  %v794_v26 = vmul.f32 %v2228_v43, %v2228_v43 }
 0x143   :  { %v854_v24 = vadd.f32 %v853_v47, %v791_v44  ;;  %v721_v25 = vadd.f32 %v2212_v55, %v720_v38 }
 0x145   :  { %v722_v6 = vadd.f32 %v721_v25, %v2236_v10  ;;  %v855_v19 = vadd.f32 %v854_v24, %v792_v39 }
 0x147   :  { %v723_v34 = vadd.f32 %v2228_v43, %v722_v6  ;;  %v856_v23 = vadd.f32 %v855_v19, %v793_v4 }
 0x149   :  { %v724_v52 = vrot.slane %v723_v34, 4  ;;  %v857_v15 = vadd.f32 %v856_v23, %v794_v26  ;;  %v4074_v26 = vld [vmem:[#allocation23_spill] sm:$0xff] }
 0x14b   :  { %v725_v37 = vadd.f32 %v724_v52, %v723_v34  ;;  %v858_v44 = vrot.slane %v857_v15, 4  ;;  %v4069_v34 = vld [vmem:[#allocation20_spill] sm:$0xff]  ;;  %v4070_v52 = vld [vmem:[#allocation19_spill] sm:$0xff] }
 0x14d   :  { %v726_v47 = vrot.slane %v725_v37, 2  ;;  %v859_v38 = vadd.f32 %v858_v44, %v857_v15  ;;  %v4073_v15 = vld [vmem:[#allocation24_spill] sm:$0xff] }
 0x14f   :  { %v727_v55 = vadd.f32 %v726_v47, %v725_v37  ;;  %v860_v48 = vrot.slane %v859_v38, 2 }
 0x151   :  { %v728_v53 = vrot.slane %v727_v55, 1  ;;  %v861_v25 = vadd.f32 %v860_v48, %v859_v38  ;;  %v4057_v38 = vld [vmem:[#allocation5_spill] sm:$0xff] }
 0x153   :  { %v729_v24 = vadd.f32 %v728_v53, %v727_v55  ;;  %v862_v39 = vrot.slane %v861_v25, 1 }
 0x155   :  { %v2244_v60 = vmul.f32 0.001953125, %v729_v24  ;;  %v863_v10 = vadd.f32 %v862_v39, %v861_v25  ;;  %v4054_v25 = vld [vmem:[#allocation2_spill] sm:$0xff]  ;;  %v4055_v39 = vld [vmem:[#allocation3_spill] sm:$0xff] }
 0x156   :  { %v4058_v24 = vld [vmem:[#allocation6_spill] sm:$0xff] }
 0x157   :  { %v864_v6 = vmul.f32 0.001953125, %v863_v10  ;;  %v865_v19 = vmul.f32 %v2244_v60, %v2244_v60  ;;  %v4071_v10 = vld [vmem:[#allocation22_spill] sm:$0xff]  ;;  %v4075_v1 = vsub.f32 %v1926_v3, %v2244_v60  ;;  %v4076_v53 = vsub.f32 %v1924_v2, %v2244_v60 }
 0x158   :  { %v4077_v37 = vsub.f32 %v1936_v8, %v2244_v60  ;;  %v4078_v47 = vsub.f32 %v1930_v5, %v2244_v60 }
 0x159   :  { %v866_v4 = vsub.f32 %v864_v6, %v865_v19  ;;  %v4056_v19 = vld [vmem:[#allocation4_spill] sm:$0xff]  ;;  %v4059_v6 = vld [vmem:[#allocation7_spill] sm:$0xff] }
 0x15b   :  { %v931_v43 = vadd.f32 1e-05, %v866_v4  ;;  %v4060_v4 = vld [vmem:[#allocation8_spill] sm:$0xff] }
 0x15d   :  { %1635 = vrsqrt.f32 %v931_v43  ;;  %v4072_v43 = vld [vmem:[#allocation21_spill] sm:$0xff] }
 0x16a   :  { %v2350_v55 = vpop.eup %1635 }
 0x16b   :  { %v2382_v44 = vmul.f32 %v2350_v55, %v4075_v1  ;;  %v2388_v48 = vmul.f32 %v2350_v55, %v4076_v53  ;;  %v2394_v23 = vmul.f32 %v2350_v55, %v4077_v37  ;;  %v2400_v3 = vmul.f32 %v2350_v55, %v4078_v47 }
 0x16c   :  { %v4079_v1 = vsub.f32 %v1948_v17, %v2244_v60  ;;  %v4080_v53 = vsub.f32 %v1941_v12, %v2244_v60  ;;  %v4081_v37 = vsub.f32 %v1962_v27, %v2244_v60  ;;  %v4082_v47 = vsub.f32 %v1955_v22, %v2244_v60 }
 0x16e   :  { %v2406_v2 = vmul.f32 %v2350_v55, %v4079_v1  ;;  %v2412_v8 = vmul.f32 %v2350_v55, %v4080_v53  ;;  %v2418_v5 = vmul.f32 %v2350_v55, %v4081_v37  ;;  %v2424_v17 = vmul.f32 %v2350_v55, %v4082_v47 }
 0x16f   :  { %v4083_v1 = vsub.f32 %v1974_v36, %v2244_v60  ;;  %v4084_v53 = vsub.f32 %v1969_v32, %v2244_v60  ;;  %v4085_v37 = vsub.f32 %v1986_v45, %v2244_v60  ;;  %v4086_v47 = vsub.f32 %v1981_v41, %v2244_v60 }
 0x171   :  { %v2430_v12 = vmul.f32 %v2350_v55, %v4083_v1  ;;  %v2436_v27 = vmul.f32 %v2350_v55, %v4084_v53  ;;  %v2442_v22 = vmul.f32 %v2350_v55, %v4085_v37  ;;  %v2448_v36 = vmul.f32 %v2350_v55, %v4086_v47 }
 0x172   :  { %v4087_v1 = vsub.f32 %v1998_v54, %v2244_v60  ;;  %v4088_v53 = vsub.f32 %v1993_v50, %v2244_v60  ;;  %v4089_v37 = vsub.f32 %v2010_v63, %v2244_v60  ;;  %v4090_v47 = vsub.f32 %v2005_v59, %v2244_v60 }
 0x174   :  { %v2454_v32 = vmul.f32 %v2350_v55, %v4087_v1  ;;  %v2460_v45 = vmul.f32 %v2350_v55, %v4088_v53  ;;  %v2466_v41 = vmul.f32 %v2350_v55, %v4089_v37  ;;  %v2472_v54 = vmul.f32 %v2350_v55, %v4090_v47 }
 0x175   :  { %v4091_v1 = vsub.f32 %v2022_v14, %v2244_v60  ;;  %v4092_v53 = vsub.f32 %v2017_v7, %v2244_v60  ;;  %v4093_v37 = vsub.f32 %v2034_v29, %v2244_v60  ;;  %v4094_v47 = vsub.f32 %v2029_v21, %v2244_v60 }
 0x177   :  { %v2478_v50 = vmul.f32 %v2350_v55, %v4091_v1  ;;  %v2484_v63 = vmul.f32 %v2350_v55, %v4092_v53  ;;  %v2490_v59 = vmul.f32 %v2350_v55, %v4093_v37  ;;  %v2496_v14 = vmul.f32 %v2350_v55, %v4094_v47 }
 0x178   :  { %v4095_v1 = vsub.f32 %v2046_v42, %v2244_v60  ;;  %v4096_v53 = vsub.f32 %v2041_v35, %v2244_v60  ;;  %v4097_v37 = vsub.f32 %v2058_v56, %v2244_v60  ;;  %v4098_v47 = vsub.f32 %v2053_v49, %v2244_v60 }
 0x17a   :  { %v2502_v7 = vmul.f32 %v2350_v55, %v4095_v1  ;;  %v2508_v29 = vmul.f32 %v2350_v55, %v4096_v53  ;;  %v2514_v21 = vmul.f32 %v2350_v55, %v4097_v37  ;;  %v2520_v42 = vmul.f32 %v2350_v55, %v4098_v47 }
 0x17b   :  { %v4099_v1 = vsub.f32 %v2070_v9, %v2244_v60  ;;  %v4100_v53 = vsub.f32 %v2065_v62, %v2244_v60  ;;  %v4101_v37 = vsub.f32 %v2082_v31, %v2244_v60  ;;  %v4102_v47 = vsub.f32 %v2077_v20, %v2244_v60 }
 0x17d   :  { %v2526_v35 = vmul.f32 %v2350_v55, %v4099_v1  ;;  %v2532_v56 = vmul.f32 %v2350_v55, %v4100_v53  ;;  %v2538_v49 = vmul.f32 %v2350_v55, %v4101_v37  ;;  %v2544_v9 = vmul.f32 %v2350_v55, %v4102_v47 }
 0x17e   :  { %v4103_v1 = vsub.f32 %v2094_v51, %v2244_v60  ;;  %v4104_v53 = vsub.f32 %v2089_v40, %v2244_v60  ;;  %v4105_v37 = vsub.f32 %v2106_v11, %v2244_v60  ;;  %v4106_v47 = vsub.f32 %v2101_v61, %v2244_v60 }
 0x180   :  { %v2550_v62 = vmul.f32 %v2350_v55, %v4103_v1  ;;  %v2556_v31 = vmul.f32 %v2350_v55, %v4104_v53  ;;  %v2562_v20 = vmul.f32 %v2350_v55, %v4105_v37  ;;  %v2568_v51 = vmul.f32 %v2350_v55, %v4106_v47 }
 0x181   :  { %v4107_v1 = vsub.f32 %v1950_v18, %v2244_v60  ;;  %v4108_v53 = vsub.f32 %v1943_v13, %v2244_v60  ;;  %v4109_v37 = vsub.f32 %v1964_v28, %v2244_v60  ;;  %v4110_v47 = vsub.f32 %v4054_v25, %v2244_v60 }
 0x183   :  { %v2574_v40 = vmul.f32 %v2350_v55, %v4107_v1  ;;  %v2580_v11 = vmul.f32 %v2350_v55, %v4108_v53  ;;  %v2586_v61 = vmul.f32 %v2350_v55, %v4109_v37  ;;  %v2592_v18 = vmul.f32 %v2350_v55, %v4110_v47 }
 0x184   :  { %v4111_v1 = vsub.f32 %v1988_v46, %v2244_v60  ;;  %v4112_v53 = vsub.f32 %v4055_v39, %v2244_v60  ;;  %v4113_v37 = vsub.f32 %v2012_v0, %v2244_v60  ;;  %v4114_v47 = vsub.f32 %v4056_v19, %v2244_v60 }
 0x186   :  { %v2598_v13 = vmul.f32 %v2350_v55, %v4111_v1  ;;  %v2604_v28 = vmul.f32 %v2350_v55, %v4112_v53  ;;  %v2610_v25 = vmul.f32 %v2350_v55, %v4113_v37  ;;  %v2616_v46 = vmul.f32 %v2350_v55, %v4114_v47 }
 0x187   :  { %v4115_v1 = vsub.f32 %v2036_v30, %v2244_v60  ;;  %v4116_v53 = vsub.f32 %v4057_v38, %v2244_v60  ;;  %v4117_v37 = vsub.f32 %v2060_v57, %v2244_v60  ;;  %v4118_v47 = vsub.f32 %v4058_v24, %v2244_v60 }
 0x189   :  { %v2622_v39 = vmul.f32 %v2350_v55, %v4115_v1  ;;  %v2628_v0 = vmul.f32 %v2350_v55, %v4116_v53  ;;  %v2634_v19 = vmul.f32 %v2350_v55, %v4117_v37  ;;  %v2640_v30 = vmul.f32 %v2350_v55, %v4118_v47 }
 0x18a   :  { %v4119_v1 = vsub.f32 %v2084_v33, %v2244_v60  ;;  %v4121_v53 = vsub.f32 %v4059_v6, %v2244_v60  ;;  %v4123_v37 = vsub.f32 %v2108_v16, %v2244_v60  ;;  %v4125_v47 = vsub.f32 %v4060_v4, %v2244_v60 }
 0x18c   :  { %v2646_v38 = vmul.f32 %v2350_v55, %v4119_v1  ;;  %v2652_v57 = vmul.f32 %v2350_v55, %v4121_v53  ;;  %v2658_v24 = vmul.f32 %v2350_v55, %v4123_v37  ;;  %v2664_v33 = vmul.f32 %v2350_v55, %v4125_v47  ;;  %v4127_v1 = vld [vmem:[#allocation10_spill] sm:$0xff]  ;;  %v4130_v53 = vld [vmem:[#allocation9_spill] sm:$0xff]  ;;  %v4133_v37 = vld [vmem:[#allocation12_spill] sm:$0xff] }
 0x18d   :  { %v4136_v47 = vld [vmem:[#allocation11_spill] sm:$0xff] }
 0x18e   :  { %4120 = vst [vmem:[#allocation2_spill] sm:$0xff] %v2646_v38  ;;  %4122 = vst [vmem:[#allocation3_spill] sm:$0xff] %v2652_v57  ;;  %v4128_v38 = vsub.f32 %v4127_v1, %v2244_v60  ;;  %v4131_v57 = vsub.f32 %v4130_v53, %v2244_v60 }
 0x18f   :  { %4124 = vst [vmem:[#allocation4_spill] sm:$0xff] %v2658_v24  ;;  %4126 = vst [vmem:[#allocation5_spill] sm:$0xff] %v2664_v33  ;;  %v4134_v24 = vsub.f32 %v4133_v37, %v2244_v60  ;;  %v4137_v33 = vsub.f32 %v4136_v47, %v2244_v60 }
 0x190   :  { %v2670_v6 = vmul.f32 %v2350_v55, %v4128_v38  ;;  %v2676_v16 = vmul.f32 %v2350_v55, %v4131_v57  ;;  %v4138_v38 = vld [vmem:[#allocation14_spill] sm:$0xff]  ;;  %v4141_v57 = vld [vmem:[#allocation13_spill] sm:$0xff] }
 0x191   :  { %v2682_v4 = vmul.f32 %v2350_v55, %v4134_v24  ;;  %v2688_v1 = vmul.f32 %v2350_v55, %v4137_v33  ;;  %v4144_v24 = vld [vmem:[#allocation16_spill] sm:$0xff]  ;;  %v2711_v33 = vld [vmem:[%s3960_s2] ss:$0 sm:$0xff] }
 0x192   :  { %4129 = vst [vmem:[#allocation6_spill] sm:$0xff] %v2670_v6  ;;  %4132 = vst [vmem:[#allocation7_spill] sm:$0xff] %v2676_v16  ;;  %v4139_v6 = vsub.f32 %v4138_v38, %v2244_v60  ;;  %v4142_v16 = vsub.f32 %v4141_v57, %v2244_v60  ;;  %v4147_v38 = vld [vmem:[#allocation15_spill] sm:$0xff]  ;;  %v4149_v57 = vld [vmem:[#allocation18_spill] sm:$0xff] }
 0x193   :  { %4135 = vst [vmem:[#allocation8_spill] sm:$0xff] %v2682_v4  ;;  %v4145_v4 = vsub.f32 %v4144_v24, %v2244_v60 }
 0x194   :  { %v2694_v53 = vmul.f32 %v2350_v55, %v4139_v6  ;;  %v2700_v37 = vmul.f32 %v2350_v55, %v4142_v16  ;;  %v4148_v6 = vsub.f32 %v4147_v38, %v2244_v60  ;;  %v4150_v16 = vsub.f32 %v4149_v57, %v2244_v60 }
 0x195   :  { %v2706_v47 = vmul.f32 %v2350_v55, %v4145_v4  ;;  %v4151_v4 = vsub.f32 %v4068_v58, %v2244_v60 }
 0x196   :  { %4140 = vst [vmem:[#allocation17_spill] sm:$0xff] %v2694_v53  ;;  %4143 = vst [vmem:[#allocation20_spill] sm:$0xff] %v2700_v37  ;;  %v2717_v53 = vmul.f32 %v2350_v55, %v4148_v6  ;;  %v2723_v37 = vmul.f32 %v2350_v55, %v4150_v16  ;;  %v4153_v6 = vsub.f32 %v4070_v52, %v2244_v60 }
 0x197   :  { %4146 = vst [vmem:[#allocation19_spill] sm:$0xff] %v2706_v47  ;;  %v2729_v24 = vmul.f32 %v2350_v55, %v4151_v4  ;;  %v4152_v47 = vsub.f32 %v4069_v34, %v2244_v60  ;;  %v4154_v16 = vsub.f32 %v4071_v10, %v2244_v60  ;;  %v4155_v4 = vsub.f32 %v4072_v43, %v2244_v60 }
 0x198   :  { %v2741_v57 = vmul.f32 %v2350_v55, %v4153_v6  ;;  %v4157_v6 = vsub.f32 %v4074_v26, %v2244_v60  ;;  %v2773_v43 = vmul.f32 %v2711_v33, %v2388_v48  ;;  %v2793_v48 = vmul.f32 %v2711_v33, %v2418_v5 }
 0x199   :  { %v2735_v38 = vmul.f32 %v2350_v55, %v4152_v47  ;;  %v2747_v58 = vmul.f32 %v2350_v55, %v4154_v16  ;;  %v2753_v34 = vmul.f32 %v2350_v55, %v4155_v4  ;;  %v4156_v47 = vsub.f32 %v4073_v15, %v2244_v60 }
 0x19a   :  { %v2765_v10 = vmul.f32 %v2350_v55, %v4157_v6  ;;  %v2769_v16 = vmul.f32 %v2711_v33, %v2382_v44  ;;  %v2777_v15 = vmul.f32 %v2711_v33, %v2394_v23  ;;  %v2781_v4 = vmul.f32 %v2711_v33, %v2400_v3  ;;  %v4165_v6 = vld [vmem:[#allocation5_spill] sm:$0xff] }
 0x19b   :  { %v2759_v52 = vmul.f32 %v2350_v55, %v4156_v47  ;;  %v2785_v60 = vmul.f32 %v2711_v33, %v2406_v2  ;;  %v2789_v55 = vmul.f32 %v2711_v33, %v2412_v8  ;;  %v2797_v23 = vmul.f32 %v2711_v33, %v2424_v17  ;;  %v4163_v47 = vld [vmem:[#allocation4_spill] sm:$0xff] }
 0x19c   :  { %v2801_v26 = vmul.f32 %v2711_v33, %v2430_v12  ;;  %v2805_v44 = vmul.f32 %v2711_v33, %v2436_v27  ;;  %v2809_v3 = vmul.f32 %v2711_v33, %v2442_v22  ;;  %v2813_v2 = vmul.f32 %v2711_v33, %v2448_v36 }
 0x19d   :  { %v2817_v8 = vmul.f32 %v2711_v33, %v2454_v32  ;;  %v2821_v5 = vmul.f32 %v2711_v33, %v2460_v45  ;;  %v2825_v17 = vmul.f32 %v2711_v33, %v2466_v41  ;;  %v2829_v12 = vmul.f32 %v2711_v33, %v2472_v54 }
 0x19e   :  { %v2833_v27 = vmul.f32 %v2711_v33, %v2478_v50  ;;  %v2837_v22 = vmul.f32 %v2711_v33, %v2484_v63  ;;  %v2841_v36 = vmul.f32 %v2711_v33, %v2490_v59  ;;  %v2845_v32 = vmul.f32 %v2711_v33, %v2496_v14 }
 0x19f   :  { %v2849_v45 = vmul.f32 %v2711_v33, %v2502_v7  ;;  %v2853_v41 = vmul.f32 %v2711_v33, %v2508_v29  ;;  %v2857_v54 = vmul.f32 %v2711_v33, %v2514_v21  ;;  %v2861_v50 = vmul.f32 %v2711_v33, %v2520_v42 }
 0x1a0   :  { %v2865_v63 = vmul.f32 %v2711_v33, %v2526_v35  ;;  %v2869_v59 = vmul.f32 %v2711_v33, %v2532_v56  ;;  %v2873_v14 = vmul.f32 %v2711_v33, %v2538_v49  ;;  %v2877_v7 = vmul.f32 %v2711_v33, %v2544_v9 }
 0x1a1   :  { %v2881_v29 = vmul.f32 %v2711_v33, %v2550_v62  ;;  %v2885_v21 = vmul.f32 %v2711_v33, %v2556_v31  ;;  %v2889_v42 = vmul.f32 %v2711_v33, %v2562_v20  ;;  %v2893_v35 = vmul.f32 %v2711_v33, %v2568_v51 }
 0x1a2   :  { %v2897_v56 = vmul.f32 %v2711_v33, %v2574_v40  ;;  %v2901_v49 = vmul.f32 %v2711_v33, %v2580_v11  ;;  %v2905_v9 = vmul.f32 %v2711_v33, %v2586_v61  ;;  %v2909_v62 = vmul.f32 %v2711_v33, %v2592_v18 }
 0x1a3   :  { %v2913_v31 = vmul.f32 %v2711_v33, %v2598_v13  ;;  %v2917_v20 = vmul.f32 %v2711_v33, %v2604_v28  ;;  %v2921_v51 = vmul.f32 %v2711_v33, %v2610_v25  ;;  %v2925_v40 = vmul.f32 %v2711_v33, %v2616_v46  ;;  %v4160_v28 = vld [vmem:[#allocation2_spill] sm:$0xff]  ;;  %v4162_v46 = vld [vmem:[#allocation3_spill] sm:$0xff] }
 0x1a4   :  { %v2929_v11 = vmul.f32 %v2711_v33, %v2622_v39  ;;  %v2933_v61 = vmul.f32 %v2711_v33, %v2628_v0  ;;  %v2937_v18 = vmul.f32 %v2711_v33, %v2634_v19  ;;  %v2941_v13 = vmul.f32 %v2711_v33, %v2640_v30 }
 0x1a5   :  { %v2945_v25 = vmul.f32 %v2711_v33, %v4160_v28  ;;  %v2949_v39 = vmul.f32 %v2711_v33, %v4162_v46  ;;  %v2953_v0 = vmul.f32 %v2711_v33, %v4163_v47  ;;  %v2957_v19 = vmul.f32 %v2711_v33, %v4165_v6 }
 0x1a6   :  { %4158 = vst [vmem:[#allocation22_spill] sm:$0xff] %v2937_v18  ;;  %4159 = vst [vmem:[#allocation21_spill] sm:$0xff] %v2941_v13  ;;  %v4167_v18 = vld [vmem:[#allocation6_spill] sm:$0xff]  ;;  %v4169_v13 = vld [vmem:[#allocation7_spill] sm:$0xff]  ;;  %v2973_v47 = vmul.f32 %v2711_v33, %v2688_v1  ;;  %v2994_v1 = vmul.f32 %v2711_v33, %v2717_v53  ;;  %v3014_v53 = vmul.f32 %v2711_v33, %v2747_v58 }
 0x1a7   :  { %4161 = vst [vmem:[#allocation24_spill] sm:$0xff] %v2945_v25  ;;  %4164 = vst [vmem:[#allocation23_spill] sm:$0xff] %v2953_v0  ;;  %v2961_v30 = vmul.f32 %v2711_v33, %v4167_v18  ;;  %v2965_v28 = vmul.f32 %v2711_v33, %v4169_v13  ;;  %v4170_v25 = vld [vmem:[#allocation8_spill] sm:$0xff]  ;;  %v4171_v0 = vld [vmem:[#allocation17_spill] sm:$0xff] }
 0x1a8   :  { %4166 = vst [vmem:[#allocation10_spill] sm:$0xff] %v2957_v19  ;;  %v2969_v46 = vmul.f32 %v2711_v33, %v4170_v25  ;;  %v2977_v6 = vmul.f32 %v2711_v33, %v4171_v0  ;;  %v4172_v19 = vld [vmem:[#allocation20_spill] sm:$0xff]  ;;  %v2990_v25 = vld [vmem:[%s3961_s3] ss:$0 sm:$0xff]  ;;  %v2998_v0 = vmul.f32 %v2711_v33, %v2723_v37  ;;  %v3018_v37 = vmul.f32 %v2711_v33, %v2753_v34 }
 0x1a9   :  { %4168 = vst [vmem:[#allocation9_spill] sm:$0xff] %v2961_v30  ;;  %v2981_v18 = vmul.f32 %v2711_v33, %v4172_v19  ;;  %v4173_v30 = vld [vmem:[#allocation19_spill] sm:$0xff]  ;;  %v3002_v19 = vmul.f32 %v2711_v33, %v2729_v24  ;;  %v3022_v24 = vmul.f32 %v2711_v33, %v2759_v52  ;;  %v3034_v58 = vadd.f32 %v2990_v25, %v2773_v43 }
 0x1aa   :  { %v2985_v13 = vmul.f32 %v2711_v33, %v4173_v30  ;;  %v3006_v30 = vmul.f32 %v2711_v33, %v2735_v38  ;;  %v3026_v38 = vmul.f32 %v2711_v33, %v2765_v10  ;;  %v3038_v34 = vadd.f32 %v2990_v25, %v2777_v15 }
 0x1ab   :  { %v3042_v52 = vadd.f32 %v2990_v25, %v2781_v4  ;;  %v3050_v10 = vadd.f32 %v2990_v25, %v2789_v55  ;;  %v3058_v43 = vadd.f32 %v2990_v25, %v2797_v23  ;;  %v3062_v15 = vadd.f32 %v2990_v25, %v2801_v26 }
 0x1ac   :  { %4174 = vst [vmem:[#allocation12_spill] sm:$0xff] %v2985_v13  ;;  %v3010_v13 = vmul.f32 %v2711_v33, %v2741_v57  ;;  %v3030_v57 = vadd.f32 %v2990_v25, %v2769_v16  ;;  %v3046_v33 = vadd.f32 %v2990_v25, %v2785_v60  ;;  %v3054_v16 = vadd.f32 %v2990_v25, %v2793_v48 }
 0x1ad   :  { %v3066_v4 = vadd.f32 %v2990_v25, %v2805_v44  ;;  %v3070_v60 = vadd.f32 %v2990_v25, %v2809_v3  ;;  %v3074_v55 = vadd.f32 %v2990_v25, %v2813_v2  ;;  %v3078_v48 = vadd.f32 %v2990_v25, %v2817_v8 }
 0x1ae   :  { %v3082_v23 = vadd.f32 %v2990_v25, %v2821_v5  ;;  %v3086_v26 = vadd.f32 %v2990_v25, %v2825_v17  ;;  %v3090_v44 = vadd.f32 %v2990_v25, %v2829_v12  ;;  %v3094_v3 = vadd.f32 %v2990_v25, %v2833_v27 }
 0x1af   :  { %v3098_v2 = vadd.f32 %v2990_v25, %v2837_v22  ;;  %v3102_v8 = vadd.f32 %v2990_v25, %v2841_v36  ;;  %v3106_v5 = vadd.f32 %v2990_v25, %v2845_v32  ;;  %v3110_v17 = vadd.f32 %v2990_v25, %v2849_v45 }
 0x1b0   :  { %v3114_v12 = vadd.f32 %v2990_v25, %v2853_v41  ;;  %v3118_v27 = vadd.f32 %v2990_v25, %v2857_v54  ;;  %v3122_v22 = vadd.f32 %v2990_v25, %v2861_v50  ;;  %v3126_v36 = vadd.f32 %v2990_v25, %v2865_v63 }
 0x1b1   :  { %v3130_v32 = vadd.f32 %v2990_v25, %v2869_v59  ;;  %v3134_v45 = vadd.f32 %v2990_v25, %v2873_v14  ;;  %v3138_v41 = vadd.f32 %v2990_v25, %v2877_v7  ;;  %v3142_v54 = vadd.f32 %v2990_v25, %v2881_v29 }
 0x1b2   :  { %v3146_v50 = vadd.f32 %v2990_v25, %v2885_v21  ;;  %v3150_v63 = vadd.f32 %v2990_v25, %v2889_v42  ;;  %v3154_v59 = vadd.f32 %v2990_v25, %v2893_v35  ;;  %v3158_v14 = vadd.f32 %v2990_v25, %v2897_v56 }
 0x1b3   :  { %v3162_v7 = vadd.f32 %v2990_v25, %v2901_v49  ;;  %v3166_v29 = vadd.f32 %v2990_v25, %v2905_v9  ;;  %v3170_v21 = vadd.f32 %v2990_v25, %v2909_v62  ;;  %v3174_v42 = vadd.f32 %v2990_v25, %v2913_v31  ;;  %v4179_v31 = vld [vmem:[#allocation22_spill] sm:$0xff] }
 0x1b4   :  { %v3178_v35 = vadd.f32 %v2990_v25, %v2917_v20  ;;  %v3182_v56 = vadd.f32 %v2990_v25, %v2921_v51  ;;  %v3186_v49 = vadd.f32 %v2990_v25, %v2925_v40  ;;  %v3190_v9 = vadd.f32 %v2990_v25, %v2929_v11 }
 0x1b5   :  { %v3194_v62 = vadd.f32 %v2990_v25, %v2933_v61  ;;  %v3198_v20 = vadd.f32 %v2990_v25, %v4179_v31  ;;  %v3210_v11 = vadd.f32 %v2990_v25, %v2949_v39  ;;  %v3230_v39 = vadd.f32 %v2990_v25, %v2969_v46 }
 0x1b6   :  { %4175 = vst [vmem:[#allocation11_spill] sm:$0xff] %v3178_v35  ;;  %4176 = vst [vmem:[#allocation14_spill] sm:$0xff] %v3182_v56  ;;  %v4181_v35 = vld [vmem:[#allocation21_spill] sm:$0xff]  ;;  %v4182_v56 = vld [vmem:[#allocation24_spill] sm:$0xff]  ;;  %v3250_v46 = vadd.f32 %v2990_v25, %v2994_v1  ;;  %v3270_v1 = vadd.f32 %v2990_v25, %v3014_v53  ;;  %vm1139_vm1 = vcmp.ge.f32.partialorder %v3030_v57, 0.0  ;;  %vm1140_vm2 = vcmp.ge.f32.partialorder %v3034_v58, 0.0 }
 0x1b7   :  { %4177 = vst [vmem:[#allocation13_spill] sm:$0xff] %v3190_v9  ;;  %4178 = vst [vmem:[#allocation16_spill] sm:$0xff] %v3194_v62  ;;  %v3202_v51 = vadd.f32 %v2990_v25, %v4181_v35  ;;  %v3206_v40 = vadd.f32 %v2990_v25, %v4182_v56  ;;  %v4183_v9 = vld [vmem:[#allocation23_spill] sm:$0xff]  ;;  %v4184_v62 = vld [vmem:[#allocation10_spill] sm:$0xff]  ;;  %v3226_v56 = vadd.f32 %v2990_v25, %v2965_v28  ;;  %vm1141_vm3 = vcmp.ge.f32.partialorder %v3038_v34, 0.0 }
 0x1b8   :  { %4180 = vst [vmem:[#allocation15_spill] sm:$0xff] %v3198_v20  ;;  %v3214_v61 = vadd.f32 %v2990_v25, %v4183_v9  ;;  %v3218_v31 = vadd.f32 %v2990_v25, %v4184_v62  ;;  %v4185_v20 = vld [vmem:[#allocation9_spill] sm:$0xff]  ;;  %v3234_v9 = vadd.f32 %v2990_v25, %v2973_v47  ;;  %v3238_v62 = vadd.f32 %v2990_v25, %v2977_v6 }
 0x1b9   :  { %v3222_v35 = vadd.f32 %v2990_v25, %v4185_v20  ;;  %4187 = vst [vmem:[#allocation2_spill] sm:$0xff] %v3226_v56  ;;  %v3242_v20 = vadd.f32 %v2990_v25, %v2981_v18  ;;  %4191 = vst [vmem:[#allocation5_spill] sm:$0xff] %v3250_v46  ;;  %v3254_v47 = vadd.f32 %v2990_v25, %v2998_v0  ;;  %vm1142_vm4 = vcmp.ge.f32.partialorder %v3042_v52, 0.0 }
 0x1ba   :  { %v3258_v6 = vadd.f32 %v2990_v25, %v3002_v19  ;;  %v3262_v18 = vadd.f32 %v2990_v25, %v3006_v30  ;;  %4196 = vst [vmem:[#allocation20_spill] sm:$0xff] %v3270_v1  ;;  %v3274_v0 = vadd.f32 %v2990_v25, %v3018_v37  ;;  %vm1143_vm5 = vcmp.ge.f32.partialorder %v3046_v33, 0.0 }
 0x1bb   :  { %4186 = vst [vmem:[#allocation18_spill] sm:$0xff] %v3222_v35  ;;  %4188 = vst [vmem:[#allocation3_spill] sm:$0xff] %v3242_v20  ;;  %v4189_v35 = vld [vmem:[#allocation12_spill] sm:$0xff]  ;;  %vm1144_vm6 = vcmp.ge.f32.partialorder %v3050_v10, 0.0  ;;  %vm1145_vm7 = vcmp.ge.f32.partialorder %v3054_v16, 0.0  ;;  %vm1146_vm8 = vcmp.ge.f32.partialorder %v3058_v43, 0.0  ;;  %v3295_v37 = vadd.f32 %v2990_v25, %v3026_v38 }
 0x1bc   :  { %v3246_v28 = vadd.f32 %v2990_v25, %v4189_v35  ;;  %4192 = vst [vmem:[#allocation6_spill] sm:$0xff] %v3254_v47  ;;  %4193 = vst [vmem:[#allocation7_spill] sm:$0xff] %v3258_v6  ;;  %v3266_v35 = vadd.f32 %v2990_v25, %v3010_v13  ;;  %vm1147_vm9 = vcmp.ge.f32.partialorder %v3062_v15, 0.0  ;;  %v3287_v13 = vadd.f32 %v2990_v25, %v3022_v24 }
 0x1bd   :  { %4194 = vst [vmem:[#allocation8_spill] sm:$0xff] %v3262_v18  ;;  %4197 = vst [vmem:[#allocation19_spill] sm:$0xff] %v3274_v0  ;;  %vm1148_vm10 = vcmp.ge.f32.partialorder %v3066_v4, 0.0  ;;  %v1203_v19 = vmul.f32 0.002, %v3030_v57  ;;  %vm1149_vm11 = vcmp.ge.f32.partialorder %v3070_v60, 0.0 }
 0x1be   :  { %4190 = vst [vmem:[#allocation4_spill] sm:$0xff] %v3246_v28  ;;  %4195 = vst [vmem:[#allocation17_spill] sm:$0xff] %v3266_v35  ;;  %v1204_v30 = vmul.f32 0.002, %v3034_v58  ;;  %v1205_v53 = vmul.f32 0.002, %v3038_v34 }
 0x1bf   :  { %4198 = vst [vmem:[#allocation22_spill] sm:$0xff] %v3287_v13  ;;  %4199 = vst [vmem:[#allocation21_spill] sm:$0xff] %v3295_v37  ;;  %v1206_v0 = vmul.f32 0.002, %v3042_v52  ;;  %v1207_v1 = vmul.f32 0.002, %v3046_v33  ;;  %v1267_v25 = vsel %vm1139_vm1, %v3030_v57, %v1203_v19 }
 0x1c0   :  { %v1208_v24 = vmul.f32 0.002, %v3050_v10  ;;  %vm1150_vm12 = vcmp.ge.f32.partialorder %v3074_v55, 0.0  ;;  %v1209_v13 = vmul.f32 0.002, %v3054_v16  ;;  %vm1151_vm13 = vcmp.ge.f32.partialorder %v3078_v48, 0.0  ;;  %1331 = vst [vmem:[%s3962_s4] sm:$0xff] %v1267_v25 }
 0x1c1   :  { %v1210_v35 = vmul.f32 0.002, %v3058_v43  ;;  %v1211_v18 = vmul.f32 0.002, %v3062_v15  ;;  %v1212_v38 = vmul.f32 0.002, %v3066_v4  ;;  %v1268_v47 = vsel %vm1140_vm2, %v3034_v58, %v1204_v30 }
 0x1c2   :  { %v3311_v37 = vmul.f32 0.002, %v3070_v60  ;;  %v3314_v6 = vmul.f32 0.002, %v3074_v55  ;;  %vm1152_vm14 = vcmp.ge.f32.partialorder %v3082_v23, 0.0  ;;  %v1269_v28 = vsel %vm1141_vm3, %v3038_v34, %v1205_v53  ;;  %1332 = vst [vmem:[%s3962_s4 + $0x8] sm:$0xff] %v1268_v47 }
 0x1c3   :  { %v3324_v57 = vmul.f32 0.002, %v3078_v48  ;;  %v3327_v19 = vmul.f32 0.002, %v3082_v23  ;;  %v3330_v46 = vmul.f32 0.002, %v3086_v26  ;;  %v1270_v20 = vsel %vm1142_vm4, %v3042_v52, %v1206_v0 }
 0x1c4   :  { %vm1153_vm15 = vcmp.ge.f32.partialorder %v3086_v26, 0.0  ;;  %v3340_v58 = vmul.f32 0.002, %v3090_v44  ;;  %v3343_v30 = vmul.f32 0.002, %v3094_v3  ;;  %1333 = vst [vmem:[%s3962_s4 + $0x10] sm:$0xff] %v1269_v28 }
 0x1c5   :  { %v3346_v25 = vmul.f32 0.002, %v3098_v2  ;;  %vm1154_vm0 = vcmp.ge.f32.partialorder %v3090_v44, 0.0  ;;  %v3356_v34 = vmul.f32 0.002, %v3102_v8  ;;  %1334 = vst [vmem:[%s3962_s4 + $0x18] sm:$0xff] %v1270_v20 }
 0x1c6   :  { %v3359_v47 = vmul.f32 0.002, %v3106_v5  ;;  %v3362_v53 = vmul.f32 0.002, %v3110_v17  ;;  %vm1155_vm1 = vcmp.ge.f32.partialorder %v3094_v3, 0.0  ;;  %vm1156_vm2 = vcmp.ge.f32.partialorder %v3098_v2, 0.0 }
 0x1c7   :  { %4200 = vst [vmem:[#allocation24_spill] sm:$0xff] %v3346_v25  ;;  %v1271_v25 = vsel %vm1143_vm5, %v3046_v33, %v1207_v1  ;;  %v3372_v52 = vmul.f32 0.002, %v3114_v12  ;;  %v3375_v28 = vmul.f32 0.002, %v3118_v27  ;;  %vm1157_vm3 = vcmp.ge.f32.partialorder %v3102_v8, 0.0 }
 0x1c8   :  { %4201 = vst [vmem:[#allocation23_spill] sm:$0xff] %v3362_v53  ;;  %v3378_v0 = vmul.f32 0.002, %v3122_v22  ;;  %v1272_v53 = vsel %vm1144_vm6, %v3050_v10, %v1208_v24  ;;  %1335 = vst [vmem:[%s3962_s4 + $0x20] sm:$0xff] %v1271_v25  ;;  %v3388_v33 = vmul.f32 0.002, %v3126_v36 }
 0x1c9   :  { %v3391_v20 = vmul.f32 0.002, %v3130_v32  ;;  %v3394_v1 = vmul.f32 0.002, %v3134_v45  ;;  %1336 = vst [vmem:[%s3962_s4 + $0x28] sm:$0xff] %v1272_v53  ;;  %vm1158_vm4 = vcmp.ge.f32.partialorder %v3106_v5, 0.0 }
 0x1ca   :  { %4202 = vst [vmem:[#allocation10_spill] sm:$0xff] %v3378_v0  ;;  %v1273_v0 = vsel %vm1145_vm7, %v3054_v16, %v1209_v13  ;;  %v3404_v10 = vmul.f32 0.002, %v3138_v41  ;;  %v3407_v24 = vmul.f32 0.002, %v3142_v54  ;;  %vm1161_vm7 = vcmp.ge.f32.partialorder %v3118_v27, 0.0 }
 0x1cb   :  { %4203 = vst [vmem:[#allocation9_spill] sm:$0xff] %v3394_v1  ;;  %v3410_v25 = vmul.f32 0.002, %v3146_v50  ;;  %v1274_v1 = vsel %vm1146_vm8, %v3058_v43, %v1210_v35  ;;  %1337 = vst [vmem:[%s3962_s4 + $0x30] sm:$0xff] %v1273_v0  ;;  %v3422_v16 = vmul.f32 0.002, %v3150_v63  ;;  %v1275_v43 = vsel %vm1147_vm9, %v3062_v15, %v1211_v18 }
 0x1cc   :  { %v3425_v13 = vmul.f32 0.002, %v3154_v59  ;;  %v3428_v53 = vmul.f32 0.002, %v3158_v14  ;;  %1338 = vst [vmem:[%s3962_s4 + $0x38] sm:$0xff] %v1274_v1  ;;  %v1276_v18 = vsel %vm1148_vm10, %v3066_v4, %v1212_v38  ;;  %1339 = vst [vmem:[%s3962_s4 + $0x40] sm:$0xff] %v1275_v43  ;;  %v1277_v38 = vsel %vm1149_vm11, %v3070_v60, %v3311_v37 }
 0x1cd   :  { %v3441_v35 = vmul.f32 0.002, %v3162_v7  ;;  %v3444_v0 = vmul.f32 0.002, %v3166_v29  ;;  %v3447_v15 = vmul.f32 0.002, %v3170_v21  ;;  %v1278_v37 = vsel %vm1150_vm12, %v3074_v55, %v3314_v6 }
 0x1ce   :  { %vm1165_vm9 = vcmp.ge.f32.partialorder %v3134_v45, 0.0  ;;  %v3460_v1 = vmul.f32 0.002, %v3174_v42  ;;  %1340 = vst [vmem:[%s3962_s4 + $0x48] sm:$0xff] %v1276_v18  ;;  %vm1169_vm10 = vcmp.ge.f32.partialorder %v3150_v63, 0.0  ;;  %1341 = vst [vmem:[%s3962_s4 + $0x50] sm:$0xff] %v1277_v38  ;;  %v1279_v6 = vsel %vm1151_vm13, %v3078_v48, %v3324_v57 }
 0x1cf   :  { %4204 = vst [vmem:[#allocation12_spill] sm:$0xff] %v3441_v35  ;;  %4205 = vst [vmem:[#allocation25_spill] sm:$0xff] %v3444_v0  ;;  %v4210_v35 = vld [vmem:[#allocation14_spill] sm:$0xff]  ;;  %v3480_v43 = vmul.f32 0.002, %v3186_v49  ;;  %vm1173_vm11 = vcmp.ge.f32.partialorder %v3166_v29, 0.0  ;;  %v1280_v57 = vsel %vm1152_vm14, %v3082_v23, %v3327_v19  ;;  %v1281_v19 = vsel %vm1153_vm15, %v3086_v26, %v3330_v46 }
 0x1d0   :  { %4206 = vst [vmem:[#allocation26_spill] sm:$0xff] %v3447_v15  ;;  %4207 = vst [vmem:[#allocation27_spill] sm:$0xff] %v3460_v1  ;;  %v4208_v15 = vld [vmem:[#allocation11_spill] sm:$0xff]  ;;  %v3466_v4 = vmul.f32 0.002, %v4210_v35  ;;  %v4214_v1 = vld [vmem:[#allocation16_spill] sm:$0xff]  ;;  %v1282_v46 = vsel %vm1154_vm0, %v3090_v44, %v3340_v58  ;;  %v1283_v58 = vsel %vm1155_vm1, %v3094_v3, %v3343_v30 }
 0x1d1   :  { %v3463_v0 = vmul.f32 0.002, %v4208_v15  ;;  %v3486_v60 = vmul.f32 0.002, %v4214_v1  ;;  %v4216_v18 = vld [vmem:[#allocation15_spill] sm:$0xff]  ;;  %1342 = vst [vmem:[%s3962_s4 + $0x58] sm:$0xff] %v1278_v37 }
 0x1d2   :  { %4211 = vst [vmem:[#allocation14_spill] sm:$0xff] %v3466_v4  ;;  %v4212_v4 = vld [vmem:[#allocation13_spill] sm:$0xff]  ;;  %v3506_v55 = vmul.f32 0.002, %v3206_v40  ;;  %vm1177_vm12 = vcmp.ge.f32.partialorder %v4210_v35, 0.0  ;;  %1343 = vst [vmem:[%s3962_s4 + $0x60] sm:$0xff] %v1279_v6 }
 0x1d3   :  { %4209 = vst [vmem:[#allocation11_spill] sm:$0xff] %v3463_v0  ;;  %v3483_v0 = vmul.f32 0.002, %v4212_v4  ;;  %4215 = vst [vmem:[#allocation16_spill] sm:$0xff] %v3486_v60  ;;  %v3503_v60 = vmul.f32 0.002, %v3202_v51 }
 0x1d4   :  { %4217 = vst [vmem:[#allocation15_spill] sm:$0xff] %v3506_v55  ;;  %v3520_v38 = vmul.f32 0.002, %v3210_v11  ;;  %v3523_v55 = vmul.f32 0.002, %v3214_v61  ;;  %vm1181_vm13 = vcmp.ge.f32.partialorder %v4216_v18, 0.0 }
 0x1d5   :  { %4213 = vst [vmem:[#allocation13_spill] sm:$0xff] %v3483_v0  ;;  %v3500_v0 = vmul.f32 0.002, %v4216_v18  ;;  %v3526_v48 = vmul.f32 0.002, %v3218_v31  ;;  %v4220_v37 = vld [vmem:[#allocation18_spill] sm:$0xff] }
 0x1d6   :  { %4218 = vst [vmem:[#allocation28_spill] sm:$0xff] %v3523_v55  ;;  %v3540_v55 = vmul.f32 0.002, %v4220_v37  ;;  %v3546_v23 = vmul.f32 0.002, %v3230_v39  ;;  %1344 = vst [vmem:[%s3962_s4 + $0x68] sm:$0xff] %v1280_v57 }
 0x1d7   :  { %4219 = vst [vmem:[#allocation29_spill] sm:$0xff] %v3526_v48  ;;  %v3543_v48 = vmul.f32 0.002, %v3226_v56  ;;  %vm1185_vm14 = vcmp.ge.f32.partialorder %v3214_v61, 0.0  ;;  %v3560_v6 = vmul.f32 0.002, %v3234_v9 }
 0x1d8   :  { %4222 = vst [vmem:[#allocation30_spill] sm:$0xff] %v3546_v23  ;;  %v3563_v23 = vmul.f32 0.002, %v3238_v62  ;;  %1345 = vst [vmem:[%s3962_s4 + $0x70] sm:$0xff] %v1281_v19  ;;  %vm1189_vm15 = vcmp.ge.f32.partialorder %v3230_v39, 0.0  ;;  %v4227_v57 = vld [vmem:[#allocation4_spill] sm:$0xff] }
 0x1d9   :  { %4221 = vst [vmem:[#allocation18_spill] sm:$0xff] %v3543_v48  ;;  %4223 = vst [vmem:[#allocation31_spill] sm:$0xff] %v3560_v6  ;;  %v4225_v48 = vld [vmem:[#allocation3_spill] sm:$0xff]  ;;  %v4231_v56 = vld [vmem:[#allocation6_spill] sm:$0xff]  ;;  %vm1193_vm0 = vcmp.ge.f32.partialorder %v4227_v57, 0.0  ;;  %vm4247_vm6 = vcmp.ge.f32.partialorder %v3114_v12, 0.0 }
 0x1da   :  { %4224 = vst [vmem:[#allocation32_spill] sm:$0xff] %v3563_v23  ;;  %v3566_v26 = vmul.f32 0.002, %v4225_v48  ;;  %v3580_v23 = vmul.f32 0.002, %v4227_v57  ;;  %1346 = vst [vmem:[%s3962_s4 + $0x78] sm:$0xff] %v1282_v46 }
 0x1db   :  { %v3586_v44 = vmul.f32 0.002, %v4231_v56  ;;  %v4233_v19 = vld [vmem:[#allocation7_spill] sm:$0xff]  ;;  %v4237_v48 = vld [vmem:[#allocation17_spill] sm:$0xff]  ;;  %v4239_v30 = vld [vmem:[#allocation24_spill] sm:$0xff]  ;;  %1347 = vst [vmem:[%s3962_s4 + $0x80] sm:$0xff] %v1283_v58  ;;  %v1285_v58 = vsel %vm1157_vm3, %v3102_v8, %v3356_v34  ;;  %v1288_v34 = vsel %vm4247_vm6, %v3114_v12, %v3372_v52 }
 0x1dc   :  { %4226 = vst [vmem:[#allocation33_spill] sm:$0xff] %v3566_v26  ;;  %4228 = vst [vmem:[#allocation4_spill] sm:$0xff] %v3580_v23  ;;  %v4229_v26 = vld [vmem:[#allocation5_spill] sm:$0xff]  ;;  %v3606_v3 = vmul.f32 0.002, %v4237_v48  ;;  %v1284_v46 = vsel %vm1156_vm2, %v3098_v2, %v4239_v30  ;;  %vm1198_vm5 = vcmp.ge.f32.partialorder %v4237_v48, 0.0 }
 0x1dd   :  { %v3583_v6 = vmul.f32 0.002, %v4229_v26  ;;  %4232 = vst [vmem:[#allocation34_spill] sm:$0xff] %v3586_v44  ;;  %v4235_v44 = vld [vmem:[#allocation8_spill] sm:$0xff]  ;;  %v4242_v56 = vld [vmem:[#allocation22_spill] sm:$0xff]  ;;  %1348 = vst [vmem:[%s3962_s4 + $0x88] sm:$0xff] %v1284_v46  ;;  %v1289_v46 = vsel %vm1161_vm7, %v3118_v27, %v3375_v28 }
 0x1de   :  { %v3603_v23 = vmul.f32 0.002, %v4235_v44  ;;  %4238 = vst [vmem:[#allocation17_spill] sm:$0xff] %v3606_v3  ;;  %vm1197_vm1 = vcmp.ge.f32.partialorder %v4235_v44, 0.0  ;;  %v3626_v2 = vmul.f32 0.002, %v4242_v56 }
 0x1df   :  { %4230 = vst [vmem:[#allocation5_spill] sm:$0xff] %v3583_v6  ;;  %v3600_v6 = vmul.f32 0.002, %v4233_v19  ;;  %v4240_v19 = vld [vmem:[#allocation20_spill] sm:$0xff]  ;;  %vm1201_vm2 = vcmp.ge.f32.partialorder %v4242_v56, 0.0  ;;  %v4244_v30 = vld [vmem:[#allocation21_spill] sm:$0xff] }
 0x1e0   :  { %4236 = vst [vmem:[#allocation8_spill] sm:$0xff] %v3603_v23  ;;  %v3620_v23 = vmul.f32 0.002, %v4240_v19  ;;  %4243 = vst [vmem:[#allocation24_spill] sm:$0xff] %v3626_v2  ;;  %vm1202_vm8 = vcmp.ge.f32.partialorder %v4244_v30, 0.0  ;;  %v1286_v2 = vsel %vm1158_vm4, %v3106_v5, %v3359_v47  ;;  %vm4246_vm3 = vcmp.ge.f32.partialorder %v3110_v17, 0.0 }
 0x1e1   :  { %4234 = vst [vmem:[#allocation35_spill] sm:$0xff] %v3600_v6  ;;  %v4241_v6 = vld [vmem:[#allocation19_spill] sm:$0xff]  ;;  %v3638_v19 = vmul.f32 0.002, %v4244_v30  ;;  %1349 = vst [vmem:[%s3962_s4 + $0x90] sm:$0xff] %v1285_v58  ;;  %v4248_v5 = vld [vmem:[#allocation10_spill] sm:$0xff] }
 0x1e2   :  { %v3623_v3 = vmul.f32 0.002, %v4241_v6  ;;  %v4245_v6 = vld [vmem:[#allocation23_spill] sm:$0xff]  ;;  %vm4249_vm4 = vcmp.ge.f32.partialorder %v3122_v22, 0.0  ;;  %vm4251_vm6 = vcmp.ge.f32.partialorder %v3130_v32, 0.0  ;;  %1350 = vst [vmem:[%s3962_s4 + $0x98] sm:$0xff] %v1286_v2 }
 0x1e3   :  { %v1287_v8 = vsel %vm4246_vm3, %v3110_v17, %v4245_v6  ;;  %v1290_v47 = vsel %vm4249_vm4, %v3122_v22, %v4248_v5  ;;  %vm4250_vm3 = vcmp.ge.f32.partialorder %v3126_v36, 0.0  ;;  %v1292_v12 = vsel %vm4251_vm6, %v3130_v32, %v3391_v20  ;;  %1352 = vst [vmem:[%s3962_s4 + $0xa8] sm:$0xff] %v1288_v34  ;;  %v4252_v27 = vld [vmem:[#allocation9_spill] sm:$0xff]  ;;  %1353 = vst [vmem:[%s3962_s4 + $0xb0] sm:$0xff] %v1289_v46  ;;  %v4287_v6 = vld [vmem:[#allocation32_spill] sm:$0xff] }
 0x1e4   :  { %v1291_v17 = vsel %vm4250_vm3, %v3126_v36, %v3388_v33  ;;  %1351 = vst [vmem:[%s3962_s4 + $0xa0] sm:$0xff] %v1287_v8  ;;  %v1293_v22 = vsel %vm1165_vm9, %v3134_v45, %v4252_v27  ;;  %vm4253_vm7 = vcmp.ge.f32.partialorder %v3138_v41, 0.0  ;;  %vm4254_vm4 = vcmp.ge.f32.partialorder %v3142_v54, 0.0  ;;  %1354 = vst [vmem:[%s3962_s4 + $0xb8] sm:$0xff] %v1290_v47  ;;  %v4263_v33 = vld [vmem:[#allocation27_spill] sm:$0xff]  ;;  %v4289_v58 = vld [vmem:[#allocation33_spill] sm:$0xff] }
 0x1e5   :  { %v1294_v36 = vsel %vm4253_vm7, %v3138_v41, %v3404_v10  ;;  %v1295_v32 = vsel %vm4254_vm4, %v3142_v54, %v3407_v24  ;;  %vm4255_vm3 = vcmp.ge.f32.partialorder %v3146_v50, 0.0  ;;  %1355 = vst [vmem:[%s3962_s4 + $0xc0] sm:$0xff] %v1291_v17  ;;  %1356 = vst [vmem:[%s3962_s4 + $0xc8] sm:$0xff] %v1292_v12  ;;  %v1297_v45 = vsel %vm1169_vm10, %v3150_v63, %v3422_v16  ;;  %v4260_v63 = vld [vmem:[#allocation25_spill] sm:$0xff]  ;;  %v4265_v10 = vld [vmem:[#allocation11_spill] sm:$0xff] }
 0x1e6   :  { %v1296_v52 = vsel %vm4255_vm3, %v3146_v50, %v3410_v25  ;;  %vm4256_vm9 = vcmp.ge.f32.partialorder %v3154_v59, 0.0  ;;  %vm4257_vm6 = vcmp.ge.f32.partialorder %v3158_v14, 0.0  ;;  %v4258_v50 = vld [vmem:[#allocation12_spill] sm:$0xff]  ;;  %vm4259_vm7 = vcmp.ge.f32.partialorder %v3162_v7, 0.0  ;;  %1357 = vst [vmem:[%s3962_s4 + $0xd0] sm:$0xff] %v1293_v22  ;;  %1358 = vst [vmem:[%s3962_s4 + $0xd8] sm:$0xff] %v1294_v36 }
 0x1e7   :  { %v1298_v41 = vsel %vm4256_vm9, %v3154_v59, %v3425_v13  ;;  %v1299_v54 = vsel %vm4257_vm6, %v3158_v14, %v3428_v53  ;;  %v1300_v28 = vsel %vm4259_vm7, %v3162_v7, %v4258_v50  ;;  %1359 = vst [vmem:[%s3962_s4 + $0xe0] sm:$0xff] %v1295_v32  ;;  %1360 = vst [vmem:[%s3962_s4 + $0xe8] sm:$0xff] %v1296_v52  ;;  %v4261_v14 = vld [vmem:[#allocation26_spill] sm:$0xff]  ;;  %vm4262_vm10 = vcmp.ge.f32.partialorder %v3170_v21, 0.0  ;;  %v4269_v25 = vld [vmem:[#allocation13_spill] sm:$0xff] }
 0x1e8   :  { %v1301_v59 = vsel %vm1173_vm11, %v3166_v29, %v4260_v63  ;;  %v1302_v7 = vsel %vm4262_vm10, %v3170_v21, %v4261_v14  ;;  %vm4264_vm4 = vcmp.ge.f32.partialorder %v3174_v42, 0.0  ;;  %vm4266_vm3 = vcmp.ge.f32.partialorder %v4208_v15, 0.0  ;;  %1361 = vst [vmem:[%s3962_s4 + $0xf0] sm:$0xff] %v1297_v45  ;;  %1362 = vst [vmem:[%s3962_s4 + $0xf8] sm:$0xff] %v1298_v41  ;;  %v4267_v29 = vld [vmem:[#allocation14_spill] sm:$0xff]  ;;  %v4271_v13 = vld [vmem:[#allocation16_spill] sm:$0xff] }
 0x1e9   :  { %v1303_v20 = vsel %vm4264_vm4, %v3174_v42, %v4263_v33  ;;  %v1304_v24 = vsel %vm4266_vm3, %v4208_v15, %v4265_v10  ;;  %1363 = vst [vmem:[%s3962_s4 + $0x100] sm:$0xff] %v1299_v54  ;;  %1364 = vst [vmem:[%s3962_s4 + $0x108] sm:$0xff] %v1300_v28  ;;  %v1305_v21 = vsel %vm1177_vm12, %v4210_v35, %v4267_v29  ;;  %vm4268_vm11 = vcmp.ge.f32.partialorder %v3186_v49, 0.0  ;;  %v4274_v15 = vld [vmem:[#allocation15_spill] sm:$0xff]  ;;  %v4295_v5 = vld [vmem:[#allocation34_spill] sm:$0xff] }
 0x1ea   :  { %v1306_v42 = vsel %vm4268_vm11, %v3186_v49, %v3480_v43  ;;  %vm4270_vm9 = vcmp.ge.f32.partialorder %v4212_v4, 0.0  ;;  %vm4272_vm6 = vcmp.ge.f32.partialorder %v4214_v1, 0.0  ;;  %1365 = vst [vmem:[%s3962_s4 + $0x110] sm:$0xff] %v1301_v59  ;;  %1366 = vst [vmem:[%s3962_s4 + $0x118] sm:$0xff] %v1302_v7  ;;  %v1309_v49 = vsel %vm1181_vm13, %v4216_v18, %v3500_v0  ;;  %v4282_v18 = vld [vmem:[#allocation2_spill] sm:$0xff]  ;;  %v4290_v8 = vld [vmem:[#allocation3_spill] sm:$0xff] }
 0x1eb   :  { %v1307_v16 = vsel %vm4270_vm9, %v4212_v4, %v4269_v25  ;;  %v1308_v53 = vsel %vm4272_vm6, %v4214_v1, %v4271_v13  ;;  %1367 = vst [vmem:[%s3962_s4 + $0x120] sm:$0xff] %v1303_v20  ;;  %1368 = vst [vmem:[%s3962_s4 + $0x128] sm:$0xff] %v1304_v24  ;;  %vm4273_vm12 = vcmp.ge.f32.partialorder %v3202_v51, 0.0  ;;  %vm4275_vm7 = vcmp.ge.f32.partialorder %v3206_v40, 0.0  ;;  %v4296_v47 = vld [vmem:[#allocation6_spill] sm:$0xff]  ;;  %v4298_v12 = vld [vmem:[#allocation35_spill] sm:$0xff] }
 0x1ec   :  { %v1310_v35 = vsel %vm4273_vm12, %v3202_v51, %v3503_v60  ;;  %v1311_v1 = vsel %vm4275_vm7, %v3206_v40, %v4274_v15  ;;  %vm4276_vm10 = vcmp.ge.f32.partialorder %v3210_v11, 0.0  ;;  %1369 = vst [vmem:[%s3962_s4 + $0x130] sm:$0xff] %v1305_v21  ;;  %1370 = vst [vmem:[%s3962_s4 + $0x138] sm:$0xff] %v1306_v42  ;;  %v4277_v51 = vld [vmem:[#allocation28_spill] sm:$0xff]  ;;  %vm4279_vm13 = vcmp.ge.f32.partialorder %v3218_v31, 0.0  ;;  %v4281_v60 = vld [vmem:[#allocation18_spill] sm:$0xff] }
 0x1ed   :  { %v1312_v4 = vsel %vm4276_vm10, %v3210_v11, %v3520_v38  ;;  %1371 = vst [vmem:[%s3962_s4 + $0x140] sm:$0xff] %v1307_v16  ;;  %1372 = vst [vmem:[%s3962_s4 + $0x148] sm:$0xff] %v1308_v53  ;;  %v1313_v40 = vsel %vm1185_vm14, %v3214_v61, %v4277_v51  ;;  %v4278_v11 = vld [vmem:[#allocation29_spill] sm:$0xff]  ;;  %vm4280_vm4 = vcmp.ge.f32.partialorder %v4220_v37, 0.0  ;;  %vm4283_vm3 = vcmp.ge.f32.partialorder %v4282_v18, 0.0  ;;  %v4284_v61 = vld [vmem:[#allocation30_spill] sm:$0xff] }
 0x1ee   :  { %v1314_v0 = vsel %vm4279_vm13, %v3218_v31, %v4278_v11  ;;  %v1315_v43 = vsel %vm4280_vm4, %v4220_v37, %v3540_v55  ;;  %v1316_v38 = vsel %vm4283_vm3, %v4282_v18, %v4281_v60  ;;  %1373 = vst [vmem:[%s3962_s4 + $0x150] sm:$0xff] %v1309_v49  ;;  %1374 = vst [vmem:[%s3962_s4 + $0x158] sm:$0xff] %v1310_v35  ;;  %v4285_v55 = vld [vmem:[#allocation31_spill] sm:$0xff]  ;;  %vm4286_vm14 = vcmp.ge.f32.partialorder %v3234_v9, 0.0  ;;  %v4302_v36 = vld [vmem:[#allocation17_spill] sm:$0xff] }
 0x1ef   :  { %1375 = vst [vmem:[%s3962_s4 + $0x160] sm:$0xff] %v1311_v1  ;;  %1376 = vst [vmem:[%s3962_s4 + $0x168] sm:$0xff] %v1312_v4  ;;  %v1317_v31 = vsel %vm1189_vm15, %v3230_v39, %v4284_v61  ;;  %v1318_v37 = vsel %vm4286_vm14, %v3234_v9, %v4285_v55  ;;  %vm4288_vm11 = vcmp.ge.f32.partialorder %v3238_v62, 0.0  ;;  %vm4291_vm9 = vcmp.ge.f32.partialorder %v4290_v8, 0.0  ;;  %v4292_v39 = vld [vmem:[#allocation4_spill] sm:$0xff]  ;;  %v4299_v27 = vld [vmem:[#allocation7_spill] sm:$0xff] }
 0x1f0   :  { %v1319_v2 = vsel %vm4288_vm11, %v3238_v62, %v4287_v6  ;;  %v1320_v34 = vsel %vm4291_vm9, %v4290_v8, %v4289_v58  ;;  %1377 = vst [vmem:[%s3962_s4 + $0x170] sm:$0xff] %v1313_v40  ;;  %1378 = vst [vmem:[%s3962_s4 + $0x178] sm:$0xff] %v1314_v0  ;;  %v1321_v9 = vsel %vm1193_vm0, %v4227_v57, %v4292_v39  ;;  %v4293_v62 = vld [vmem:[#allocation5_spill] sm:$0xff]  ;;  %vm4294_vm15 = vcmp.ge.f32.partialorder %v4229_v26, 0.0  ;;  %v4303_v52 = vld [vmem:[#allocation20_spill] sm:$0xff] }
 0x1f1   :  { %1379 = vst [vmem:[%s3962_s4 + $0x180] sm:$0xff] %v1315_v43  ;;  %1380 = vst [vmem:[%s3962_s4 + $0x188] sm:$0xff] %v1316_v38  ;;  %v1322_v46 = vsel %vm4294_vm15, %v4229_v26, %v4293_v62  ;;  %vm4297_vm6 = vcmp.ge.f32.partialorder %v4296_v47, 0.0  ;;  %vm4300_vm12 = vcmp.ge.f32.partialorder %v4299_v27, 0.0  ;;  %v4301_v26 = vld [vmem:[#allocation8_spill] sm:$0xff]  ;;  %v1326_v32 = vsel %vm1198_vm5, %v4237_v48, %v4302_v36  ;;  %v4305_v41 = vld [vmem:[#allocation19_spill] sm:$0xff] }
 0x1f2   :  { %v1323_v17 = vsel %vm4297_vm6, %v4296_v47, %v4295_v5  ;;  %v1324_v22 = vsel %vm4300_vm12, %v4299_v27, %v4298_v12  ;;  %1381 = vst [vmem:[%s3962_s4 + $0x190] sm:$0xff] %v1317_v31  ;;  %1382 = vst [vmem:[%s3962_s4 + $0x198] sm:$0xff] %v1318_v37  ;;  %v1325_v57 = vsel %vm1197_vm1, %v4235_v44, %v4301_v26  ;;  %vm4304_vm0 = vcmp.ge.f32.partialorder %v4303_v52, 0.0  ;;  %v4307_v48 = vld [vmem:[#allocation24_spill] sm:$0xff] }
 0x1f3   :  { %1383 = vst [vmem:[%s3962_s4 + $0x1a0] sm:$0xff] %v1319_v2  ;;  %1384 = vst [vmem:[%s3962_s4 + $0x1a8] sm:$0xff] %v1320_v34  ;;  %v1327_v45 = vsel %vm4304_vm0, %v4303_v52, %v3620_v23  ;;  %vm4306_vm7 = vcmp.ge.f32.partialorder %v4305_v41, 0.0  ;;  %v1329_v23 = vsel %vm1201_vm2, %v4242_v56, %v4307_v48  ;;  %v1330_v44 = vsel %vm1202_vm8, %v4244_v30, %v3638_v19 }
 0x1f4   :  { %v1328_v54 = vsel %vm4306_vm7, %v4305_v41, %v3623_v3  ;;  %1385 = vst [vmem:[%s3962_s4 + $0x1b0] sm:$0xff] %v1321_v9  ;;  %1386 = vst [vmem:[%s3962_s4 + $0x1b8] sm:$0xff] %v1322_v46 }
 0x1f5   :  { %1387 = vst [vmem:[%s3962_s4 + $0x1c0] sm:$0xff] %v1323_v17  ;;  %1388 = vst [vmem:[%s3962_s4 + $0x1c8] sm:$0xff] %v1324_v22 }
 0x1f6   :  { %1389 = vst [vmem:[%s3962_s4 + $0x1d0] sm:$0xff] %v1325_v57  ;;  %1390 = vst [vmem:[%s3962_s4 + $0x1d8] sm:$0xff] %v1326_v32 }
 0x1f7   :  { %1391 = vst [vmem:[%s3962_s4 + $0x1e0] sm:$0xff] %v1327_v45  ;;  %1392 = vst [vmem:[%s3962_s4 + $0x1e8] sm:$0xff] %v1328_v54 }
 0x1f8   :  { %1393 = vst [vmem:[%s3962_s4 + $0x1f0] sm:$0xff] %v1329_v23  ;;  %1394 = vst [vmem:[%s3962_s4 + $0x1f8] sm:$0xff] %v1330_v44 }

// kernel: discriminator_forward.4
= control target key start
LH: loop header
LB: loop body
LE: loop exit
PB: predicated region body
PF: predicated region fallthrough
CT: control target
= control target key end

     0   :  { %s929_s1 = inlined_call_operand.vmem [shape: f32[256,128], index: 1, kind: input, shape index: {}]   ;;  %s930_s0 = inlined_call_operand.vmem [shape: f32[128,256], index: 0, kind: input, shape index: {}]   ;;  %s931_s2 = inlined_call_operand.vmem [shape: f32[1,128], index: 2, kind: input, shape index: {}]   ;;  %s932_s3 = inlined_call_operand.vmem [shape: f32[1,128], index: 3, kind: input, shape index: {}]   ;;  %s933_s4 = inlined_call_operand.vmem [shape: f32[128,128], index: 4, kind: output, shape index: {}]  }
   0x1   :  { %v80_v0 = vld [vmem:[%s929_s1 + $0xf8] sm:$0xff]  ;;  %v79_v2 = vld [vmem:[%s929_s1 + $0xf0] sm:$0xff]  ;;  %v78_v4 = vld [vmem:[%s929_s1 + $0xe8] sm:$0xff] }
   0x2   :  { %v64_v1 = vld [vmem:[%s929_s1 + $0x78] sm:$0xff]  ;;  %438 = vmatprep.subr.mxu0 %v80_v0  ;;  %v63_v3 = vld [vmem:[%s929_s1 + $0x70] sm:$0xff]  ;;  %518 = vmatprep.subr.mxu1 %v80_v0  ;;  %v62_v5 = vld [vmem:[%s929_s1 + $0x68] sm:$0xff] }
   0x3   :  { %439 = vmatpush3.msra.mxu0 %v64_v1  ;;  %534 = vmatpush3.msra.mxu1 %v64_v1  ;;  %v77_v6 = vld [vmem:[%s929_s1 + $0xe0] sm:$0xff]  ;;  %v76_v8 = vld [vmem:[%s929_s1 + $0xd8] sm:$0xff]  ;;  %v75_v10 = vld [vmem:[%s929_s1 + $0xd0] sm:$0xff] }
   0x4   :  { %440 = vmatprep.subr.mxu0 %v79_v2  ;;  %519 = vmatprep.subr.mxu1 %v79_v2  ;;  %v61_v7 = vld [vmem:[%s929_s1 + $0x60] sm:$0xff]  ;;  %v60_v9 = vld [vmem:[%s929_s1 + $0x58] sm:$0xff]  ;;  %v59_v11 = vld [vmem:[%s929_s1 + $0x50] sm:$0xff] }
   0x5   :  { %441 = vmatpush3.msra.mxu0 %v63_v3  ;;  %535 = vmatpush3.msra.mxu1 %v63_v3  ;;  %v74_v12 = vld [vmem:[%s929_s1 + $0xc8] sm:$0xff]  ;;  %v73_v14 = vld [vmem:[%s929_s1 + $0xc0] sm:$0xff]  ;;  %v72_v16 = vld [vmem:[%s929_s1 + $0xb8] sm:$0xff] }
   0x6   :  { %442 = vmatprep.subr.mxu0 %v78_v4  ;;  %520 = vmatprep.subr.mxu1 %v78_v4  ;;  %v58_v13 = vld [vmem:[%s929_s1 + $0x48] sm:$0xff]  ;;  %v57_v15 = vld [vmem:[%s929_s1 + $0x40] sm:$0xff]  ;;  %v56_v17 = vld [vmem:[%s929_s1 + $0x38] sm:$0xff] }
   0x7   :  { %443 = vmatpush3.msra.mxu0 %v62_v5  ;;  %536 = vmatpush3.msra.mxu1 %v62_v5  ;;  %v71_v18 = vld [vmem:[%s929_s1 + $0xb0] sm:$0xff]  ;;  %v18_v19 = vld [vmem:[%s930_s0 + $0x8] sm:$0xff]  ;;  %v69_v23 = vld [vmem:[%s929_s1 + $0xa0] sm:$0xff] }
   0x8   :  { %444 = vmatprep.subr.mxu0 %v77_v6  ;;  %521 = vmatprep.subr.mxu1 %v77_v6  ;;  %v55_v20 = vld [vmem:[%s929_s1 + $0x30] sm:$0xff]  ;;  %v70_v21 = vld [vmem:[%s929_s1 + $0xa8] sm:$0xff]  ;;  %v53_v24 = vld [vmem:[%s929_s1 + $0x20] sm:$0xff] }
   0x9   :  { %445 = vmatpush3.msra.mxu0 %v61_v7  ;;  %537 = vmatpush3.msra.mxu1 %v61_v7  ;;  %v54_v22 = vld [vmem:[%s929_s1 + $0x28] sm:$0xff]  ;;  %v68_v25 = vld [vmem:[%s929_s1 + $0x98] sm:$0xff]  ;;  %v67_v27 = vld [vmem:[%s929_s1 + $0x90] sm:$0xff] }
   0xa   :  { %446 = vmatprep.subr.mxu0 %v76_v8  ;;  %522 = vmatprep.subr.mxu1 %v76_v8  ;;  %v52_v26 = vld [vmem:[%s929_s1 + $0x18] sm:$0xff]  ;;  %v51_v28 = vld [vmem:[%s929_s1 + $0x10] sm:$0xff]  ;;  %v66_v29 = vld [vmem:[%s929_s1 + $0x88] sm:$0xff] }
   0xb   :  { %447 = vmatpush3.msra.mxu0 %v60_v9  ;;  %538 = vmatpush3.msra.mxu1 %v60_v9  ;;  %v50_v30 = vld [vmem:[%s929_s1 + $0x8] sm:$0xff]  ;;  %v65_v31 = vld [vmem:[%s929_s1 + $0x80] sm:$0xff]  ;;  %v20_v34 = vld [vmem:[%s930_s0 + $0x18] sm:$0xff] }
   0xc   :  { %448 = vmatprep.subr.mxu0 %v75_v10  ;;  %523 = vmatprep.subr.mxu1 %v75_v10  ;;  %v49_v32 = vld [vmem:[%s929_s1] sm:$0xff]  ;;  %v34_v35 = vld [vmem:[%s930_s0 + $0x88] sm:$0xff]  ;;  %v36_v37 = vld [vmem:[%s930_s0 + $0x98] sm:$0xff] }
   0xd   :  { %449 = vmatpush3.msra.mxu0 %v59_v11  ;;  %539 = vmatpush3.msra.mxu1 %v59_v11  ;;  %v17_v33 = vld [vmem:[%s930_s0] sm:$0xff]  ;;  %v19_v38 = vld [vmem:[%s930_s0 + $0x10] sm:$0xff]  ;;  %v22_v39 = vld [vmem:[%s930_s0 + $0x28] sm:$0xff] }
   0xe   :  { %450 = vmatprep.subr.mxu0 %v74_v12  ;;  %524 = vmatprep.subr.mxu1 %v74_v12  ;;  %v33_v36 = vld [vmem:[%s930_s0 + $0x80] sm:$0xff]  ;;  %v35_v40 = vld [vmem:[%s930_s0 + $0x90] sm:$0xff]  ;;  %v38_v41 = vld [vmem:[%s930_s0 + $0xa8] sm:$0xff] }
   0xf   :  { %451 = vmatpush3.msra.mxu0 %v58_v13  ;;  %540 = vmatpush3.msra.mxu1 %v58_v13  ;;  %v21_v42 = vld [vmem:[%s930_s0 + $0x20] sm:$0xff]  ;;  %v24_v43 = vld [vmem:[%s930_s0 + $0x38] sm:$0xff]  ;;  %v23_v46 = vld [vmem:[%s930_s0 + $0x30] sm:$0xff] }
  0x10   :  { %452 = vmatprep.subr.mxu0 %v73_v14  ;;  %525 = vmatprep.subr.mxu1 %v73_v14  ;;  %v37_v44 = vld [vmem:[%s930_s0 + $0xa0] sm:$0xff]  ;;  %v40_v45 = vld [vmem:[%s930_s0 + $0xb8] sm:$0xff]  ;;  %v26_v47 = vld [vmem:[%s930_s0 + $0x48] sm:$0xff] }
  0x11   :  { %453 = vmatpush3.msra.mxu0 %v57_v15  ;;  %541 = vmatpush3.msra.mxu1 %v57_v15  ;;  %v39_v48 = vld [vmem:[%s930_s0 + $0xb0] sm:$0xff]  ;;  %v42_v49 = vld [vmem:[%s930_s0 + $0xc8] sm:$0xff]  ;;  %v25_v50 = vld [vmem:[%s930_s0 + $0x40] sm:$0xff] }
  0x12   :  { %454 = vmatprep.subr.mxu0 %v72_v16  ;;  %526 = vmatprep.subr.mxu1 %v72_v16  ;;  %v28_v51 = vld [vmem:[%s930_s0 + $0x58] sm:$0xff]  ;;  %v41_v52 = vld [vmem:[%s930_s0 + $0xc0] sm:$0xff]  ;;  %v27_v54 = vld [vmem:[%s930_s0 + $0x50] sm:$0xff] }
  0x13   :  { %455 = vmatpush3.msra.mxu0 %v56_v17  ;;  %542 = vmatpush3.msra.mxu1 %v56_v17  ;;  %v44_v53 = vld [vmem:[%s930_s0 + $0xd8] sm:$0xff]  ;;  %v30_v55 = vld [vmem:[%s930_s0 + $0x68] sm:$0xff]  ;;  %v43_v56 = vld [vmem:[%s930_s0 + $0xd0] sm:$0xff] }
  0x14   :  { %456 = vmatprep.subr.mxu0 %v71_v18  ;;  %145 = vmatprep.mubr.f32.mxu0 %v18_v19  ;;  %v46_v57 = vld [vmem:[%s930_s0 + $0xe8] sm:$0xff]  ;;  %v29_v58 = vld [vmem:[%s930_s0 + $0x60] sm:$0xff]  ;;  %v32_v59 = vld [vmem:[%s930_s0 + $0x78] sm:$0xff] }
  0x15   :  { %457 = vmatpush3.msra.mxu0 %v55_v20  ;;  %527 = vmatprep.subr.mxu1 %v71_v18  ;;  %v45_v60 = vld [vmem:[%s930_s0 + $0xe0] sm:$0xff]  ;;  %v48_v61 = vld [vmem:[%s930_s0 + $0xf8] sm:$0xff]  ;;  %v31_v62 = vld [vmem:[%s930_s0 + $0x70] sm:$0xff] }
  0x16   :  { %458 = vmatprep.subr.mxu0 %v70_v21  ;;  %543 = vmatpush3.msra.mxu1 %v55_v20  ;;  %v47_v63 = vld [vmem:[%s930_s0 + $0xf0] sm:$0xff] }
  0x17   :  { %459 = vmatpush3.msra.mxu0 %v54_v22  ;;  %528 = vmatprep.subr.mxu1 %v70_v21 }
  0x18   :  { %460 = vmatprep.subr.mxu0 %v69_v23  ;;  %544 = vmatpush3.msra.mxu1 %v54_v22 }
  0x19   :  { %461 = vmatpush3.msra.mxu0 %v53_v24  ;;  %529 = vmatprep.subr.mxu1 %v69_v23 }
  0x1a   :  { %462 = vmatprep.subr.mxu0 %v68_v25  ;;  %545 = vmatpush3.msra.mxu1 %v53_v24 }
  0x1b   :  { %463 = vmatpush3.msra.mxu0 %v52_v26  ;;  %530 = vmatprep.subr.mxu1 %v68_v25 }
  0x1c   :  { %464 = vmatprep.subr.mxu0 %v67_v27  ;;  %546 = vmatpush3.msra.mxu1 %v52_v26 }
  0x1d   :  { %465 = vmatpush3.msra.mxu0 %v51_v28  ;;  %531 = vmatprep.subr.mxu1 %v67_v27 }
  0x1e   :  { %466 = vmatprep.subr.mxu0 %v66_v29  ;;  %547 = vmatpush3.msra.mxu1 %v51_v28 }
  0x1f   :  { %467 = vmatpush3.msra.mxu0 %v50_v30  ;;  %532 = vmatprep.subr.mxu1 %v66_v29 }
  0x20   :  { %468 = vmatprep.subr.mxu0 %v65_v31  ;;  %548 = vmatpush3.msra.mxu1 %v50_v30 }
  0x21   :  { %469 = vmatpush3.msra.mxu0 %v49_v32  ;;  %533 = vmatprep.subr.mxu1 %v65_v31 }
  0x22   :  { %146 = vmatmul.mubr.f32.vlgmr.msra.gmra.mxu0 %v17_v33  ;;  %549 = vmatpush3.msra.mxu1 %v49_v32 }
  0x23   :  { %150 = vmatprep.mubr.f32.mxu0 %v20_v34  ;;  %185 = vmatprep.mubr.f32.mxu1 %v34_v35 }
  0x24   :  { %186 = vmatmul.mubr.f32.vlgmr.msra.gmra.mxu1 %v33_v36 }
  0x25   :  { %190 = vmatprep.mubr.f32.mxu1 %v36_v37 }
  0x26   :  { %151 = vmatmul.mubr.f32.gmra.mxu0 %v19_v38 }
  0x27   :  { %155 = vmatprep.mubr.f32.mxu0 %v22_v39 }
  0x28   :  { %191 = vmatmul.mubr.f32.gmra.mxu1 %v35_v40 }
  0x29   :  { %195 = vmatprep.mubr.f32.mxu1 %v38_v41 }
  0x2a   :  { %156 = vmatmul.mubr.f32.gmra.mxu0 %v21_v42 }
  0x2b   :  { %160 = vmatprep.mubr.f32.mxu0 %v24_v43 }
  0x2c   :  { %196 = vmatmul.mubr.f32.gmra.mxu1 %v37_v44 }
  0x2d   :  { %200 = vmatprep.mubr.f32.mxu1 %v40_v45 }
  0x2e   :  { %161 = vmatmul.mubr.f32.gmra.mxu0 %v23_v46 }
  0x2f   :  { %165 = vmatprep.mubr.f32.mxu0 %v26_v47 }
  0x30   :  { %201 = vmatmul.mubr.f32.gmra.mxu1 %v39_v48 }
  0x31   :  { %205 = vmatprep.mubr.f32.mxu1 %v42_v49 }
  0x32   :  { %166 = vmatmul.mubr.f32.gmra.mxu0 %v25_v50 }
  0x33   :  { %170 = vmatprep.mubr.f32.mxu0 %v28_v51 }
  0x34   :  { %206 = vmatmul.mubr.f32.gmra.mxu1 %v41_v52 }
  0x35   :  { %210 = vmatprep.mubr.f32.mxu1 %v44_v53 }
  0x36   :  { %171 = vmatmul.mubr.f32.gmra.mxu0 %v27_v54 }
  0x37   :  { %175 = vmatprep.mubr.f32.mxu0 %v30_v55 }
  0x38   :  { %211 = vmatmul.mubr.f32.gmra.mxu1 %v43_v56 }
  0x39   :  { %215 = vmatprep.mubr.f32.mxu1 %v46_v57 }
  0x3a   :  { %176 = vmatmul.mubr.f32.gmra.mxu0 %v29_v58 }
  0x3b   :  { %180 = vmatprep.mubr.f32.mxu0 %v32_v59 }
  0x3c   :  { %216 = vmatmul.mubr.f32.gmra.mxu1 %v45_v60 }
  0x3d   :  { %220 = vmatprep.mubr.f32.mxu1 %v48_v61 }
  0x3e   :  { %181 = vmatmul.mubr.f32.gmra.mxu0 %v31_v62 }
  0x40   :  { %221 = vmatmul.mubr.f32.gmra.mxu1 %v47_v63 }
  0xe2   :  { %v470_v0 = vpop.f32.mrf.mxu0 }
  0xe4   :  { %v471_v1 = vpop.f32.mrf.mxu0  ;;  %v494_v2 = vpop.f32.mrf.mxu1 }
  0xe5   :  { %v771_v18 = vadd.f32 %v471_v1, %v470_v0 }
  0xe6   :  { %v473_v3 = vpop.f32.mrf.mxu0  ;;  %v495_v4 = vpop.f32.mrf.mxu1 }
  0xe7   :  { %v248_v26 = vmul.f32 %v771_v18, %v771_v18  ;;  %v803_v52 = vadd.f32 %v495_v4, %v494_v2 }
  0xe8   :  { %v474_v5 = vpop.f32.mrf.mxu0  ;;  %v497_v6 = vpop.f32.mrf.mxu1 }
  0xe9   :  { %v769_v15 = vadd.f32 %v474_v5, %v473_v3  ;;  %v256_v61 = vmul.f32 %v803_v52, %v803_v52 }
  0xea   :  { %v476_v7 = vpop.f32.mrf.mxu0  ;;  %v498_v8 = vpop.f32.mrf.mxu1 }
  0xeb   :  { %v249_v22 = vmul.f32 %v769_v15, %v769_v15  ;;  %v226_v27 = vadd.f32 %v769_v15, %v771_v18  ;;  %v808_v56 = vadd.f32 %v498_v8, %v497_v6 }
  0xec   :  { %v477_v9 = vpop.f32.mrf.mxu0  ;;  %v500_v10 = vpop.f32.mrf.mxu1 }
  0xed   :  { %v773_v19 = vadd.f32 %v477_v9, %v476_v7  ;;  %v264_v32 = vadd.f32 %v249_v22, %v248_v26  ;;  %v257_v1 = vmul.f32 %v808_v56, %v808_v56 }
  0xee   :  { %v479_v11 = vpop.f32.mrf.mxu0  ;;  %v501_v12 = vpop.f32.mrf.mxu1 }
  0xef   :  { %v250_v28 = vmul.f32 %v773_v19, %v773_v19  ;;  %v227_v33 = vadd.f32 %v773_v19, %v226_v27  ;;  %v815_v62 = vadd.f32 %v501_v12, %v500_v10 }
  0xf0   :  { %v480_v13 = vpop.f32.mrf.mxu0  ;;  %v503_v14 = vpop.f32.mrf.mxu1 }
  0xf1   :  { %v777_v23 = vadd.f32 %v480_v13, %v479_v11  ;;  %v265_v37 = vadd.f32 %v264_v32, %v250_v28  ;;  %v258_v6 = vmul.f32 %v815_v62, %v815_v62 }
  0xf2   :  { %v482_v16 = vpop.f32.mrf.mxu0  ;;  %v504_v17 = vpop.f32.mrf.mxu1 }
  0xf3   :  { %v251_v34 = vmul.f32 %v777_v23, %v777_v23  ;;  %v228_v38 = vadd.f32 %v777_v23, %v227_v33  ;;  %v820_v2 = vadd.f32 %v504_v17, %v503_v14 }
  0xf4   :  { %v483_v20 = vpop.f32.mrf.mxu0  ;;  %v506_v21 = vpop.f32.mrf.mxu1 }
  0xf5   :  { %v785_v29 = vadd.f32 %v483_v20, %v482_v16  ;;  %v266_v42 = vadd.f32 %v265_v37, %v251_v34  ;;  %v259_v10 = vmul.f32 %v820_v2, %v820_v2 }
  0xf6   :  { %v485_v24 = vpop.f32.mrf.mxu0  ;;  %v507_v25 = vpop.f32.mrf.mxu1 }
  0xf7   :  { %v252_v39 = vmul.f32 %v785_v29, %v785_v29  ;;  %v229_v43 = vadd.f32 %v785_v29, %v228_v38  ;;  %v825_v8 = vadd.f32 %v507_v25, %v506_v21 }
  0xf8   :  { %v486_v30 = vpop.f32.mrf.mxu0  ;;  %v509_v31 = vpop.f32.mrf.mxu1 }
  0xf9   :  { %v790_v35 = vadd.f32 %v486_v30, %v485_v24  ;;  %v267_v47 = vadd.f32 %v266_v42, %v252_v39  ;;  %v260_v17 = vmul.f32 %v825_v8, %v825_v8 }
  0xfa   :  { %v488_v36 = vpop.f32.mrf.mxu0  ;;  %v510_v41 = vpop.f32.mrf.mxu1 }
  0xfb   :  { %v253_v44 = vmul.f32 %v790_v35, %v790_v35  ;;  %v230_v48 = vadd.f32 %v790_v35, %v229_v43  ;;  %v831_v13 = vadd.f32 %v510_v41, %v509_v31 }
  0xfc   :  { %v489_v40 = vpop.f32.mrf.mxu0  ;;  %v512_v51 = vpop.f32.mrf.mxu1 }
  0xfd   :  { %v798_v45 = vadd.f32 %v489_v40, %v488_v36  ;;  %v268_v53 = vadd.f32 %v267_v47, %v253_v44  ;;  %v261_v25 = vmul.f32 %v831_v13, %v831_v13 }
  0xfe   :  { %v491_v46 = vpop.f32.mrf.mxu0  ;;  %v513_v60 = vpop.f32.mrf.mxu1 }
  0xff   :  { %v254_v49 = vmul.f32 %v798_v45, %v798_v45  ;;  %v231_v54 = vadd.f32 %v798_v45, %v230_v48  ;;  %v836_v22 = vadd.f32 %v513_v60, %v512_v51 }
 0x100   :  { %v492_v50 = vpop.f32.mrf.mxu0  ;;  %v515_v5 = vpop.f32.mrf.mxu1 }
 0x101   :  { %v806_v55 = vadd.f32 %v492_v50, %v491_v46  ;;  %v269_v57 = vadd.f32 %v268_v53, %v254_v49  ;;  %v262_v30 = vmul.f32 %v836_v22, %v836_v22 }
 0x102   :  { %v516_v14 = vpop.f32.mrf.mxu1 }
 0x103   :  { %v232_v58 = vadd.f32 %v806_v55, %v231_v54  ;;  %v255_v59 = vmul.f32 %v806_v55, %v806_v55  ;;  %v517_v26 = vadd.f32 %v516_v14, %v515_v5 }
 0x105   :  { %v233_v63 = vadd.f32 %v803_v52, %v232_v58  ;;  %v270_v0 = vadd.f32 %v269_v57, %v255_v59  ;;  %v263_v33 = vmul.f32 %v517_v26, %v517_v26 }
 0x107   :  { %v234_v3 = vadd.f32 %v808_v56, %v233_v63  ;;  %v271_v4 = vadd.f32 %v270_v0, %v256_v61 }
 0x109   :  { %v272_v7 = vadd.f32 %v271_v4, %v257_v1  ;;  %v235_v9 = vadd.f32 %v815_v62, %v234_v3 }
 0x10b   :  { %v236_v11 = vadd.f32 %v820_v2, %v235_v9  ;;  %v273_v12 = vadd.f32 %v272_v7, %v258_v6 }
 0x10d   :  { %v237_v16 = vadd.f32 %v825_v8, %v236_v11  ;;  %v274_v20 = vadd.f32 %v273_v12, %v259_v10 }
 0x10f   :  { %v275_v21 = vadd.f32 %v274_v20, %v260_v17  ;;  %v238_v24 = vadd.f32 %v831_v13, %v237_v16 }
 0x111   :  { %v276_v27 = vadd.f32 %v275_v21, %v261_v25  ;;  %v239_v28 = vadd.f32 %v836_v22, %v238_v24 }
 0x113   :  { %v277_v31 = vadd.f32 %v276_v27, %v262_v30  ;;  %v240_v32 = vadd.f32 %v517_v26, %v239_v28  ;;  %v437_v30 = vld [vmem:[%s932_s3] ss:$0 sm:$0xff] }
 0x115   :  { %v241_v34 = vrot.slane %v240_v32, 4  ;;  %v278_v36 = vadd.f32 %v277_v31, %v263_v33 }
 0x117   :  { %v242_v37 = vadd.f32 %v241_v34, %v240_v32  ;;  %v279_v38 = vrot.slane %v278_v36, 4 }
 0x119   :  { %v243_v39 = vrot.slane %v242_v37, 2  ;;  %v280_v40 = vadd.f32 %v279_v38, %v278_v36 }
 0x11b   :  { %v244_v41 = vadd.f32 %v243_v39, %v242_v37  ;;  %v281_v42 = vrot.slane %v280_v40, 2 }
 0x11d   :  { %v245_v43 = vrot.slane %v244_v41, 1  ;;  %v282_v44 = vadd.f32 %v281_v42, %v280_v40 }
 0x11f   :  { %v246_v46 = vadd.f32 %v245_v43, %v244_v41  ;;  %v283_v47 = vrot.slane %v282_v44, 1 }
 0x121   :  { %v247_v48 = vmul.f32 0.0078125, %v246_v46  ;;  %v284_v49 = vadd.f32 %v283_v47, %v282_v44 }
 0x123   :  { %v285_v50 = vmul.f32 0.0078125, %v284_v49  ;;  %v286_v51 = vmul.f32 %v247_v48, %v247_v48  ;;  %v288_v57 = vsub.f32 %v771_v18, %v247_v48  ;;  %v289_v58 = vsub.f32 %v769_v15, %v247_v48 }
 0x124   :  { %v290_v59 = vsub.f32 %v773_v19, %v247_v48  ;;  %v291_v60 = vsub.f32 %v777_v23, %v247_v48  ;;  %v292_v61 = vsub.f32 %v785_v29, %v247_v48  ;;  %v293_v63 = vsub.f32 %v790_v35, %v247_v48 }
 0x125   :  { %v287_v53 = vsub.f32 %v285_v50, %v286_v51  ;;  %v294_v0 = vsub.f32 %v798_v45, %v247_v48  ;;  %v295_v1 = vsub.f32 %v806_v55, %v247_v48  ;;  %v296_v3 = vsub.f32 %v803_v52, %v247_v48 }
 0x126   :  { %v297_v4 = vsub.f32 %v808_v56, %v247_v48  ;;  %v298_v18 = vsub.f32 %v815_v62, %v247_v48  ;;  %v299_v15 = vsub.f32 %v820_v2, %v247_v48  ;;  %v300_v19 = vsub.f32 %v825_v8, %v247_v48  ;;  %v436_v62 = vld [vmem:[%s931_s2] ss:$0 sm:$0xff] }
 0x127   :  { %v304_v54 = vadd.f32 1e-05, %v287_v53  ;;  %v301_v23 = vsub.f32 %v831_v13, %v247_v48  ;;  %v302_v29 = vsub.f32 %v836_v22, %v247_v48  ;;  %v303_v35 = vsub.f32 %v517_v26, %v247_v48 }
 0x129   :  { %550 = vrsqrt.f32 %v304_v54 }
 0x136   :  { %v551_v5 = vpop.eup %550 }
 0x137   :  { %v306_v6 = vmul.f32 %v551_v5, %v288_v57  ;;  %v307_v45 = vmul.f32 %v551_v5, %v289_v58  ;;  %v308_v7 = vmul.f32 %v551_v5, %v290_v59  ;;  %v309_v55 = vmul.f32 %v551_v5, %v291_v60 }
 0x138   :  { %v310_v9 = vmul.f32 %v551_v5, %v292_v61  ;;  %v311_v52 = vmul.f32 %v551_v5, %v293_v63  ;;  %v312_v10 = vmul.f32 %v551_v5, %v294_v0  ;;  %v313_v56 = vmul.f32 %v551_v5, %v295_v1 }
 0x139   :  { %v314_v2 = vmul.f32 %v551_v5, %v296_v3  ;;  %v315_v11 = vmul.f32 %v551_v5, %v297_v4  ;;  %v316_v8 = vmul.f32 %v551_v5, %v298_v18  ;;  %v317_v12 = vmul.f32 %v551_v5, %v299_v15 }
 0x13a   :  { %v318_v13 = vmul.f32 %v551_v5, %v300_v19  ;;  %v319_v14 = vmul.f32 %v551_v5, %v301_v23  ;;  %v320_v16 = vmul.f32 %v551_v5, %v302_v29  ;;  %v321_v17 = vmul.f32 %v551_v5, %v303_v35 }
 0x13b   :  { %v329_v20 = vmul.f32 %v436_v62, %v306_v6  ;;  %v330_v22 = vmul.f32 %v436_v62, %v307_v45  ;;  %v331_v21 = vmul.f32 %v436_v62, %v308_v7  ;;  %v332_v24 = vmul.f32 %v436_v62, %v309_v55 }
 0x13c   :  { %v333_v25 = vmul.f32 %v436_v62, %v310_v9  ;;  %v334_v26 = vmul.f32 %v436_v62, %v311_v52  ;;  %v335_v27 = vmul.f32 %v436_v62, %v312_v10  ;;  %v336_v28 = vmul.f32 %v436_v62, %v313_v56 }
 0x13d   :  { %v337_v31 = vmul.f32 %v436_v62, %v314_v2  ;;  %v338_v32 = vmul.f32 %v436_v62, %v315_v11  ;;  %v339_v33 = vmul.f32 %v436_v62, %v316_v8  ;;  %v340_v34 = vmul.f32 %v436_v62, %v317_v12 }
 0x13e   :  { %v341_v36 = vmul.f32 %v436_v62, %v318_v13  ;;  %v342_v37 = vmul.f32 %v436_v62, %v319_v14  ;;  %v343_v38 = vmul.f32 %v436_v62, %v320_v16  ;;  %v344_v39 = vmul.f32 %v436_v62, %v321_v17 }
 0x13f   :  { %v352_v40 = vadd.f32 %v437_v30, %v329_v20  ;;  %v353_v41 = vadd.f32 %v437_v30, %v330_v22  ;;  %v354_v42 = vadd.f32 %v437_v30, %v331_v21  ;;  %v355_v43 = vadd.f32 %v437_v30, %v332_v24 }
 0x140   :  { %v356_v44 = vadd.f32 %v437_v30, %v333_v25  ;;  %v357_v46 = vadd.f32 %v437_v30, %v334_v26  ;;  %v358_v47 = vadd.f32 %v437_v30, %v335_v27  ;;  %v359_v48 = vadd.f32 %v437_v30, %v336_v28 }
 0x141   :  { %v360_v49 = vadd.f32 %v437_v30, %v337_v31  ;;  %v361_v50 = vadd.f32 %v437_v30, %v338_v32  ;;  %v362_v51 = vadd.f32 %v437_v30, %v339_v33  ;;  %v363_v53 = vadd.f32 %v437_v30, %v340_v34 }
 0x142   :  { %v364_v54 = vadd.f32 %v437_v30, %v341_v36  ;;  %v365_v57 = vadd.f32 %v437_v30, %v342_v37  ;;  %v366_v58 = vadd.f32 %v437_v30, %v343_v38  ;;  %v367_v59 = vadd.f32 %v437_v30, %v344_v39 }
 0x143   :  { %vm368_vm0 = vcmp.ge.f32.partialorder %v352_v40, 0.0  ;;  %vm369_vm1 = vcmp.ge.f32.partialorder %v353_v41, 0.0  ;;  %vm370_vm2 = vcmp.ge.f32.partialorder %v354_v42, 0.0  ;;  %vm371_vm3 = vcmp.ge.f32.partialorder %v355_v43, 0.0 }
 0x144   :  { %vm372_vm4 = vcmp.ge.f32.partialorder %v356_v44, 0.0  ;;  %vm373_vm5 = vcmp.ge.f32.partialorder %v357_v46, 0.0  ;;  %vm374_vm6 = vcmp.ge.f32.partialorder %v358_v47, 0.0  ;;  %vm375_vm7 = vcmp.ge.f32.partialorder %v359_v48, 0.0 }
 0x145   :  { %vm376_vm8 = vcmp.ge.f32.partialorder %v360_v49, 0.0  ;;  %vm377_vm9 = vcmp.ge.f32.partialorder %v361_v50, 0.0  ;;  %vm378_vm10 = vcmp.ge.f32.partialorder %v362_v51, 0.0  ;;  %vm379_vm11 = vcmp.ge.f32.partialorder %v363_v53, 0.0 }
 0x146   :  { %vm380_vm12 = vcmp.ge.f32.partialorder %v364_v54, 0.0  ;;  %vm381_vm13 = vcmp.ge.f32.partialorder %v365_v57, 0.0  ;;  %vm382_vm14 = vcmp.ge.f32.partialorder %v366_v58, 0.0  ;;  %vm383_vm15 = vcmp.ge.f32.partialorder %v367_v59, 0.0 }
 0x147   :  { %v384_v60 = vmul.f32 0.002, %v352_v40  ;;  %v385_v61 = vmul.f32 0.002, %v353_v41  ;;  %v386_v63 = vmul.f32 0.002, %v354_v42 }
 0x148   :  { %v387_v0 = vmul.f32 0.002, %v355_v43  ;;  %v388_v1 = vmul.f32 0.002, %v356_v44  ;;  %v389_v3 = vmul.f32 0.002, %v357_v46 }
 0x149   :  { %v390_v4 = vmul.f32 0.002, %v358_v47  ;;  %v391_v18 = vmul.f32 0.002, %v359_v48  ;;  %v392_v15 = vmul.f32 0.002, %v360_v49  ;;  %v400_v5 = vsel %vm368_vm0, %v352_v40, %v384_v60 }
 0x14a   :  { %v393_v19 = vmul.f32 0.002, %v361_v50  ;;  %v394_v23 = vmul.f32 0.002, %v362_v51  ;;  %v395_v29 = vmul.f32 0.002, %v363_v53  ;;  %v401_v35 = vsel %vm369_vm1, %v353_v41, %v385_v61  ;;  %416 = vst [vmem:[%s933_s4] sm:$0xff] %v400_v5 }
 0x14b   :  { %v396_v6 = vmul.f32 0.002, %v364_v54  ;;  %v397_v45 = vmul.f32 0.002, %v365_v57  ;;  %v398_v7 = vmul.f32 0.002, %v366_v58  ;;  %v402_v55 = vsel %vm370_vm2, %v354_v42, %v386_v63 }
 0x14c   :  { %417 = vst [vmem:[%s933_s4 + $0x8] sm:$0xff] %v401_v35  ;;  %v399_v9 = vmul.f32 0.002, %v367_v59  ;;  %v403_v52 = vsel %vm371_vm3, %v355_v43, %v387_v0  ;;  %v404_v10 = vsel %vm372_vm4, %v356_v44, %v388_v1  ;;  %v405_v56 = vsel %vm373_vm5, %v357_v46, %v389_v3  ;;  %418 = vst [vmem:[%s933_s4 + $0x10] sm:$0xff] %v402_v55 }
 0x14d   :  { %v406_v62 = vsel %vm374_vm6, %v358_v47, %v390_v4  ;;  %v407_v2 = vsel %vm375_vm7, %v359_v48, %v391_v18  ;;  %v408_v11 = vsel %vm376_vm8, %v360_v49, %v392_v15  ;;  %v409_v8 = vsel %vm377_vm9, %v361_v50, %v393_v19  ;;  %419 = vst [vmem:[%s933_s4 + $0x18] sm:$0xff] %v403_v52 }
 0x14e   :  { %420 = vst [vmem:[%s933_s4 + $0x20] sm:$0xff] %v404_v10  ;;  %421 = vst [vmem:[%s933_s4 + $0x28] sm:$0xff] %v405_v56  ;;  %v410_v12 = vsel %vm378_vm10, %v362_v51, %v394_v23  ;;  %v411_v13 = vsel %vm379_vm11, %v363_v53, %v395_v29  ;;  %v412_v14 = vsel %vm380_vm12, %v364_v54, %v396_v6 }
 0x14f   :  { %v413_v16 = vsel %vm381_vm13, %v365_v57, %v397_v45  ;;  %422 = vst [vmem:[%s933_s4 + $0x30] sm:$0xff] %v406_v62  ;;  %423 = vst [vmem:[%s933_s4 + $0x38] sm:$0xff] %v407_v2  ;;  %v414_v17 = vsel %vm382_vm14, %v366_v58, %v398_v7  ;;  %v415_v20 = vsel %vm383_vm15, %v367_v59, %v399_v9 }
 0x150   :  { %424 = vst [vmem:[%s933_s4 + $0x40] sm:$0xff] %v408_v11  ;;  %425 = vst [vmem:[%s933_s4 + $0x48] sm:$0xff] %v409_v8 }
 0x151   :  { %426 = vst [vmem:[%s933_s4 + $0x50] sm:$0xff] %v410_v12  ;;  %427 = vst [vmem:[%s933_s4 + $0x58] sm:$0xff] %v411_v13 }
 0x152   :  { %428 = vst [vmem:[%s933_s4 + $0x60] sm:$0xff] %v412_v14  ;;  %429 = vst [vmem:[%s933_s4 + $0x68] sm:$0xff] %v413_v16 }
 0x153   :  { %430 = vst [vmem:[%s933_s4 + $0x70] sm:$0xff] %v414_v17  ;;  %431 = vst [vmem:[%s933_s4 + $0x78] sm:$0xff] %v415_v20 }

// kernel: discriminator_forward.5
= control target key start
LH: loop header
LB: loop body
LE: loop exit
PB: predicated region body
PF: predicated region fallthrough
CT: control target
= control target key end

     0   :  { %vm559_vm0 = vmmov 0   ;;  %vm352_vm5 = vcmask 261120   ;;  %vm426_vm6 = vcmask 1041408   ;;  %vm436_vm7 = vcmask 1024   ;;  %s864_s1 = inlined_call_operand.vmem [shape: f32[512,128], index: 1, kind: input, shape index: {}]   ;;  %s865_s0 = inlined_call_operand.vmem [shape: f32[32,512], index: 0, kind: input, shape index: {}]   ;;  %s866_s2 = inlined_call_operand.vmem [shape: f32[1,128], index: 2, kind: input, shape index: {}]   ;;  %s867_s3 = inlined_call_operand.vmem [shape: f32[1,128], index: 3, kind: input, shape index: {}]   ;;  %s868_s4 = inlined_call_operand.vmem [shape: f32[32,128], index: 4, kind: input, shape index: {}]   ;;  %s869_s5 = inlined_call_operand.vmem [shape: f32[2,32], index: 5, kind: input, shape index: {}]   ;;  %s870_s6 = inlined_call_operand.vmem [shape: f32[2,1], index: 6, kind: output, shape index: {}]  }
   0x1   :  { %v70_v0 = vld [vmem:[%s864_s1 + $0xf8] sm:$0xff]  ;;  %v69_v4 = vld [vmem:[%s864_s1 + $0xf0] sm:$0xff]  ;;  %v68_v8 = vld [vmem:[%s864_s1 + $0xe8] sm:$0xff] }
   0x2   :  { %v102_v1 = vld [vmem:[%s864_s1 + $0x1f8] sm:$0xff]  ;;  %446 = vmatprep.subr.mxu0 %v70_v0  ;;  %v101_v5 = vld [vmem:[%s864_s1 + $0x1f0] sm:$0xff]  ;;  %v100_v9 = vld [vmem:[%s864_s1 + $0x1e8] sm:$0xff] }
   0x3   :  { %v54_v2 = vld [vmem:[%s864_s1 + $0x78] sm:$0xff]  ;;  %490 = vmatprep.subr.mxu1 %v102_v1  ;;  %v53_v6 = vld [vmem:[%s864_s1 + $0x70] sm:$0xff]  ;;  %v52_v10 = vld [vmem:[%s864_s1 + $0x68] sm:$0xff] }
   0x4   :  { %v86_v3 = vld [vmem:[%s864_s1 + $0x178] sm:$0xff]  ;;  %447 = vmatpush3.msra.mxu0 %v54_v2  ;;  %v85_v7 = vld [vmem:[%s864_s1 + $0x170] sm:$0xff]  ;;  %v84_v11 = vld [vmem:[%s864_s1 + $0x168] sm:$0xff] }
   0x5   :  { %491 = vmatpush3.msra.mxu1 %v86_v3  ;;  %448 = vmatprep.subr.mxu0 %v69_v4  ;;  %v67_v12 = vld [vmem:[%s864_s1 + $0xe0] sm:$0xff]  ;;  %v66_v16 = vld [vmem:[%s864_s1 + $0xd8] sm:$0xff]  ;;  %v65_v20 = vld [vmem:[%s864_s1 + $0xd0] sm:$0xff] }
   0x6   :  { %492 = vmatprep.subr.mxu1 %v101_v5  ;;  %449 = vmatpush3.msra.mxu0 %v53_v6  ;;  %v99_v13 = vld [vmem:[%s864_s1 + $0x1e0] sm:$0xff]  ;;  %v98_v17 = vld [vmem:[%s864_s1 + $0x1d8] sm:$0xff]  ;;  %v97_v21 = vld [vmem:[%s864_s1 + $0x1d0] sm:$0xff] }
   0x7   :  { %493 = vmatpush3.msra.mxu1 %v85_v7  ;;  %450 = vmatprep.subr.mxu0 %v68_v8  ;;  %v51_v14 = vld [vmem:[%s864_s1 + $0x60] sm:$0xff]  ;;  %v50_v18 = vld [vmem:[%s864_s1 + $0x58] sm:$0xff]  ;;  %v49_v22 = vld [vmem:[%s864_s1 + $0x50] sm:$0xff] }
   0x8   :  { %494 = vmatprep.subr.mxu1 %v100_v9  ;;  %v83_v15 = vld [vmem:[%s864_s1 + $0x160] sm:$0xff]  ;;  %451 = vmatpush3.msra.mxu0 %v52_v10  ;;  %v82_v19 = vld [vmem:[%s864_s1 + $0x158] sm:$0xff]  ;;  %v81_v23 = vld [vmem:[%s864_s1 + $0x150] sm:$0xff] }
   0x9   :  { %495 = vmatpush3.msra.mxu1 %v84_v11  ;;  %452 = vmatprep.subr.mxu0 %v67_v12  ;;  %v64_v24 = vld [vmem:[%s864_s1 + $0xc8] sm:$0xff]  ;;  %v63_v28 = vld [vmem:[%s864_s1 + $0xc0] sm:$0xff]  ;;  %v62_v32 = vld [vmem:[%s864_s1 + $0xb8] sm:$0xff] }
   0xa   :  { %496 = vmatprep.subr.mxu1 %v99_v13  ;;  %453 = vmatpush3.msra.mxu0 %v51_v14  ;;  %v96_v25 = vld [vmem:[%s864_s1 + $0x1c8] sm:$0xff]  ;;  %v95_v29 = vld [vmem:[%s864_s1 + $0x1c0] sm:$0xff]  ;;  %v94_v33 = vld [vmem:[%s864_s1 + $0x1b8] sm:$0xff] }
   0xb   :  { %497 = vmatpush3.msra.mxu1 %v83_v15  ;;  %454 = vmatprep.subr.mxu0 %v66_v16  ;;  %v48_v26 = vld [vmem:[%s864_s1 + $0x48] sm:$0xff]  ;;  %v47_v30 = vld [vmem:[%s864_s1 + $0x40] sm:$0xff]  ;;  %v46_v34 = vld [vmem:[%s864_s1 + $0x38] sm:$0xff]  ;;  %v558_v16 = vmov 0.0  }
   0xc   :  { %498 = vmatprep.subr.mxu1 %v98_v17  ;;  %455 = vmatpush3.msra.mxu0 %v50_v18  ;;  %v80_v27 = vld [vmem:[%s864_s1 + $0x148] sm:$0xff]  ;;  %v79_v31 = vld [vmem:[%s864_s1 + $0x140] sm:$0xff]  ;;  %v78_v35 = vld [vmem:[%s864_s1 + $0x138] sm:$0xff] }
   0xd   :  { %499 = vmatpush3.msra.mxu1 %v82_v19  ;;  %456 = vmatprep.subr.mxu0 %v65_v20  ;;  %v61_v36 = vld [vmem:[%s864_s1 + $0xb0] sm:$0xff]  ;;  %v60_v40 = vld [vmem:[%s864_s1 + $0xa8] sm:$0xff]  ;;  %v59_v44 = vld [vmem:[%s864_s1 + $0xa0] sm:$0xff] }
   0xe   :  { %500 = vmatprep.subr.mxu1 %v97_v21  ;;  %457 = vmatpush3.msra.mxu0 %v49_v22  ;;  %v93_v37 = vld [vmem:[%s864_s1 + $0x1b0] sm:$0xff]  ;;  %v92_v41 = vld [vmem:[%s864_s1 + $0x1a8] sm:$0xff]  ;;  %v91_v45 = vld [vmem:[%s864_s1 + $0x1a0] sm:$0xff] }
   0xf   :  { %501 = vmatpush3.msra.mxu1 %v81_v23  ;;  %458 = vmatprep.subr.mxu0 %v64_v24  ;;  %v45_v38 = vld [vmem:[%s864_s1 + $0x30] sm:$0xff]  ;;  %v44_v42 = vld [vmem:[%s864_s1 + $0x28] sm:$0xff]  ;;  %v43_v46 = vld [vmem:[%s864_s1 + $0x20] sm:$0xff] }
  0x10   :  { %502 = vmatprep.subr.mxu1 %v96_v25  ;;  %459 = vmatpush3.msra.mxu0 %v48_v26  ;;  %v77_v39 = vld [vmem:[%s864_s1 + $0x130] sm:$0xff]  ;;  %v76_v43 = vld [vmem:[%s864_s1 + $0x128] sm:$0xff]  ;;  %v75_v47 = vld [vmem:[%s864_s1 + $0x120] sm:$0xff] }
  0x11   :  { %503 = vmatpush3.msra.mxu1 %v80_v27  ;;  %460 = vmatprep.subr.mxu0 %v63_v28  ;;  %v58_v48 = vld [vmem:[%s864_s1 + $0x98] sm:$0xff]  ;;  %v57_v52 = vld [vmem:[%s864_s1 + $0x90] sm:$0xff]  ;;  %v56_v56 = vld [vmem:[%s864_s1 + $0x88] sm:$0xff] }
  0x12   :  { %504 = vmatprep.subr.mxu1 %v95_v29  ;;  %461 = vmatpush3.msra.mxu0 %v47_v30  ;;  %v90_v49 = vld [vmem:[%s864_s1 + $0x198] sm:$0xff]  ;;  %v89_v53 = vld [vmem:[%s864_s1 + $0x190] sm:$0xff]  ;;  %v88_v57 = vld [vmem:[%s864_s1 + $0x188] sm:$0xff] }
  0x13   :  { %505 = vmatpush3.msra.mxu1 %v79_v31  ;;  %462 = vmatprep.subr.mxu0 %v62_v32  ;;  %v42_v50 = vld [vmem:[%s864_s1 + $0x18] sm:$0xff]  ;;  %v41_v54 = vld [vmem:[%s864_s1 + $0x10] sm:$0xff]  ;;  %v40_v58 = vld [vmem:[%s864_s1 + $0x8] sm:$0xff] }
  0x14   :  { %506 = vmatprep.subr.mxu1 %v94_v33  ;;  %463 = vmatpush3.msra.mxu0 %v46_v34  ;;  %v74_v51 = vld [vmem:[%s864_s1 + $0x118] sm:$0xff]  ;;  %v73_v55 = vld [vmem:[%s864_s1 + $0x110] sm:$0xff]  ;;  %v72_v59 = vld [vmem:[%s864_s1 + $0x108] sm:$0xff] }
  0x15   :  { %507 = vmatpush3.msra.mxu1 %v78_v35  ;;  %464 = vmatprep.subr.mxu0 %v61_v36  ;;  %v55_v60 = vld [vmem:[%s864_s1 + $0x80] sm:$0xff]  ;;  %v24_v63 = vld [vmem:[%s865_s0 + $0x8] sm:$0xff]  ;;  %v26_v1 = vld [vmem:[%s865_s0 + $0x18] sm:$0xff] }
  0x16   :  { %508 = vmatprep.subr.mxu1 %v93_v37  ;;  %465 = vmatpush3.msra.mxu0 %v45_v38  ;;  %v87_v61 = vld [vmem:[%s864_s1 + $0x180] sm:$0xff]  ;;  %v25_v3 = vld [vmem:[%s865_s0 + $0x10] sm:$0xff]  ;;  %v28_v4 = vld [vmem:[%s865_s0 + $0x28] sm:$0xff] }
  0x17   :  { %509 = vmatpush3.msra.mxu1 %v77_v39  ;;  %466 = vmatprep.subr.mxu0 %v60_v40  ;;  %v39_v62 = vld [vmem:[%s864_s1] sm:$0xff]  ;;  %v30_v5 = vld [vmem:[%s865_s0 + $0x38] sm:$0xff]  ;;  %v29_v7 = vld [vmem:[%s865_s0 + $0x30] sm:$0xff] }
  0x18   :  { %510 = vmatprep.subr.mxu1 %v92_v41  ;;  %467 = vmatpush3.msra.mxu0 %v44_v42  ;;  %v71_v0 = vld [vmem:[%s864_s1 + $0x100] sm:$0xff]  ;;  %v32_v8 = vld [vmem:[%s865_s0 + $0x48] sm:$0xff]  ;;  %v34_v9 = vld [vmem:[%s865_s0 + $0x58] sm:$0xff] }
  0x19   :  { %511 = vmatpush3.msra.mxu1 %v76_v43  ;;  %468 = vmatprep.subr.mxu0 %v59_v44  ;;  %v23_v2 = vld [vmem:[%s865_s0] sm:$0xff]  ;;  %v33_v11 = vld [vmem:[%s865_s0 + $0x50] sm:$0xff]  ;;  %v36_v12 = vld [vmem:[%s865_s0 + $0x68] sm:$0xff] }
  0x1a   :  { %512 = vmatprep.subr.mxu1 %v91_v45  ;;  %469 = vmatpush3.msra.mxu0 %v43_v46  ;;  %v27_v6 = vld [vmem:[%s865_s0 + $0x20] sm:$0xff]  ;;  %v38_v13 = vld [vmem:[%s865_s0 + $0x78] sm:$0xff]  ;;  %v37_v15 = vld [vmem:[%s865_s0 + $0x70] sm:$0xff] }
  0x1b   :  { %513 = vmatpush3.msra.mxu1 %v75_v47  ;;  %470 = vmatprep.subr.mxu0 %v58_v48  ;;  %v31_v10 = vld [vmem:[%s865_s0 + $0x40] sm:$0xff] }
  0x1c   :  { %514 = vmatprep.subr.mxu1 %v90_v49  ;;  %471 = vmatpush3.msra.mxu0 %v42_v50  ;;  %v35_v14 = vld [vmem:[%s865_s0 + $0x60] sm:$0xff] }
  0x1d   :  { %515 = vmatpush3.msra.mxu1 %v74_v51  ;;  %472 = vmatprep.subr.mxu0 %v57_v52 }
  0x1e   :  { %516 = vmatprep.subr.mxu1 %v89_v53  ;;  %473 = vmatpush3.msra.mxu0 %v41_v54 }
  0x1f   :  { %517 = vmatpush3.msra.mxu1 %v73_v55  ;;  %474 = vmatprep.subr.mxu0 %v56_v56 }
  0x20   :  { %518 = vmatprep.subr.mxu1 %v88_v57  ;;  %475 = vmatpush3.msra.mxu0 %v40_v58 }
  0x21   :  { %519 = vmatpush3.msra.mxu1 %v72_v59  ;;  %476 = vmatprep.subr.mxu0 %v55_v60 }
  0x22   :  { %520 = vmatprep.subr.mxu1 %v87_v61  ;;  %477 = vmatpush3.msra.mxu0 %v39_v62 }
  0x23   :  { %167 = vmatprep.mubr.f32.mxu0 %v24_v63  ;;  %521 = vmatpush3.msra.mxu1 %v71_v0 }
  0x24   :  { %252 = vmatprep.mubr.f32.mxu1 %v26_v1  ;;  %168 = vmatmul.mubr.f32.vlgmr.msra.gmra.mxu0 %v23_v2 }
  0x25   :  { %253 = vmatmul.mubr.f32.vlgmr.msra.gmra.mxu1 %v25_v3  ;;  %172 = vmatprep.mubr.f32.mxu0 %v28_v4 }
  0x26   :  { %257 = vmatprep.mubr.f32.mxu1 %v30_v5  ;;  %539 = vmatprep.subr.mxu0 %v558_v16 }
  0x28   :  { %173 = vmatmul.mubr.f32.gmra.mxu0 %v27_v6 }
  0x29   :  { %258 = vmatmul.mubr.f32.gmra.mxu1 %v29_v7  ;;  %177 = vmatprep.mubr.f32.mxu0 %v32_v8 }
  0x2a   :  { %262 = vmatprep.mubr.f32.mxu1 %v34_v9 }
  0x2c   :  { %178 = vmatmul.mubr.f32.gmra.mxu0 %v31_v10 }
  0x2d   :  { %263 = vmatmul.mubr.f32.gmra.mxu1 %v33_v11  ;;  %182 = vmatprep.mubr.f32.mxu0 %v36_v12 }
  0x2e   :  { %267 = vmatprep.mubr.f32.mxu1 %v38_v13  ;;  %v442_v13 = vld [vmem:[%s866_s2] ss:$0 sm:$0xff] }
  0x30   :  { %183 = vmatmul.mubr.f32.gmra.mxu0 %v35_v14 }
  0x31   :  { %268 = vmatmul.mubr.f32.gmra.mxu1 %v37_v15  ;;  %547 = vmatprep.mubr.msk.f32.mxu0 %vm559_vm0, %v558_v16 }
  0xe4   :  { %v478_v17 = vpop.f32.mrf.mxu0 }
  0xe5   :  { %v522_v18 = vpop.f32.mrf.mxu1 }
  0xe6   :  { %v479_v19 = vpop.f32.mrf.mxu0 }
  0xe7   :  { %v523_v20 = vpop.f32.mrf.mxu1  ;;  %v480_v23 = vadd.f32 %v479_v19, %v478_v17  ;;  %v443_v19 = vld [vmem:[%s867_s3] ss:$0 sm:$0xff] }
  0xe8   :  { %v481_v21 = vpop.f32.mrf.mxu0  ;;  %v524_v24 = vadd.f32 %v523_v20, %v522_v18 }
  0xe9   :  { %v525_v22 = vpop.f32.mrf.mxu1 }
  0xea   :  { %v482_v25 = vpop.f32.mrf.mxu0  ;;  %v255_v32 = vadd.f32 %v524_v24, %v480_v23 }
  0xeb   :  { %v526_v26 = vpop.f32.mrf.mxu1  ;;  %v483_v27 = vadd.f32 %v482_v25, %v481_v21 }
  0xec   :  { %v527_v28 = vadd.f32 %v526_v26, %v525_v22  ;;  %v484_v29 = vpop.f32.mrf.mxu0  ;;  %v283_v41 = vmul.f32 %v255_v32, %v255_v32 }
  0xed   :  { %v528_v30 = vpop.f32.mrf.mxu1 }
  0xee   :  { %v260_v31 = vadd.f32 %v527_v28, %v483_v27  ;;  %v485_v33 = vpop.f32.mrf.mxu0  ;;  %v346_v28 = vld [vmem:[%s868_s4 + $0x18] sm:$0xff] }
  0xef   :  { %v529_v34 = vpop.f32.mrf.mxu1  ;;  %v486_v35 = vadd.f32 %v485_v33, %v484_v29 }
  0xf0   :  { %v530_v36 = vadd.f32 %v529_v34, %v528_v30  ;;  %v487_v37 = vpop.f32.mrf.mxu0  ;;  %v284_v39 = vmul.f32 %v260_v31, %v260_v31  ;;  %v273_v44 = vadd.f32 %v260_v31, %v255_v32  ;;  %v345_v34 = vld [vmem:[%s868_s4 + $0x10] sm:$0xff] }
  0xf1   :  { %v531_v38 = vpop.f32.mrf.mxu1 }
  0xf2   :  { %v265_v40 = vadd.f32 %v530_v36, %v486_v35  ;;  %v488_v42 = vpop.f32.mrf.mxu0  ;;  %v287_v48 = vadd.f32 %v284_v39, %v283_v41  ;;  %v343_v41 = vld [vmem:[%s868_s4] sm:$0xff] }
  0xf3   :  { %v532_v43 = vpop.f32.mrf.mxu1  ;;  %v489_v46 = vadd.f32 %v488_v42, %v487_v37 }
  0xf4   :  { %v285_v45 = vmul.f32 %v265_v40, %v265_v40  ;;  %v533_v47 = vadd.f32 %v532_v43, %v531_v38  ;;  %v274_v49 = vadd.f32 %v273_v44, %v265_v40  ;;  %v344_v38 = vld [vmem:[%s868_s4 + $0x8] sm:$0xff]  ;;  %v351_v44 = vld [vmem:[%s869_s5] sm:$0x3] }
  0xf6   :  { %v270_v50 = vadd.f32 %v533_v47, %v489_v46  ;;  %v288_v51 = vadd.f32 %v287_v48, %v285_v45 }
  0xf8   :  { %v275_v52 = vadd.f32 %v274_v49, %v270_v50  ;;  %v286_v53 = vmul.f32 %v270_v50, %v270_v50 }
  0xfa   :  { %v276_v54 = vrot.slane %v275_v52, 4  ;;  %v289_v55 = vadd.f32 %v288_v51, %v286_v53 }
  0xfc   :  { %v277_v56 = vadd.f32 %v276_v54, %v275_v52  ;;  %v290_v57 = vrot.slane %v289_v55, 4 }
  0xfe   :  { %v278_v58 = vrot.slane %v277_v56, 2  ;;  %v291_v59 = vadd.f32 %v290_v57, %v289_v55 }
 0x100   :  { %v279_v60 = vadd.f32 %v278_v58, %v277_v56  ;;  %v292_v61 = vrot.slane %v291_v59, 2 }
 0x102   :  { %v280_v62 = vrot.slane %v279_v60, 1  ;;  %v293_v63 = vadd.f32 %v292_v61, %v291_v59 }
 0x104   :  { %v281_v0 = vadd.f32 %v280_v62, %v279_v60  ;;  %v294_v1 = vrot.slane %v293_v63, 1 }
 0x106   :  { %v282_v2 = vmul.f32 0.03125, %v281_v0  ;;  %v295_v3 = vadd.f32 %v294_v1, %v293_v63 }
 0x108   :  { %v296_v4 = vmul.f32 0.03125, %v295_v3  ;;  %v297_v5 = vmul.f32 %v282_v2, %v282_v2  ;;  %v302_v8 = vsub.f32 %v270_v50, %v282_v2  ;;  %v301_v9 = vsub.f32 %v265_v40, %v282_v2 }
 0x109   :  { %v300_v10 = vsub.f32 %v260_v31, %v282_v2  ;;  %v299_v11 = vsub.f32 %v255_v32, %v282_v2 }
 0x10a   :  { %v298_v6 = vsub.f32 %v296_v4, %v297_v5 }
 0x10c   :  { %v303_v7 = vadd.f32 1e-05, %v298_v6 }
 0x10e   :  { %552 = vrsqrt.f32 %v303_v7 }
 0x11b   :  { %v553_v12 = vpop.eup %552 }
 0x11c   :  { %v308_v14 = vmul.f32 %v553_v12, %v302_v8  ;;  %v307_v15 = vmul.f32 %v553_v12, %v301_v9  ;;  %v306_v17 = vmul.f32 %v553_v12, %v300_v10  ;;  %v305_v18 = vmul.f32 %v553_v12, %v299_v11 }
 0x11e   :  { %v319_v20 = vmul.f32 %v442_v13, %v308_v14  ;;  %v318_v21 = vmul.f32 %v442_v13, %v307_v15  ;;  %v317_v22 = vmul.f32 %v442_v13, %v306_v17  ;;  %v316_v23 = vmul.f32 %v442_v13, %v305_v18 }
 0x120   :  { %v330_v24 = vadd.f32 %v443_v19, %v319_v20  ;;  %v329_v25 = vadd.f32 %v443_v19, %v318_v21  ;;  %v328_v26 = vadd.f32 %v443_v19, %v317_v22  ;;  %v327_v27 = vadd.f32 %v443_v19, %v316_v23 }
 0x122   :  { %vm334_vm1 = vcmp.ge.f32.partialorder %v330_v24, 0.0  ;;  %v338_v29 = vmul.f32 0.002, %v330_v24  ;;  %vm333_vm2 = vcmp.ge.f32.partialorder %v329_v25, 0.0  ;;  %v337_v30 = vmul.f32 0.002, %v329_v25 }
 0x123   :  { %vm332_vm3 = vcmp.ge.f32.partialorder %v328_v26, 0.0  ;;  %v336_v31 = vmul.f32 0.002, %v328_v26  ;;  %v335_v35 = vmul.f32 0.002, %v327_v27  ;;  %vm331_vm4 = vcmp.ge.f32.partialorder %v327_v27, 0.0 }
 0x124   :  { %v342_v32 = vsel %vm334_vm1, %v330_v24, %v338_v29  ;;  %v341_v33 = vsel %vm333_vm2, %v329_v25, %v337_v30 }
 0x125   :  { %v350_v36 = vmul.f32 %v346_v28, %v342_v32  ;;  %v340_v37 = vsel %vm332_vm3, %v328_v26, %v336_v31  ;;  %v349_v39 = vmul.f32 %v345_v34, %v341_v33  ;;  %v339_v40 = vsel %vm331_vm4, %v327_v27, %v335_v35 }
 0x126   :  { %v348_v42 = vmul.f32 %v344_v38, %v340_v37  ;;  %v347_v43 = vmul.f32 %v343_v41, %v339_v40 }
 0x127   :  { %540 = vmatpush3.msra.mxu0 %v350_v36 }
 0x128   :  { %541 = vmatprep.subr.mxu0 %v558_v16 }
 0x129   :  { %542 = vmatpush3.msra.mxu0 %v349_v39 }
 0x12a   :  { %543 = vmatprep.subr.mxu0 %v558_v16 }
 0x12b   :  { %544 = vmatpush3.msra.mxu0 %v348_v42 }
 0x12c   :  { %545 = vmatprep.subr.mxu0 %v558_v16 }
 0x12d   :  { %546 = vmatpush3.msra.mxu0 %v347_v43 }
 0x12e   :  { %548 = vmatmul.mubr.msk.f32.vlgmr.msra.gmra.mxu0 %vm352_vm5, %v351_v44 }
 0x1ee   :  { %v422_v45 = vpop.f32.mrf.mxu0 }
 0x1ef   :  { %v427_v46 = vsel %vm426_vm6, %v422_v45, 0.0 }
 0x1f0   :  { %v549_v47 = vpop.f32.mrf.mxu0  ;;  %428 = vadd.xlane.f32.xlu0 %v427_v46 }
 0x279   :  { %v429_v48 = vpop.xlane.xlu0 %428 }
 0x27a   :  { %v445_v49 = vmul.f32 -1.442695, %v429_v48 }
 0x27c   :  { %554 = vpow2.f32 %v445_v49 }
 0x289   :  { %v555_v50 = vpop.eup %554 }
 0x28a   :  { %v433_v51 = vadd.f32 1.0, %v555_v50 }
 0x28c   :  { %556 = vrcp.f32 %v433_v51 }
 0x299   :  { %v557_v52 = vpop.eup %556 }
 0x29a   :  { %437 = vst.msk [vmem:[%s870_s6] sm:$0x3] %vm436_vm7, %v557_v52 }

</bundles_post_ra>
